<compile_context>
chip_gen: v7x
topology: tpu7x:2x2x1
jax: 0.10.0
libtpu: 0.0.40
codegen_flags: <defaults>
</compile_context>

<pallas_src>
import math
import jax
import jax.numpy as jnp
from jax.experimental import pallas as pl

# --- model hyperparameters (small, consistent with the module's interface) ---
N, L, E = 2, 8, 32          # batch, seq len, d_model
H = 4                       # attention heads
DH = E // H                 # head dim
FF = 64                     # feed-forward hidden dim
NUM_LAYERS = 2
EPS = 1e-5                  # torch.nn.LayerNorm default eps

NL = N * L                  # flattened token count
B = N * H                   # combined (batch, head) dim used inside attention
WDTYPE = jnp.bfloat16       # MXU operand dtype (weights + casted activations)


def _layer_norm(x, gamma, beta):
    mean = jnp.mean(x, axis=-1, keepdims=True)
    var = jnp.mean((x - mean) ** 2, axis=-1, keepdims=True)
    return (x - mean) * jax.lax.rsqrt(var + EPS) * gamma + beta


def encoder_stack_kernel(x_ref,          # (NL, E)              f32
                         wqkv_ref,       # (NUM_LAYERS,3,B,DH,E) bf16 (Q scaled by 1/sqrt(DH))
                         bqkv_ref,       # (NUM_LAYERS,3,B,L,DH) f32  (pre-broadcast over L)
                         wo_ref,         # (NUM_LAYERS,B,DH,E)   bf16
                         w1_ref,         # (NUM_LAYERS,E,FF)     bf16
                         b1_ref,         # (NUM_LAYERS,FF)       f32
                         w2_ref,         # (NUM_LAYERS,FF,E)     bf16
                         small_ref,      # (NUM_LAYERS,6,E)      f32: [bo, g1, be1, b2, g2, be2]
                         fin_ref,        # (2, E)                f32: [gamma_final, beta_final]
                         out_ref):       # (NL, E)               f32
    x2 = x_ref[...]                                     # residual stream, (NL, E) f32

    for layer in range(NUM_LAYERS):                     # static unroll over layers
        # ---------------- multi-head attention ----------------
        x3 = x2.reshape(N, L, E)
        xb = jnp.broadcast_to(x3[:, None, :, :], (N, H, L, E)).reshape(B, L, E)
        xb16 = xb.astype(WDTYPE)

        wq = wqkv_ref[layer, 0]                         # (B, DH, E)
        wk = wqkv_ref[layer, 1]
        wv = wqkv_ref[layer, 2]
        bq = bqkv_ref[layer, 0]                         # (B, L, DH)
        bk = bqkv_ref[layer, 1]
        bv = bqkv_ref[layer, 2]

        q = jnp.einsum('ble,bde->bld', xb16, wq,
                       preferred_element_type=jnp.float32) + bq
        k = jnp.einsum('ble,bde->bld', xb16, wk,
                       preferred_element_type=jnp.float32) + bk
        v = jnp.einsum('ble,bde->bld', xb16, wv,
                       preferred_element_type=jnp.float32) + bv

        # scaled dot-product attention (scale already folded into wq/bq)
        s = jnp.einsum('bld,bmd->blm', q.astype(WDTYPE), k.astype(WDTYPE),
                       preferred_element_type=jnp.float32)          # (B, L, L)
        s = s - jnp.max(s, axis=-1, keepdims=True)
        p = jnp.exp(s)
        p = p * pl.reciprocal(jnp.sum(p, axis=-1, keepdims=True), approx=True)

        o = jnp.einsum('blm,bmd->bld', p.astype(WDTYPE), v.astype(WDTYPE),
                       preferred_element_type=jnp.float32)           # (B, L, DH)

        # per-head output projection; merging heads == summing per-head contributions
        o_proj = jnp.einsum('bld,bde->ble', o.astype(WDTYPE), wo_ref[layer],
                            preferred_element_type=jnp.float32)      # (B, L, E)
        o4 = o_proj.reshape(N, H, L, E)
        attn = o4[:, 0]
        for h in range(1, H):                           # static unroll, tiny H
            attn = attn + o4[:, h]
        attn = attn.reshape(NL, E)

        small = small_ref[layer]                        # (6, E)
        attn = attn + small[0]                          # output-projection bias

        # ---------------- add & norm 1 (dropout = identity in eval mode) ----------------
        x2 = _layer_norm(x2 + attn, small[1], small[2])

        # ---------------- feed forward ----------------
        y = jnp.dot(x2.astype(WDTYPE), w1_ref[layer],
                    preferred_element_type=jnp.float32) + b1_ref[layer]
        y = jnp.maximum(y, 0.0)                         # ReLU
        y = jnp.dot(y.astype(WDTYPE), w2_ref[layer],
                    preferred_element_type=jnp.float32) + small[3]

        # ---------------- add & norm 2 ----------------
        x2 = _layer_norm(x2 + y, small[4], small[5])

    # -------- optional final norm_layer --------
    fin = fin_ref[...]
    out_ref[...] = _layer_norm(x2, fin[0], fin[1])


@jax.jit
def transformer_encoder(x, packed):
    x2 = x.reshape(NL, E)
    out = pl.pallas_call(
        encoder_stack_kernel,
        out_shape=jax.ShapeDtypeStruct((NL, E), jnp.float32),
    )(x2, *packed)
    return out.reshape(N, L, E)


# ------------------------- host-side parameter prep -------------------------

def init_linear(key, fan_in, fan_out):
    kw, kb = jax.random.split(key)
    bound = 1.0 / math.sqrt(fan_in)
    w = jax.random.uniform(kw, (fan_in, fan_out), jnp.float32, -bound, bound)
    b = jax.random.uniform(kb, (fan_out,), jnp.float32, -bound, bound)
    return w, b


def init_layer_params(key):
    ks = jax.random.split(key, 6)
    wq, bq = init_linear(ks[0], E, E)
    wk, bk = init_linear(ks[1], E, E)
    wv, bv = init_linear(ks[2], E, E)
    wo, bo = init_linear(ks[3], E, E)
    w1, b1 = init_linear(ks[4], E, FF)
    w2, b2 = init_linear(ks[5], FF, E)
    return dict(wq=wq, bq=bq, wk=wk, bk=bk, wv=wv, bv=bv, wo=wo, bo=bo,
                g1=jnp.ones((E,), jnp.float32), be1=jnp.zeros((E,), jnp.float32),
                w1=w1, b1=b1, w2=w2, b2=b2,
                g2=jnp.ones((E,), jnp.float32), be2=jnp.zeros((E,), jnp.float32))


def _head_weight(w):
    # (E, E) in x@W layout -> (B, DH, E): W_b[n*H+h, d, e] = W[e, h*DH + d]
    w_hde = w.reshape(E, H, DH).transpose(1, 2, 0)                 # (H, DH, E)
    return jnp.broadcast_to(w_hde[None], (N, H, DH, E)).reshape(B, DH, E)


def _head_bias(b):
    # (E,) -> (B, L, DH), broadcast over batch and sequence position
    b_hd = b.reshape(H, DH)
    return jnp.broadcast_to(b_hd[None, :, None, :], (N, H, L, DH)).reshape(B, L, DH)


def pack_params(layers, g_final, b_final):
    scale = 1.0 / math.sqrt(DH)   # fold attention scale into the Q projection
    wqkv = jnp.stack([jnp.stack([_head_weight(p['wq'] * scale),
                                 _head_weight(p['wk']),
                                 _head_weight(p['wv'])]) for p in layers])
    bqkv = jnp.stack([jnp.stack([_head_bias(p['bq'] * scale),
                                 _head_bias(p['bk']),
                                 _head_bias(p['bv'])]) for p in layers])
    wo = jnp.stack([jnp.broadcast_to(p['wo'].reshape(H, DH, E)[None],
                                     (N, H, DH, E)).reshape(B, DH, E)
                    for p in layers])
    w1 = jnp.stack([p['w1'] for p in layers])
    b1 = jnp.stack([p['b1'] for p in layers])
    w2 = jnp.stack([p['w2'] for p in layers])
    small = jnp.stack([jnp.stack([p['bo'], p['g1'], p['be1'],
                                  p['b2'], p['g2'], p['be2']]) for p in layers])
    fin = jnp.stack([g_final, b_final])
    return (wqkv.astype(WDTYPE), bqkv, wo.astype(WDTYPE),
            w1.astype(WDTYPE), b1, w2.astype(WDTYPE), small, fin)


if __name__ == "__main__":
    key = jax.random.PRNGKey(0)
    key, xk = jax.random.split(key)
    x = jax.random.normal(xk, (N, L, E), jnp.float32)

    layers = []
    for _ in range(NUM_LAYERS):
        key, lk = jax.random.split(key)
        layers.append(init_layer_params(lk))

    # final norm_layer (LayerNorm(d_model))
    g_final = jnp.ones((E,), jnp.float32)
    b_final = jnp.zeros((E,), jnp.float32)

    packed = pack_params(layers, g_final, b_final)
    out = transformer_encoder(x, packed)
    jax.block_until_ready(out)

    assert out.shape == (N, L, E)
    assert bool(jnp.all(jnp.isfinite(out)))
    print("KERNEL_OK")
</pallas_src>

<mosaic_0001>
module attributes {stable_mosaic.version = 11 : i64} {
  func.func @encoder_stack_kernel(%arg0: memref<16x32xf32, #tpu.memory_space<vmem>>, %arg1: memref<2x3x8x8x32xbf16, #tpu.memory_space<vmem>>, %arg2: memref<2x3x8x8x8xf32, #tpu.memory_space<vmem>>, %arg3: memref<2x8x8x32xbf16, #tpu.memory_space<vmem>>, %arg4: memref<2x32x64xbf16, #tpu.memory_space<vmem>>, %arg5: memref<2x64xf32, #tpu.memory_space<vmem>>, %arg6: memref<2x64x32xbf16, #tpu.memory_space<vmem>>, %arg7: memref<2x6x32xf32, #tpu.memory_space<vmem>>, %arg8: memref<2x32xf32, #tpu.memory_space<vmem>>, %arg9: memref<16x32xf32, #tpu.memory_space<vmem>>) attributes {dimension_semantics = [], scalar_prefetch = 0 : i64, scratch_operands = 0 : i64, tpu.core_type = #tpu.core_type<tc>} {
    %c0 = arith.constant 0 : index
    %c0_0 = arith.constant 0 : index
    %0 = vector.load %arg0[%c0, %c0_0] : memref<16x32xf32, #tpu.memory_space<vmem>>, vector<16x32xf32>
    %1 = vector.shape_cast %0 : vector<16x32xf32> to vector<2x8x32xf32>
    %2 = vector.shape_cast %1 : vector<2x8x32xf32> to vector<2x1x8x32xf32>
    %3 = vector.shape_cast %2 : vector<2x1x8x32xf32> to vector<2x1x8x32xf32>
    %4 = vector.broadcast %3 : vector<2x1x8x32xf32> to vector<2x4x8x32xf32>
    %5 = vector.shape_cast %4 : vector<2x4x8x32xf32> to vector<8x8x32xf32>
    %6 = arith.truncf %5 : vector<8x8x32xf32> to vector<8x8x32xbf16>
    %c0_1 = arith.constant 0 : index
    %c0_2 = arith.constant 0 : index
    %c0_3 = arith.constant 0 : index
    %c0_4 = arith.constant 0 : index
    %c0_5 = arith.constant 0 : index
    %7 = vector.load %arg1[%c0_1, %c0_2, %c0_3, %c0_4, %c0_5] : memref<2x3x8x8x32xbf16, #tpu.memory_space<vmem>>, vector<1x1x8x8x32xbf16>
    %8 = vector.shape_cast %7 : vector<1x1x8x8x32xbf16> to vector<8x8x32xbf16>
    %c0_6 = arith.constant 0 : index
    %c1 = arith.constant 1 : index
    %c0_7 = arith.constant 0 : index
    %c0_8 = arith.constant 0 : index
    %c0_9 = arith.constant 0 : index
    %9 = vector.load %arg1[%c0_6, %c1, %c0_7, %c0_8, %c0_9] : memref<2x3x8x8x32xbf16, #tpu.memory_space<vmem>>, vector<1x1x8x8x32xbf16>
    %10 = vector.shape_cast %9 : vector<1x1x8x8x32xbf16> to vector<8x8x32xbf16>
    %c0_10 = arith.constant 0 : index
    %c2 = arith.constant 2 : index
    %c0_11 = arith.constant 0 : index
    %c0_12 = arith.constant 0 : index
    %c0_13 = arith.constant 0 : index
    %11 = vector.load %arg1[%c0_10, %c2, %c0_11, %c0_12, %c0_13] : memref<2x3x8x8x32xbf16, #tpu.memory_space<vmem>>, vector<1x1x8x8x32xbf16>
    %12 = vector.shape_cast %11 : vector<1x1x8x8x32xbf16> to vector<8x8x32xbf16>
    %c0_14 = arith.constant 0 : index
    %c0_15 = arith.constant 0 : index
    %c0_16 = arith.constant 0 : index
    %c0_17 = arith.constant 0 : index
    %c0_18 = arith.constant 0 : index
    %13 = vector.load %arg2[%c0_14, %c0_15, %c0_16, %c0_17, %c0_18] : memref<2x3x8x8x8xf32, #tpu.memory_space<vmem>>, vector<1x1x8x8x8xf32>
    %14 = vector.shape_cast %13 : vector<1x1x8x8x8xf32> to vector<8x8x8xf32>
    %c0_19 = arith.constant 0 : index
    %c1_20 = arith.constant 1 : index
    %c0_21 = arith.constant 0 : index
    %c0_22 = arith.constant 0 : index
    %c0_23 = arith.constant 0 : index
    %15 = vector.load %arg2[%c0_19, %c1_20, %c0_21, %c0_22, %c0_23] : memref<2x3x8x8x8xf32, #tpu.memory_space<vmem>>, vector<1x1x8x8x8xf32>
    %16 = vector.shape_cast %15 : vector<1x1x8x8x8xf32> to vector<8x8x8xf32>
    %c0_24 = arith.constant 0 : index
    %c2_25 = arith.constant 2 : index
    %c0_26 = arith.constant 0 : index
    %c0_27 = arith.constant 0 : index
    %c0_28 = arith.constant 0 : index
    %17 = vector.load %arg2[%c0_24, %c2_25, %c0_26, %c0_27, %c0_28] : memref<2x3x8x8x8xf32, #tpu.memory_space<vmem>>, vector<1x1x8x8x8xf32>
    %18 = vector.shape_cast %17 : vector<1x1x8x8x8xf32> to vector<8x8x8xf32>
    "tpu.trace_start"() <{level = 10 : i32, message = "ble,bde->bld"}> : () -> ()
    %cst = arith.constant dense<0.000000e+00> : vector<8x8x8xf32>
    %19 = tpu.matmul %6, %8, %cst {dimension_numbers = #tpu.dot_dimension_numbers<[2], [2], [1], [1], [0, 0, 0, 1, 1, 1], [0], [0]>} : vector<8x8x32xbf16>, vector<8x8x32xbf16>, vector<8x8x8xf32> -> vector<8x8x8xf32>
    "tpu.trace_stop"() : () -> ()
    %20 = arith.addf %19, %14 : vector<8x8x8xf32>
    "tpu.trace_start"() <{level = 10 : i32, message = "ble,bde->bld"}> : () -> ()
    %cst_29 = arith.constant dense<0.000000e+00> : vector<8x8x8xf32>
    %21 = tpu.matmul %6, %10, %cst_29 {dimension_numbers = #tpu.dot_dimension_numbers<[2], [2], [1], [1], [0, 0, 0, 1, 1, 1], [0], [0]>} : vector<8x8x32xbf16>, vector<8x8x32xbf16>, vector<8x8x8xf32> -> vector<8x8x8xf32>
    "tpu.trace_stop"() : () -> ()
    %22 = arith.addf %21, %16 : vector<8x8x8xf32>
    "tpu.trace_start"() <{level = 10 : i32, message = "ble,bde->bld"}> : () -> ()
    %cst_30 = arith.constant dense<0.000000e+00> : vector<8x8x8xf32>
    %23 = tpu.matmul %6, %12, %cst_30 {dimension_numbers = #tpu.dot_dimension_numbers<[2], [2], [1], [1], [0, 0, 0, 1, 1, 1], [0], [0]>} : vector<8x8x32xbf16>, vector<8x8x32xbf16>, vector<8x8x8xf32> -> vector<8x8x8xf32>
    "tpu.trace_stop"() : () -> ()
    %24 = arith.addf %23, %18 : vector<8x8x8xf32>
    %25 = arith.truncf %20 : vector<8x8x8xf32> to vector<8x8x8xbf16>
    %26 = arith.truncf %22 : vector<8x8x8xf32> to vector<8x8x8xbf16>
    "tpu.trace_start"() <{level = 10 : i32, message = "bld,bmd->blm"}> : () -> ()
    %cst_31 = arith.constant dense<0.000000e+00> : vector<8x8x8xf32>
    %27 = tpu.matmul %25, %26, %cst_31 {dimension_numbers = #tpu.dot_dimension_numbers<[2], [2], [1], [1], [0, 0, 0, 1, 1, 1], [0], [0]>} : vector<8x8x8xbf16>, vector<8x8x8xbf16>, vector<8x8x8xf32> -> vector<8x8x8xf32>
    "tpu.trace_stop"() : () -> ()
    %cst_32 = arith.constant dense<0xFF800000> : vector<8x8xf32>
    %28 = vector.multi_reduction <maximumf>, %27, %cst_32 [2] : vector<8x8x8xf32> to vector<8x8xf32>
    %29 = vector.shape_cast %28 : vector<8x8xf32> to vector<8x8x1xf32>
    %30 = vector.broadcast %29 : vector<8x8x1xf32> to vector<8x8x8xf32>
    %31 = arith.subf %27, %30 : vector<8x8x8xf32>
    %32 = math.exp %31 : vector<8x8x8xf32>
    %cst_33 = arith.constant dense<0.000000e+00> : vector<8x8xf32>
    %33 = vector.multi_reduction <add>, %32, %cst_33 [2] : vector<8x8x8xf32> to vector<8x8xf32>
    %34 = vector.shape_cast %33 : vector<8x8xf32> to vector<8x8x1xf32>
    %35 = tpu.reciprocal %34 {approx = true} : vector<8x8x1xf32> -> vector<8x8x1xf32>
    %36 = vector.broadcast %35 : vector<8x8x1xf32> to vector<8x8x8xf32>
    %37 = arith.mulf %32, %36 : vector<8x8x8xf32>
    %38 = arith.truncf %37 : vector<8x8x8xf32> to vector<8x8x8xbf16>
    %39 = arith.truncf %24 : vector<8x8x8xf32> to vector<8x8x8xbf16>
    "tpu.trace_start"() <{level = 10 : i32, message = "blm,bmd->bld"}> : () -> ()
    %cst_34 = arith.constant dense<0.000000e+00> : vector<8x8x8xf32>
    %40 = tpu.matmul %38, %39, %cst_34 {dimension_numbers = #tpu.dot_dimension_numbers<[2], [1], [1], [2], [0, 0, 0, 1, 1, 2], [0], [0]>} : vector<8x8x8xbf16>, vector<8x8x8xbf16>, vector<8x8x8xf32> -> vector<8x8x8xf32>
    "tpu.trace_stop"() : () -> ()
    %41 = arith.truncf %40 : vector<8x8x8xf32> to vector<8x8x8xbf16>
    %c0_35 = arith.constant 0 : index
    %c0_36 = arith.constant 0 : index
    %c0_37 = arith.constant 0 : index
    %c0_38 = arith.constant 0 : index
    %42 = vector.load %arg3[%c0_35, %c0_36, %c0_37, %c0_38] : memref<2x8x8x32xbf16, #tpu.memory_space<vmem>>, vector<1x8x8x32xbf16>
    %43 = vector.shape_cast %42 : vector<1x8x8x32xbf16> to vector<8x8x32xbf16>
    "tpu.trace_start"() <{level = 10 : i32, message = "bld,bde->ble"}> : () -> ()
    %cst_39 = arith.constant dense<0.000000e+00> : vector<8x8x32xf32>
    %44 = tpu.matmul %41, %43, %cst_39 {dimension_numbers = #tpu.dot_dimension_numbers<[2], [1], [1], [2], [0, 0, 0, 1, 1, 2], [0], [0]>} : vector<8x8x8xbf16>, vector<8x8x32xbf16>, vector<8x8x32xf32> -> vector<8x8x32xf32>
    "tpu.trace_stop"() : () -> ()
    %45 = vector.shape_cast %44 : vector<8x8x32xf32> to vector<2x4x8x32xf32>
    %46 = vector.extract_strided_slice %45 {offsets = [0, 0, 0, 0], sizes = [2, 1, 8, 32], strides = [1, 1, 1, 1]} : vector<2x4x8x32xf32> to vector<2x1x8x32xf32>
    %47 = vector.shape_cast %46 : vector<2x1x8x32xf32> to vector<2x8x32xf32>
    %48 = vector.extract_strided_slice %45 {offsets = [0, 1, 0, 0], sizes = [2, 1, 8, 32], strides = [1, 1, 1, 1]} : vector<2x4x8x32xf32> to vector<2x1x8x32xf32>
    %49 = vector.shape_cast %48 : vector<2x1x8x32xf32> to vector<2x8x32xf32>
    %50 = arith.addf %47, %49 : vector<2x8x32xf32>
    %51 = vector.extract_strided_slice %45 {offsets = [0, 2, 0, 0], sizes = [2, 1, 8, 32], strides = [1, 1, 1, 1]} : vector<2x4x8x32xf32> to vector<2x1x8x32xf32>
    %52 = vector.shape_cast %51 : vector<2x1x8x32xf32> to vector<2x8x32xf32>
    %53 = arith.addf %50, %52 : vector<2x8x32xf32>
    %54 = vector.extract_strided_slice %45 {offsets = [0, 3, 0, 0], sizes = [2, 1, 8, 32], strides = [1, 1, 1, 1]} : vector<2x4x8x32xf32> to vector<2x1x8x32xf32>
    %55 = vector.shape_cast %54 : vector<2x1x8x32xf32> to vector<2x8x32xf32>
    %56 = arith.addf %53, %55 : vector<2x8x32xf32>
    %57 = vector.shape_cast %56 : vector<2x8x32xf32> to vector<16x32xf32>
    %c0_40 = arith.constant 0 : index
    %c0_41 = arith.constant 0 : index
    %c0_42 = arith.constant 0 : index
    %58 = vector.load %arg7[%c0_40, %c0_41, %c0_42] : memref<2x6x32xf32, #tpu.memory_space<vmem>>, vector<1x6x32xf32>
    %59 = vector.shape_cast %58 : vector<1x6x32xf32> to vector<6x32xf32>
    %60 = vector.extract_strided_slice %59 {offsets = [0, 0], sizes = [1, 32], strides = [1, 1]} : vector<6x32xf32> to vector<1x32xf32>
    %61 = vector.shape_cast %60 : vector<1x32xf32> to vector<32xf32>
    %62 = vector.shape_cast %61 : vector<32xf32> to vector<1x32xf32>
    %63 = vector.broadcast %62 : vector<1x32xf32> to vector<16x32xf32>
    %64 = arith.addf %57, %63 : vector<16x32xf32>
    %65 = arith.addf %0, %64 : vector<16x32xf32>
    %66 = vector.extract_strided_slice %59 {offsets = [1, 0], sizes = [1, 32], strides = [1, 1]} : vector<6x32xf32> to vector<1x32xf32>
    %67 = vector.shape_cast %66 : vector<1x32xf32> to vector<32xf32>
    %68 = vector.extract_strided_slice %59 {offsets = [2, 0], sizes = [1, 32], strides = [1, 1]} : vector<6x32xf32> to vector<1x32xf32>
    %69 = vector.shape_cast %68 : vector<1x32xf32> to vector<32xf32>
    %cst_43 = arith.constant dense<0.000000e+00> : vector<16xf32>
    %70 = vector.multi_reduction <add>, %65, %cst_43 [1] : vector<16x32xf32> to vector<16xf32>
    %71 = vector.shape_cast %70 : vector<16xf32> to vector<16x1xf32>
    %cst_44 = arith.constant 3.200000e+01 : f32
    %72 = vector.broadcast %cst_44 : f32 to vector<16x1xf32>
    %73 = arith.divf %71, %72 : vector<16x1xf32>
    %74 = vector.broadcast %73 : vector<16x1xf32> to vector<16x32xf32>
    %75 = arith.subf %65, %74 : vector<16x32xf32>
    %76 = arith.mulf %75, %75 : vector<16x32xf32>
    %cst_45 = arith.constant dense<0.000000e+00> : vector<16xf32>
    %77 = vector.multi_reduction <add>, %76, %cst_45 [1] : vector<16x32xf32> to vector<16xf32>
    %78 = vector.shape_cast %77 : vector<16xf32> to vector<16x1xf32>
    %cst_46 = arith.constant 3.200000e+01 : f32
    %79 = vector.broadcast %cst_46 : f32 to vector<16x1xf32>
    %80 = arith.divf %78, %79 : vector<16x1xf32>
    %81 = vector.broadcast %73 : vector<16x1xf32> to vector<16x32xf32>
    %82 = arith.subf %65, %81 : vector<16x32xf32>
    %cst_47 = arith.constant 9.99999974E-6 : f32
    %83 = vector.broadcast %cst_47 : f32 to vector<16x1xf32>
    %84 = arith.addf %80, %83 : vector<16x1xf32>
    %85 = math.rsqrt %84 : vector<16x1xf32>
    %86 = vector.broadcast %85 : vector<16x1xf32> to vector<16x32xf32>
    %87 = arith.mulf %82, %86 : vector<16x32xf32>
    %88 = vector.shape_cast %67 : vector<32xf32> to vector<1x32xf32>
    %89 = vector.broadcast %88 : vector<1x32xf32> to vector<16x32xf32>
    %90 = arith.mulf %87, %89 : vector<16x32xf32>
    %91 = vector.shape_cast %69 : vector<32xf32> to vector<1x32xf32>
    %92 = vector.broadcast %91 : vector<1x32xf32> to vector<16x32xf32>
    %93 = arith.addf %90, %92 : vector<16x32xf32>
    %94 = arith.truncf %93 : vector<16x32xf32> to vector<16x32xbf16>
    %c0_48 = arith.constant 0 : index
    %c0_49 = arith.constant 0 : index
    %c0_50 = arith.constant 0 : index
    %95 = vector.load %arg4[%c0_48, %c0_49, %c0_50] : memref<2x32x64xbf16, #tpu.memory_space<vmem>>, vector<1x32x64xbf16>
    %96 = vector.shape_cast %95 : vector<1x32x64xbf16> to vector<32x64xbf16>
    %cst_51 = arith.constant dense<0.000000e+00> : vector<16x64xf32>
    %97 = tpu.matmul %94, %96, %cst_51 {dimension_numbers = #tpu.dot_dimension_numbers<[1], [0], [0], [1], [0, 0, 1, 1], [], []>} : vector<16x32xbf16>, vector<32x64xbf16>, vector<16x64xf32> -> vector<16x64xf32>
    %c0_52 = arith.constant 0 : index
    %c0_53 = arith.constant 0 : index
    %98 = vector.load %arg5[%c0_52, %c0_53] : memref<2x64xf32, #tpu.memory_space<vmem>>, vector<1x64xf32>
    %99 = vector.shape_cast %98 : vector<1x64xf32> to vector<64xf32>
    %100 = vector.shape_cast %99 : vector<64xf32> to vector<1x64xf32>
    %101 = vector.broadcast %100 : vector<1x64xf32> to vector<16x64xf32>
    %102 = arith.addf %97, %101 : vector<16x64xf32>
    %cst_54 = arith.constant 0.000000e+00 : f32
    %103 = vector.broadcast %cst_54 : f32 to vector<16x64xf32>
    %104 = arith.maximumf %102, %103 : vector<16x64xf32>
    %105 = arith.truncf %104 : vector<16x64xf32> to vector<16x64xbf16>
    %c0_55 = arith.constant 0 : index
    %c0_56 = arith.constant 0 : index
    %c0_57 = arith.constant 0 : index
    %106 = vector.load %arg6[%c0_55, %c0_56, %c0_57] : memref<2x64x32xbf16, #tpu.memory_space<vmem>>, vector<1x64x32xbf16>
    %107 = vector.shape_cast %106 : vector<1x64x32xbf16> to vector<64x32xbf16>
    %cst_58 = arith.constant dense<0.000000e+00> : vector<16x32xf32>
    %108 = tpu.matmul %105, %107, %cst_58 {dimension_numbers = #tpu.dot_dimension_numbers<[1], [0], [0], [1], [0, 0, 1, 1], [], []>} : vector<16x64xbf16>, vector<64x32xbf16>, vector<16x32xf32> -> vector<16x32xf32>
    %109 = vector.extract_strided_slice %59 {offsets = [3, 0], sizes = [1, 32], strides = [1, 1]} : vector<6x32xf32> to vector<1x32xf32>
    %110 = vector.shape_cast %109 : vector<1x32xf32> to vector<32xf32>
    %111 = vector.shape_cast %110 : vector<32xf32> to vector<1x32xf32>
    %112 = vector.broadcast %111 : vector<1x32xf32> to vector<16x32xf32>
    %113 = arith.addf %108, %112 : vector<16x32xf32>
    %114 = arith.addf %93, %113 : vector<16x32xf32>
    %115 = vector.extract_strided_slice %59 {offsets = [4, 0], sizes = [1, 32], strides = [1, 1]} : vector<6x32xf32> to vector<1x32xf32>
    %116 = vector.shape_cast %115 : vector<1x32xf32> to vector<32xf32>
    %117 = vector.extract_strided_slice %59 {offsets = [5, 0], sizes = [1, 32], strides = [1, 1]} : vector<6x32xf32> to vector<1x32xf32>
    %118 = vector.shape_cast %117 : vector<1x32xf32> to vector<32xf32>
    %cst_59 = arith.constant dense<0.000000e+00> : vector<16xf32>
    %119 = vector.multi_reduction <add>, %114, %cst_59 [1] : vector<16x32xf32> to vector<16xf32>
    %120 = vector.shape_cast %119 : vector<16xf32> to vector<16x1xf32>
    %cst_60 = arith.constant 3.200000e+01 : f32
    %121 = vector.broadcast %cst_60 : f32 to vector<16x1xf32>
    %122 = arith.divf %120, %121 : vector<16x1xf32>
    %123 = vector.broadcast %122 : vector<16x1xf32> to vector<16x32xf32>
    %124 = arith.subf %114, %123 : vector<16x32xf32>
    %125 = arith.mulf %124, %124 : vector<16x32xf32>
    %cst_61 = arith.constant dense<0.000000e+00> : vector<16xf32>
    %126 = vector.multi_reduction <add>, %125, %cst_61 [1] : vector<16x32xf32> to vector<16xf32>
    %127 = vector.shape_cast %126 : vector<16xf32> to vector<16x1xf32>
    %cst_62 = arith.constant 3.200000e+01 : f32
    %128 = vector.broadcast %cst_62 : f32 to vector<16x1xf32>
    %129 = arith.divf %127, %128 : vector<16x1xf32>
    %130 = vector.broadcast %122 : vector<16x1xf32> to vector<16x32xf32>
    %131 = arith.subf %114, %130 : vector<16x32xf32>
    %cst_63 = arith.constant 9.99999974E-6 : f32
    %132 = vector.broadcast %cst_63 : f32 to vector<16x1xf32>
    %133 = arith.addf %129, %132 : vector<16x1xf32>
    %134 = math.rsqrt %133 : vector<16x1xf32>
    %135 = vector.broadcast %134 : vector<16x1xf32> to vector<16x32xf32>
    %136 = arith.mulf %131, %135 : vector<16x32xf32>
    %137 = vector.shape_cast %116 : vector<32xf32> to vector<1x32xf32>
    %138 = vector.broadcast %137 : vector<1x32xf32> to vector<16x32xf32>
    %139 = arith.mulf %136, %138 : vector<16x32xf32>
    %140 = vector.shape_cast %118 : vector<32xf32> to vector<1x32xf32>
    %141 = vector.broadcast %140 : vector<1x32xf32> to vector<16x32xf32>
    %142 = arith.addf %139, %141 : vector<16x32xf32>
    %143 = vector.shape_cast %142 : vector<16x32xf32> to vector<2x8x32xf32>
    %144 = vector.shape_cast %143 : vector<2x8x32xf32> to vector<2x1x8x32xf32>
    %145 = vector.shape_cast %144 : vector<2x1x8x32xf32> to vector<2x1x8x32xf32>
    %146 = vector.broadcast %145 : vector<2x1x8x32xf32> to vector<2x4x8x32xf32>
    %147 = vector.shape_cast %146 : vector<2x4x8x32xf32> to vector<8x8x32xf32>
    %148 = arith.truncf %147 : vector<8x8x32xf32> to vector<8x8x32xbf16>
    %c1_64 = arith.constant 1 : index
    %c0_65 = arith.constant 0 : index
    %c0_66 = arith.constant 0 : index
    %c0_67 = arith.constant 0 : index
    %c0_68 = arith.constant 0 : index
    %149 = vector.load %arg1[%c1_64, %c0_65, %c0_66, %c0_67, %c0_68] : memref<2x3x8x8x32xbf16, #tpu.memory_space<vmem>>, vector<1x1x8x8x32xbf16>
    %150 = vector.shape_cast %149 : vector<1x1x8x8x32xbf16> to vector<8x8x32xbf16>
    %c1_69 = arith.constant 1 : index
    %c1_70 = arith.constant 1 : index
    %c0_71 = arith.constant 0 : index
    %c0_72 = arith.constant 0 : index
    %c0_73 = arith.constant 0 : index
    %151 = vector.load %arg1[%c1_69, %c1_70, %c0_71, %c0_72, %c0_73] : memref<2x3x8x8x32xbf16, #tpu.memory_space<vmem>>, vector<1x1x8x8x32xbf16>
    %152 = vector.shape_cast %151 : vector<1x1x8x8x32xbf16> to vector<8x8x32xbf16>
    %c1_74 = arith.constant 1 : index
    %c2_75 = arith.constant 2 : index
    %c0_76 = arith.constant 0 : index
    %c0_77 = arith.constant 0 : index
    %c0_78 = arith.constant 0 : index
    %153 = vector.load %arg1[%c1_74, %c2_75, %c0_76, %c0_77, %c0_78] : memref<2x3x8x8x32xbf16, #tpu.memory_space<vmem>>, vector<1x1x8x8x32xbf16>
    %154 = vector.shape_cast %153 : vector<1x1x8x8x32xbf16> to vector<8x8x32xbf16>
    %c1_79 = arith.constant 1 : index
    %c0_80 = arith.constant 0 : index
    %c0_81 = arith.constant 0 : index
    %c0_82 = arith.constant 0 : index
    %c0_83 = arith.constant 0 : index
    %155 = vector.load %arg2[%c1_79, %c0_80, %c0_81, %c0_82, %c0_83] : memref<2x3x8x8x8xf32, #tpu.memory_space<vmem>>, vector<1x1x8x8x8xf32>
    %156 = vector.shape_cast %155 : vector<1x1x8x8x8xf32> to vector<8x8x8xf32>
    %c1_84 = arith.constant 1 : index
    %c1_85 = arith.constant 1 : index
    %c0_86 = arith.constant 0 : index
    %c0_87 = arith.constant 0 : index
    %c0_88 = arith.constant 0 : index
    %157 = vector.load %arg2[%c1_84, %c1_85, %c0_86, %c0_87, %c0_88] : memref<2x3x8x8x8xf32, #tpu.memory_space<vmem>>, vector<1x1x8x8x8xf32>
    %158 = vector.shape_cast %157 : vector<1x1x8x8x8xf32> to vector<8x8x8xf32>
    %c1_89 = arith.constant 1 : index
    %c2_90 = arith.constant 2 : index
    %c0_91 = arith.constant 0 : index
    %c0_92 = arith.constant 0 : index
    %c0_93 = arith.constant 0 : index
    %159 = vector.load %arg2[%c1_89, %c2_90, %c0_91, %c0_92, %c0_93] : memref<2x3x8x8x8xf32, #tpu.memory_space<vmem>>, vector<1x1x8x8x8xf32>
    %160 = vector.shape_cast %159 : vector<1x1x8x8x8xf32> to vector<8x8x8xf32>
    "tpu.trace_start"() <{level = 10 : i32, message = "ble,bde->bld"}> : () -> ()
    %cst_94 = arith.constant dense<0.000000e+00> : vector<8x8x8xf32>
    %161 = tpu.matmul %148, %150, %cst_94 {dimension_numbers = #tpu.dot_dimension_numbers<[2], [2], [1], [1], [0, 0, 0, 1, 1, 1], [0], [0]>} : vector<8x8x32xbf16>, vector<8x8x32xbf16>, vector<8x8x8xf32> -> vector<8x8x8xf32>
    "tpu.trace_stop"() : () -> ()
    %162 = arith.addf %161, %156 : vector<8x8x8xf32>
    "tpu.trace_start"() <{level = 10 : i32, message = "ble,bde->bld"}> : () -> ()
    %cst_95 = arith.constant dense<0.000000e+00> : vector<8x8x8xf32>
    %163 = tpu.matmul %148, %152, %cst_95 {dimension_numbers = #tpu.dot_dimension_numbers<[2], [2], [1], [1], [0, 0, 0, 1, 1, 1], [0], [0]>} : vector<8x8x32xbf16>, vector<8x8x32xbf16>, vector<8x8x8xf32> -> vector<8x8x8xf32>
    "tpu.trace_stop"() : () -> ()
    %164 = arith.addf %163, %158 : vector<8x8x8xf32>
    "tpu.trace_start"() <{level = 10 : i32, message = "ble,bde->bld"}> : () -> ()
    %cst_96 = arith.constant dense<0.000000e+00> : vector<8x8x8xf32>
    %165 = tpu.matmul %148, %154, %cst_96 {dimension_numbers = #tpu.dot_dimension_numbers<[2], [2], [1], [1], [0, 0, 0, 1, 1, 1], [0], [0]>} : vector<8x8x32xbf16>, vector<8x8x32xbf16>, vector<8x8x8xf32> -> vector<8x8x8xf32>
    "tpu.trace_stop"() : () -> ()
    %166 = arith.addf %165, %160 : vector<8x8x8xf32>
    %167 = arith.truncf %162 : vector<8x8x8xf32> to vector<8x8x8xbf16>
    %168 = arith.truncf %164 : vector<8x8x8xf32> to vector<8x8x8xbf16>
    "tpu.trace_start"() <{level = 10 : i32, message = "bld,bmd->blm"}> : () -> ()
    %cst_97 = arith.constant dense<0.000000e+00> : vector<8x8x8xf32>
    %169 = tpu.matmul %167, %168, %cst_97 {dimension_numbers = #tpu.dot_dimension_numbers<[2], [2], [1], [1], [0, 0, 0, 1, 1, 1], [0], [0]>} : vector<8x8x8xbf16>, vector<8x8x8xbf16>, vector<8x8x8xf32> -> vector<8x8x8xf32>
    "tpu.trace_stop"() : () -> ()
    %cst_98 = arith.constant dense<0xFF800000> : vector<8x8xf32>
    %170 = vector.multi_reduction <maximumf>, %169, %cst_98 [2] : vector<8x8x8xf32> to vector<8x8xf32>
    %171 = vector.shape_cast %170 : vector<8x8xf32> to vector<8x8x1xf32>
    %172 = vector.broadcast %171 : vector<8x8x1xf32> to vector<8x8x8xf32>
    %173 = arith.subf %169, %172 : vector<8x8x8xf32>
    %174 = math.exp %173 : vector<8x8x8xf32>
    %cst_99 = arith.constant dense<0.000000e+00> : vector<8x8xf32>
    %175 = vector.multi_reduction <add>, %174, %cst_99 [2] : vector<8x8x8xf32> to vector<8x8xf32>
    %176 = vector.shape_cast %175 : vector<8x8xf32> to vector<8x8x1xf32>
    %177 = tpu.reciprocal %176 {approx = true} : vector<8x8x1xf32> -> vector<8x8x1xf32>
    %178 = vector.broadcast %177 : vector<8x8x1xf32> to vector<8x8x8xf32>
    %179 = arith.mulf %174, %178 : vector<8x8x8xf32>
    %180 = arith.truncf %179 : vector<8x8x8xf32> to vector<8x8x8xbf16>
    %181 = arith.truncf %166 : vector<8x8x8xf32> to vector<8x8x8xbf16>
    "tpu.trace_start"() <{level = 10 : i32, message = "blm,bmd->bld"}> : () -> ()
    %cst_100 = arith.constant dense<0.000000e+00> : vector<8x8x8xf32>
    %182 = tpu.matmul %180, %181, %cst_100 {dimension_numbers = #tpu.dot_dimension_numbers<[2], [1], [1], [2], [0, 0, 0, 1, 1, 2], [0], [0]>} : vector<8x8x8xbf16>, vector<8x8x8xbf16>, vector<8x8x8xf32> -> vector<8x8x8xf32>
    "tpu.trace_stop"() : () -> ()
    %183 = arith.truncf %182 : vector<8x8x8xf32> to vector<8x8x8xbf16>
    %c1_101 = arith.constant 1 : index
    %c0_102 = arith.constant 0 : index
    %c0_103 = arith.constant 0 : index
    %c0_104 = arith.constant 0 : index
    %184 = vector.load %arg3[%c1_101, %c0_102, %c0_103, %c0_104] : memref<2x8x8x32xbf16, #tpu.memory_space<vmem>>, vector<1x8x8x32xbf16>
    %185 = vector.shape_cast %184 : vector<1x8x8x32xbf16> to vector<8x8x32xbf16>
    "tpu.trace_start"() <{level = 10 : i32, message = "bld,bde->ble"}> : () -> ()
    %cst_105 = arith.constant dense<0.000000e+00> : vector<8x8x32xf32>
    %186 = tpu.matmul %183, %185, %cst_105 {dimension_numbers = #tpu.dot_dimension_numbers<[2], [1], [1], [2], [0, 0, 0, 1, 1, 2], [0], [0]>} : vector<8x8x8xbf16>, vector<8x8x32xbf16>, vector<8x8x32xf32> -> vector<8x8x32xf32>
    "tpu.trace_stop"() : () -> ()
    %187 = vector.shape_cast %186 : vector<8x8x32xf32> to vector<2x4x8x32xf32>
    %188 = vector.extract_strided_slice %187 {offsets = [0, 0, 0, 0], sizes = [2, 1, 8, 32], strides = [1, 1, 1, 1]} : vector<2x4x8x32xf32> to vector<2x1x8x32xf32>
    %189 = vector.shape_cast %188 : vector<2x1x8x32xf32> to vector<2x8x32xf32>
    %190 = vector.extract_strided_slice %187 {offsets = [0, 1, 0, 0], sizes = [2, 1, 8, 32], strides = [1, 1, 1, 1]} : vector<2x4x8x32xf32> to vector<2x1x8x32xf32>
    %191 = vector.shape_cast %190 : vector<2x1x8x32xf32> to vector<2x8x32xf32>
    %192 = arith.addf %189, %191 : vector<2x8x32xf32>
    %193 = vector.extract_strided_slice %187 {offsets = [0, 2, 0, 0], sizes = [2, 1, 8, 32], strides = [1, 1, 1, 1]} : vector<2x4x8x32xf32> to vector<2x1x8x32xf32>
    %194 = vector.shape_cast %193 : vector<2x1x8x32xf32> to vector<2x8x32xf32>
    %195 = arith.addf %192, %194 : vector<2x8x32xf32>
    %196 = vector.extract_strided_slice %187 {offsets = [0, 3, 0, 0], sizes = [2, 1, 8, 32], strides = [1, 1, 1, 1]} : vector<2x4x8x32xf32> to vector<2x1x8x32xf32>
    %197 = vector.shape_cast %196 : vector<2x1x8x32xf32> to vector<2x8x32xf32>
    %198 = arith.addf %195, %197 : vector<2x8x32xf32>
    %199 = vector.shape_cast %198 : vector<2x8x32xf32> to vector<16x32xf32>
    %c1_106 = arith.constant 1 : index
    %c0_107 = arith.constant 0 : index
    %c0_108 = arith.constant 0 : index
    %200 = vector.load %arg7[%c1_106, %c0_107, %c0_108] : memref<2x6x32xf32, #tpu.memory_space<vmem>>, vector<1x6x32xf32>
    %201 = vector.shape_cast %200 : vector<1x6x32xf32> to vector<6x32xf32>
    %202 = vector.extract_strided_slice %201 {offsets = [0, 0], sizes = [1, 32], strides = [1, 1]} : vector<6x32xf32> to vector<1x32xf32>
    %203 = vector.shape_cast %202 : vector<1x32xf32> to vector<32xf32>
    %204 = vector.shape_cast %203 : vector<32xf32> to vector<1x32xf32>
    %205 = vector.broadcast %204 : vector<1x32xf32> to vector<16x32xf32>
    %206 = arith.addf %199, %205 : vector<16x32xf32>
    %207 = arith.addf %142, %206 : vector<16x32xf32>
    %208 = vector.extract_strided_slice %201 {offsets = [1, 0], sizes = [1, 32], strides = [1, 1]} : vector<6x32xf32> to vector<1x32xf32>
    %209 = vector.shape_cast %208 : vector<1x32xf32> to vector<32xf32>
    %210 = vector.extract_strided_slice %201 {offsets = [2, 0], sizes = [1, 32], strides = [1, 1]} : vector<6x32xf32> to vector<1x32xf32>
    %211 = vector.shape_cast %210 : vector<1x32xf32> to vector<32xf32>
    %cst_109 = arith.constant dense<0.000000e+00> : vector<16xf32>
    %212 = vector.multi_reduction <add>, %207, %cst_109 [1] : vector<16x32xf32> to vector<16xf32>
    %213 = vector.shape_cast %212 : vector<16xf32> to vector<16x1xf32>
    %cst_110 = arith.constant 3.200000e+01 : f32
    %214 = vector.broadcast %cst_110 : f32 to vector<16x1xf32>
    %215 = arith.divf %213, %214 : vector<16x1xf32>
    %216 = vector.broadcast %215 : vector<16x1xf32> to vector<16x32xf32>
    %217 = arith.subf %207, %216 : vector<16x32xf32>
    %218 = arith.mulf %217, %217 : vector<16x32xf32>
    %cst_111 = arith.constant dense<0.000000e+00> : vector<16xf32>
    %219 = vector.multi_reduction <add>, %218, %cst_111 [1] : vector<16x32xf32> to vector<16xf32>
    %220 = vector.shape_cast %219 : vector<16xf32> to vector<16x1xf32>
    %cst_112 = arith.constant 3.200000e+01 : f32
    %221 = vector.broadcast %cst_112 : f32 to vector<16x1xf32>
    %222 = arith.divf %220, %221 : vector<16x1xf32>
    %223 = vector.broadcast %215 : vector<16x1xf32> to vector<16x32xf32>
    %224 = arith.subf %207, %223 : vector<16x32xf32>
    %cst_113 = arith.constant 9.99999974E-6 : f32
    %225 = vector.broadcast %cst_113 : f32 to vector<16x1xf32>
    %226 = arith.addf %222, %225 : vector<16x1xf32>
    %227 = math.rsqrt %226 : vector<16x1xf32>
    %228 = vector.broadcast %227 : vector<16x1xf32> to vector<16x32xf32>
    %229 = arith.mulf %224, %228 : vector<16x32xf32>
    %230 = vector.shape_cast %209 : vector<32xf32> to vector<1x32xf32>
    %231 = vector.broadcast %230 : vector<1x32xf32> to vector<16x32xf32>
    %232 = arith.mulf %229, %231 : vector<16x32xf32>
    %233 = vector.shape_cast %211 : vector<32xf32> to vector<1x32xf32>
    %234 = vector.broadcast %233 : vector<1x32xf32> to vector<16x32xf32>
    %235 = arith.addf %232, %234 : vector<16x32xf32>
    %236 = arith.truncf %235 : vector<16x32xf32> to vector<16x32xbf16>
    %c1_114 = arith.constant 1 : index
    %c0_115 = arith.constant 0 : index
    %c0_116 = arith.constant 0 : index
    %237 = vector.load %arg4[%c1_114, %c0_115, %c0_116] : memref<2x32x64xbf16, #tpu.memory_space<vmem>>, vector<1x32x64xbf16>
    %238 = vector.shape_cast %237 : vector<1x32x64xbf16> to vector<32x64xbf16>
    %cst_117 = arith.constant dense<0.000000e+00> : vector<16x64xf32>
    %239 = tpu.matmul %236, %238, %cst_117 {dimension_numbers = #tpu.dot_dimension_numbers<[1], [0], [0], [1], [0, 0, 1, 1], [], []>} : vector<16x32xbf16>, vector<32x64xbf16>, vector<16x64xf32> -> vector<16x64xf32>
    %c1_118 = arith.constant 1 : index
    %c0_119 = arith.constant 0 : index
    %240 = vector.load %arg5[%c1_118, %c0_119] : memref<2x64xf32, #tpu.memory_space<vmem>>, vector<1x64xf32>
    %241 = vector.shape_cast %240 : vector<1x64xf32> to vector<64xf32>
    %242 = vector.shape_cast %241 : vector<64xf32> to vector<1x64xf32>
    %243 = vector.broadcast %242 : vector<1x64xf32> to vector<16x64xf32>
    %244 = arith.addf %239, %243 : vector<16x64xf32>
    %cst_120 = arith.constant 0.000000e+00 : f32
    %245 = vector.broadcast %cst_120 : f32 to vector<16x64xf32>
    %246 = arith.maximumf %244, %245 : vector<16x64xf32>
    %247 = arith.truncf %246 : vector<16x64xf32> to vector<16x64xbf16>
    %c1_121 = arith.constant 1 : index
    %c0_122 = arith.constant 0 : index
    %c0_123 = arith.constant 0 : index
    %248 = vector.load %arg6[%c1_121, %c0_122, %c0_123] : memref<2x64x32xbf16, #tpu.memory_space<vmem>>, vector<1x64x32xbf16>
    %249 = vector.shape_cast %248 : vector<1x64x32xbf16> to vector<64x32xbf16>
    %cst_124 = arith.constant dense<0.000000e+00> : vector<16x32xf32>
    %250 = tpu.matmul %247, %249, %cst_124 {dimension_numbers = #tpu.dot_dimension_numbers<[1], [0], [0], [1], [0, 0, 1, 1], [], []>} : vector<16x64xbf16>, vector<64x32xbf16>, vector<16x32xf32> -> vector<16x32xf32>
    %251 = vector.extract_strided_slice %201 {offsets = [3, 0], sizes = [1, 32], strides = [1, 1]} : vector<6x32xf32> to vector<1x32xf32>
    %252 = vector.shape_cast %251 : vector<1x32xf32> to vector<32xf32>
    %253 = vector.shape_cast %252 : vector<32xf32> to vector<1x32xf32>
    %254 = vector.broadcast %253 : vector<1x32xf32> to vector<16x32xf32>
    %255 = arith.addf %250, %254 : vector<16x32xf32>
    %256 = arith.addf %235, %255 : vector<16x32xf32>
    %257 = vector.extract_strided_slice %201 {offsets = [4, 0], sizes = [1, 32], strides = [1, 1]} : vector<6x32xf32> to vector<1x32xf32>
    %258 = vector.shape_cast %257 : vector<1x32xf32> to vector<32xf32>
    %259 = vector.extract_strided_slice %201 {offsets = [5, 0], sizes = [1, 32], strides = [1, 1]} : vector<6x32xf32> to vector<1x32xf32>
    %260 = vector.shape_cast %259 : vector<1x32xf32> to vector<32xf32>
    %cst_125 = arith.constant dense<0.000000e+00> : vector<16xf32>
    %261 = vector.multi_reduction <add>, %256, %cst_125 [1] : vector<16x32xf32> to vector<16xf32>
    %262 = vector.shape_cast %261 : vector<16xf32> to vector<16x1xf32>
    %cst_126 = arith.constant 3.200000e+01 : f32
    %263 = vector.broadcast %cst_126 : f32 to vector<16x1xf32>
    %264 = arith.divf %262, %263 : vector<16x1xf32>
    %265 = vector.broadcast %264 : vector<16x1xf32> to vector<16x32xf32>
    %266 = arith.subf %256, %265 : vector<16x32xf32>
    %267 = arith.mulf %266, %266 : vector<16x32xf32>
    %cst_127 = arith.constant dense<0.000000e+00> : vector<16xf32>
    %268 = vector.multi_reduction <add>, %267, %cst_127 [1] : vector<16x32xf32> to vector<16xf32>
    %269 = vector.shape_cast %268 : vector<16xf32> to vector<16x1xf32>
    %cst_128 = arith.constant 3.200000e+01 : f32
    %270 = vector.broadcast %cst_128 : f32 to vector<16x1xf32>
    %271 = arith.divf %269, %270 : vector<16x1xf32>
    %272 = vector.broadcast %264 : vector<16x1xf32> to vector<16x32xf32>
    %273 = arith.subf %256, %272 : vector<16x32xf32>
    %cst_129 = arith.constant 9.99999974E-6 : f32
    %274 = vector.broadcast %cst_129 : f32 to vector<16x1xf32>
    %275 = arith.addf %271, %274 : vector<16x1xf32>
    %276 = math.rsqrt %275 : vector<16x1xf32>
    %277 = vector.broadcast %276 : vector<16x1xf32> to vector<16x32xf32>
    %278 = arith.mulf %273, %277 : vector<16x32xf32>
    %279 = vector.shape_cast %258 : vector<32xf32> to vector<1x32xf32>
    %280 = vector.broadcast %279 : vector<1x32xf32> to vector<16x32xf32>
    %281 = arith.mulf %278, %280 : vector<16x32xf32>
    %282 = vector.shape_cast %260 : vector<32xf32> to vector<1x32xf32>
    %283 = vector.broadcast %282 : vector<1x32xf32> to vector<16x32xf32>
    %284 = arith.addf %281, %283 : vector<16x32xf32>
    %c0_130 = arith.constant 0 : index
    %c0_131 = arith.constant 0 : index
    %285 = vector.load %arg8[%c0_130, %c0_131] : memref<2x32xf32, #tpu.memory_space<vmem>>, vector<2x32xf32>
    %286 = vector.extract_strided_slice %285 {offsets = [0, 0], sizes = [1, 32], strides = [1, 1]} : vector<2x32xf32> to vector<1x32xf32>
    %287 = vector.shape_cast %286 : vector<1x32xf32> to vector<32xf32>
    %288 = vector.extract_strided_slice %285 {offsets = [1, 0], sizes = [1, 32], strides = [1, 1]} : vector<2x32xf32> to vector<1x32xf32>
    %289 = vector.shape_cast %288 : vector<1x32xf32> to vector<32xf32>
    %cst_132 = arith.constant dense<0.000000e+00> : vector<16xf32>
    %290 = vector.multi_reduction <add>, %284, %cst_132 [1] : vector<16x32xf32> to vector<16xf32>
    %291 = vector.shape_cast %290 : vector<16xf32> to vector<16x1xf32>
    %cst_133 = arith.constant 3.200000e+01 : f32
    %292 = vector.broadcast %cst_133 : f32 to vector<16x1xf32>
    %293 = arith.divf %291, %292 : vector<16x1xf32>
    %294 = vector.broadcast %293 : vector<16x1xf32> to vector<16x32xf32>
    %295 = arith.subf %284, %294 : vector<16x32xf32>
    %296 = arith.mulf %295, %295 : vector<16x32xf32>
    %cst_134 = arith.constant dense<0.000000e+00> : vector<16xf32>
    %297 = vector.multi_reduction <add>, %296, %cst_134 [1] : vector<16x32xf32> to vector<16xf32>
    %298 = vector.shape_cast %297 : vector<16xf32> to vector<16x1xf32>
    %cst_135 = arith.constant 3.200000e+01 : f32
    %299 = vector.broadcast %cst_135 : f32 to vector<16x1xf32>
    %300 = arith.divf %298, %299 : vector<16x1xf32>
    %301 = vector.broadcast %293 : vector<16x1xf32> to vector<16x32xf32>
    %302 = arith.subf %284, %301 : vector<16x32xf32>
    %cst_136 = arith.constant 9.99999974E-6 : f32
    %303 = vector.broadcast %cst_136 : f32 to vector<16x1xf32>
    %304 = arith.addf %300, %303 : vector<16x1xf32>
    %305 = math.rsqrt %304 : vector<16x1xf32>
    %306 = vector.broadcast %305 : vector<16x1xf32> to vector<16x32xf32>
    %307 = arith.mulf %302, %306 : vector<16x32xf32>
    %308 = vector.shape_cast %287 : vector<32xf32> to vector<1x32xf32>
    %309 = vector.broadcast %308 : vector<1x32xf32> to vector<16x32xf32>
    %310 = arith.mulf %307, %309 : vector<16x32xf32>
    %311 = vector.shape_cast %289 : vector<32xf32> to vector<1x32xf32>
    %312 = vector.broadcast %311 : vector<1x32xf32> to vector<16x32xf32>
    %313 = arith.addf %310, %312 : vector<16x32xf32>
    %c0_137 = arith.constant 0 : index
    %c0_138 = arith.constant 0 : index
    %314 = vector.load %arg9[%c0_137, %c0_138] : memref<16x32xf32, #tpu.memory_space<vmem>>, vector<16x32xf32>
    tpu.vector_store %arg9[%c0_137, %c0_138], %313 {strides = array<i32>} : memref<16x32xf32, #tpu.memory_space<vmem>>, vector<16x32xf32>,
    return
  }
}

</mosaic_0001>

<bundles_post_ra>
// kernel: transformer_encoder.1
= control target key start
LH: loop header
LB: loop body
LE: loop exit
PB: predicated region body
PF: predicated region fallthrough
CT: control target
= control target key end

     0   :  { %14 = vsyncpa [#allocation3], 0  ;;  %s7426_s0 = inlined_call_operand.vmem [shape: f32[16,32], index: 0, kind: input, shape index: {}]   ;;  %s7427_s1 = inlined_call_operand.hbm [shape: bf16[2,3,8,8,32], index: 1, kind: input, shape index: {}]   ;;  %s7428_s2 = inlined_call_operand.hbm [shape: f32[2,3,8,8,8], index: 2, kind: input, shape index: {}]   ;;  %s7429_s3 = inlined_call_operand.vmem [shape: bf16[2,8,8,32], index: 3, kind: input, shape index: {}]   ;;  %s7430_s4 = inlined_call_operand.vmem [shape: bf16[2,32,64], index: 4, kind: input, shape index: {}]   ;;  %s7431_s5 = inlined_call_operand.vmem [shape: f32[2,64], index: 5, kind: input, shape index: {}]   ;;  %s7432_s6 = inlined_call_operand.vmem [shape: bf16[2,64,32], index: 6, kind: input, shape index: {}]   ;;  %s7433_s7 = inlined_call_operand.vmem [shape: f32[2,6,32], index: 7, kind: input, shape index: {}]   ;;  %s7434_s8 = inlined_call_operand.vmem [shape: f32[2,32], index: 8, kind: input, shape index: {}]   ;;  %s7435_s9 = inlined_call_operand.hbm [shape: f32[16,32], index: 9, kind: output, shape index: {}]  }
   0x1   :  { %15 = vsyncpa [#allocation6], 0 }
   0x2   :  { %16 = vsyncpa [#allocation4], 0  ;;  %s6420_s30 = smov [#allocation2]   ;;  %s6348_s13 = scalar_lea.hbm %s7427_s1, 3072 }
   0x3   :  { %s24_s10 = sshll.u32 %s6420_s30, 4  ;;  %p6349_p0 = scmp.ne.s32.totalorder %s7427_s1, %s6348_s13  ;;  %s25_s10 = int_to_ptr.vmem [resolvable:$true] %s24_s10 }
   0x4   :  { %p6352_p1 = scmp.lt.u32.totalorder %s6348_s13, %s7427_s1 }
   0x6   :  { %p6354_p2 = pnand %p6352_p1, %p6349_p0 }
   0x8   :  { %6357 = shalt.err (!%p6354_p2)
}
   0x9   :  { %s6358_s18 = scalar_lea.vmem %s25_s10, 3072  ;;  %p6363_p4 = scmp.lt.s32.totalorder %s25_s10, %s25_s10 }
   0xa   :  { %p6359_p3 = scmp.ne.s32.totalorder %s25_s10, %s6358_s18  ;;  %p6364_p5 = scmp.lt.s32.totalorder %s6358_s18, %s6358_s18 }
   0xc   :  { %p6365_p6 = por %p6364_p5, %p6363_p4 }
   0xe   :  { %p6366_p7 = pnand %p6365_p6, %p6359_p3 }
  0x10   :  { %6369 = shalt.err (!%p6366_p7)
}
  0x11   :  { %s6421_s19 = smov 64   ;;  %s6422_s20 = smov 4  }
  0x12   :  { %30 = dma.hbm_to_vmem [thread:$0]  %s7427_s1, 3072, %s25_s10, [#allocation3], %s6421_s19, %s6421_s19, %s6422_s20  }
  0x13   :  { %s6423_s23 = smov [#allocation5]   ;;  %s6370_s27 = scalar_lea.hbm %s7428_s2, 6144 }
  0x14   :  { %s36_s24 = sshll.u32 %s6423_s23, 4  ;;  %p6371_p8 = scmp.ne.s32.totalorder %s7428_s2, %s6370_s27  ;;  %s37_s24 = int_to_ptr.vmem [resolvable:$true] %s36_s24 }
  0x15   :  { %p6374_p9 = scmp.lt.u32.totalorder %s6370_s27, %s7428_s2 }
  0x17   :  { %p6376_p10 = pnand %p6374_p9, %p6371_p8 }
  0x19   :  { %6379 = shalt.err (!%p6376_p10)
}
  0x1a   :  { %s6380_s12 = scalar_lea.vmem %s37_s24, 6144  ;;  %p6385_p12 = scmp.lt.s32.totalorder %s37_s24, %s37_s24 }
  0x1b   :  { %p6381_p11 = scmp.ne.s32.totalorder %s37_s24, %s6380_s12  ;;  %p6386_p13 = scmp.lt.s32.totalorder %s6380_s12, %s6380_s12 }
  0x1d   :  { %p6387_p0 = por %p6386_p13, %p6385_p12 }
  0x1f   :  { %p6388_p1 = pnand %p6387_p0, %p6381_p11 }
  0x21   :  { %6391 = shalt.err (!%p6388_p1)
}
  0x22   :  { %s6424_s1 = smov 128   ;;  %s6425_s10 = smov 8  }
  0x23   :  { %42 = dma.hbm_to_vmem [thread:$0]  %s7428_s2, 6144, %s37_s24, [#allocation6], %s6424_s1, %s6424_s1, %s6425_s10  }
  0x24   :  { %6414 = dma.done.wait [#allocation3], 3072  }
  0x25   :  { %6415 = vsyncadd [#allocation3], 4294964224 }
  0x26   :  { %6416 = dma.done.wait [#allocation6], 6144  }
  0x27   :  { %6417 = vsyncadd [#allocation6], 4294961152  ;;  %v6426_v0 = vmov 0.0   ;;  %vm6427_vm0 = vmmov 0   ;;  %vm118_vm1 = vcmask 261120   ;;  %v62_v5 = vld [vmem:[%s7426_s0] sm:$0xff] }
  0x28   :  { %5625 = vmatprep.subr.bf16.mxu1 %v6426_v0  ;;  %5637 = vmatprep.subr.bf16.mxu0 %v6426_v0  ;;  %v66_v1 = vld [vmem:[#allocation2] sm:$0xf]  ;;  %v68_v2 = vld [vmem:[#allocation2 + $0x8] sm:$0xf]  ;;  %v67_v6 = vld [vmem:[#allocation2 + $0x4] sm:$0xf]  ;;  %v6519_v8 = vpack.c.bf16 %v62_v5, %v62_v5 }
  0x29   :  { %5627 = vmatprep.mubr.msk.bf16.mxu1 %vm6427_vm0, %v6426_v0  ;;  %5639 = vmatprep.mubr.msk.bf16.mxu0 %vm6427_vm0, %v6426_v0  ;;  %v123_v3 = vsel %vm118_vm1, %v66_v1, 0  ;;  %v209_v4 = vsel %vm118_vm1, %v68_v2, 0  ;;  %v70_v7 = vld [vmem:[#allocation2 + $0x10] sm:$0xf]  ;;  %v69_v9 = vld [vmem:[#allocation2 + $0xc] sm:$0xf] }
  0x2a   :  { %5626 = vmatpush3.bf16.xpose.msra.mxu1 %v123_v3  ;;  %5638 = vmatpush3.bf16.xpose.msra.mxu0 %v209_v4  ;;  %v72_v10 = vld [vmem:[#allocation2 + $0x18] sm:$0xf]  ;;  %v166_v11 = vsel %vm118_vm1, %v67_v6, 0  ;;  %v298_v12 = vsel %vm118_vm1, %v70_v7, 0  ;;  %v63_v13 = vld [vmem:[%s7426_s0 + $0x8] sm:$0xff]  ;;  %v252_v14 = vsel %vm118_vm1, %v69_v9, 0 }
  0x2b   :  { %5631 = vmatprep.subr.bf16.mxu1 %v6426_v0  ;;  %5649 = vmatprep.subr.bf16.mxu0 %v6426_v0  ;;  %v384_v15 = vsel %vm118_vm1, %v72_v10, 0  ;;  %v6538_v16 = vpack.c.bf16 %v63_v13, %v63_v13  ;;  %v71_v17 = vld [vmem:[#allocation2 + $0x14] sm:$0xf]  ;;  %v75_v18 = vld [vmem:[#allocation2 + $0x20] sm:$0xf]  ;;  %vm1173_vm2 = vcmask 64512  }
  0x2c   :  { %v341_v19 = vsel %vm118_vm1, %v71_v17, 0  ;;  %v470_v20 = vsel %vm118_vm1, %v75_v18, 0  ;;  %v73_v21 = vld [vmem:[#allocation2 + $0x1c] sm:$0xf]  ;;  %v77_v22 = vld [vmem:[#allocation2 + $0x28] sm:$0xf] }
  0x2d   :  { %v427_v23 = vsel %vm118_vm1, %v73_v21, 0  ;;  %v556_v24 = vsel %vm118_vm1, %v77_v22, 0  ;;  %v76_v25 = vld [vmem:[#allocation2 + $0x24] sm:$0xf]  ;;  %v79_v26 = vld [vmem:[#allocation2 + $0x30] sm:$0xf] }
  0x2e   :  { %v513_v27 = vsel %vm118_vm1, %v76_v25, 0  ;;  %v642_v28 = vsel %vm118_vm1, %v79_v26, 0  ;;  %v78_v29 = vld [vmem:[#allocation2 + $0x2c] sm:$0xf]  ;;  %v81_v30 = vld [vmem:[#allocation2 + $0x38] sm:$0xf] }
  0x2f   :  { %v599_v31 = vsel %vm118_vm1, %v78_v29, 0  ;;  %v728_v32 = vsel %vm118_vm1, %v81_v30, 0  ;;  %v80_v33 = vld [vmem:[#allocation2 + $0x34] sm:$0xf]  ;;  %v84_v34 = vld [vmem:[#allocation2 + $0x40] sm:$0xf] }
  0x30   :  { %v685_v35 = vsel %vm118_vm1, %v80_v33, 0  ;;  %v814_v36 = vsel %vm118_vm1, %v84_v34, 0  ;;  %v82_v37 = vld [vmem:[#allocation2 + $0x3c] sm:$0xf]  ;;  %v86_v39 = vld [vmem:[#allocation2 + $0x48] sm:$0xf] }
  0x31   :  { %5628 = vmatmul.mubr.msk.bf16.vlgmr.msra.gmra.mrb[0].mxu1 %vm118_vm1, %v6519_v8  ;;  %5640 = vmatmul.mubr.msk.bf16.vlgmr.msra.gmra.mrb[0].mxu0 %vm118_vm1, %v6519_v8  ;;  %v771_v38 = vsel %vm118_vm1, %v82_v37, 0  ;;  %v900_v40 = vsel %vm118_vm1, %v86_v39, 0  ;;  %v85_v41 = vld [vmem:[#allocation2 + $0x44] sm:$0xf]  ;;  %v88_v43 = vld [vmem:[#allocation2 + $0x50] sm:$0xf] }
  0x32   :  { %5632 = vmatpush3.bf16.xpose.msra.mxu1 %v166_v11  ;;  %5650 = vmatpush3.bf16.xpose.msra.mxu0 %v298_v12  ;;  %v857_v42 = vsel %vm118_vm1, %v85_v41, 0  ;;  %v986_v44 = vsel %vm118_vm1, %v88_v43, 0  ;;  %v87_v45 = vld [vmem:[#allocation2 + $0x4c] sm:$0xf]  ;;  %v90_v47 = vld [vmem:[#allocation2 + $0x58] sm:$0xf] }
  0x33   :  { %5633 = vmatprep.mubr.msk.bf16.mxu1 %vm6427_vm0, %v6426_v0  ;;  %5651 = vmatprep.mubr.msk.bf16.mxu0 %vm6427_vm0, %v6426_v0  ;;  %v943_v46 = vsel %vm118_vm1, %v87_v45, 0  ;;  %v1072_v48 = vsel %vm118_vm1, %v90_v47, 0  ;;  %v89_v49 = vld [vmem:[#allocation2 + $0x54] sm:$0xf]  ;;  %v91_v51 = vld [vmem:[#allocation2 + $0x5c] sm:$0xf] }
  0x34   :  { %5643 = vmatprep.subr.bf16.mxu1 %v6426_v0  ;;  %5661 = vmatprep.subr.bf16.mxu0 %v6426_v0  ;;  %v1029_v50 = vsel %vm118_vm1, %v89_v49, 0  ;;  %v1115_v52 = vsel %vm118_vm1, %v91_v51, 0  ;;  %v92_v25 = vld [vmem:[#allocation5] sm:$0xff]  ;;  %vm1649_vm3 = vcmask 1043456   ;;  %vm2558_vm4 = vcmask 523264   ;;  %s6428_s18 = smov [#allocation7]  }
  0x35   :  { %v105_v43 = vld [vmem:[#allocation5 + $0x60] sm:$0xff]  ;;  %s5269_s19 = sshll.u32 %s6428_s18, 4  ;;  %s5270_s19 = int_to_ptr.vmem [resolvable:$true] %s5269_s19 }
  0x36   :  { %p6397_p3 = scmp.lt.s32.totalorder %s5270_s19, %s5270_s19 }
  0x39   :  { %5634 = vmatmul.mubr.msk.bf16.vlgmr.msra.gmra.mrb[4].mxu1 %vm118_vm1, %v6519_v8  ;;  %5652 = vmatmul.mubr.msk.bf16.vlgmr.msra.gmra.mrb[4].mxu0 %vm118_vm1, %v6538_v16 }
  0x3a   :  { %5644 = vmatpush3.bf16.xpose.msra.mxu1 %v252_v14  ;;  %5662 = vmatpush3.bf16.xpose.msra.mxu0 %v384_v15  ;;  %v101_v14 = vld [vmem:[#allocation5 + $0x40] sm:$0xff] }
  0x3b   :  { %5645 = vmatprep.mubr.msk.bf16.mxu1 %vm6427_vm0, %v6426_v0  ;;  %5663 = vmatprep.mubr.msk.bf16.mxu0 %vm6427_vm0, %v6426_v0 }
  0x3c   :  { %5655 = vmatprep.subr.bf16.mxu1 %v6426_v0  ;;  %5673 = vmatprep.subr.bf16.mxu0 %v6426_v0 }
  0x41   :  { %5646 = vmatmul.mubr.msk.bf16.vlgmr.msra.gmra.mrb[8].mxu1 %vm118_vm1, %v6519_v8  ;;  %5664 = vmatmul.mubr.msk.bf16.vlgmr.msra.gmra.mrb[8].mxu0 %vm118_vm1, %v6538_v16 }
  0x42   :  { %5656 = vmatpush3.bf16.xpose.msra.mxu1 %v341_v19  ;;  %5674 = vmatpush3.bf16.xpose.msra.mxu0 %v470_v20 }
  0x43   :  { %5657 = vmatprep.mubr.msk.bf16.mxu1 %vm6427_vm0, %v6426_v0  ;;  %5675 = vmatprep.mubr.msk.bf16.mxu0 %vm6427_vm0, %v6426_v0 }
  0x44   :  { %5667 = vmatprep.subr.bf16.mxu1 %v6426_v0  ;;  %5685 = vmatprep.subr.bf16.mxu0 %v6426_v0 }
  0x49   :  { %5658 = vmatmul.mubr.msk.bf16.vlgmr.msra.gmra.mrb[12].mxu1 %vm118_vm1, %v6538_v16  ;;  %5676 = vmatmul.mubr.msk.bf16.vlgmr.msra.gmra.mrb[12].mxu0 %vm118_vm1, %v6519_v8 }
  0x4a   :  { %5668 = vmatpush3.bf16.xpose.msra.mxu1 %v427_v23  ;;  %5686 = vmatpush3.bf16.xpose.msra.mxu0 %v556_v24 }
  0x4b   :  { %5669 = vmatprep.mubr.msk.bf16.mxu1 %vm6427_vm0, %v6426_v0  ;;  %5687 = vmatprep.mubr.msk.bf16.mxu0 %vm6427_vm0, %v6426_v0 }
  0x4c   :  { %5679 = vmatprep.subr.bf16.mxu1 %v6426_v0  ;;  %5697 = vmatprep.subr.bf16.mxu0 %v6426_v0 }
  0x51   :  { %5670 = vmatmul.mubr.msk.bf16.vlgmr.msra.gmra.mrb[16].mxu1 %vm118_vm1, %v6538_v16  ;;  %5688 = vmatmul.mubr.msk.bf16.vlgmr.msra.gmra.mrb[16].mxu0 %vm118_vm1, %v6519_v8 }
  0x52   :  { %5680 = vmatpush3.bf16.xpose.msra.mxu1 %v513_v27  ;;  %5698 = vmatpush3.bf16.xpose.msra.mxu0 %v642_v28  ;;  %v103_v27 = vld [vmem:[#allocation5 + $0x50] sm:$0xff] }
  0x53   :  { %5681 = vmatprep.mubr.msk.bf16.mxu1 %vm6427_vm0, %v6426_v0  ;;  %5699 = vmatprep.mubr.msk.bf16.mxu0 %vm6427_vm0, %v6426_v0 }
  0x54   :  { %5691 = vmatprep.subr.bf16.mxu1 %v6426_v0  ;;  %5709 = vmatprep.subr.bf16.mxu0 %v6426_v0 }
  0x59   :  { %5682 = vmatmul.mubr.msk.bf16.vlgmr.msra.gmra.mrb[20].mxu1 %vm118_vm1, %v6519_v8  ;;  %5700 = vmatmul.mubr.msk.bf16.vlgmr.msra.gmra.mrb[20].mxu0 %vm118_vm1, %v6538_v16 }
  0x5a   :  { %5692 = vmatpush3.bf16.xpose.msra.mxu1 %v599_v31  ;;  %5710 = vmatpush3.bf16.xpose.msra.mxu0 %v728_v32 }
  0x5b   :  { %5693 = vmatprep.mubr.msk.bf16.mxu1 %vm6427_vm0, %v6426_v0  ;;  %5711 = vmatprep.mubr.msk.bf16.mxu0 %vm6427_vm0, %v6426_v0 }
  0x5c   :  { %5703 = vmatprep.subr.bf16.mxu1 %v6426_v0  ;;  %5721 = vmatprep.subr.bf16.mxu0 %v6426_v0 }
  0x61   :  { %5694 = vmatmul.mubr.msk.bf16.vlgmr.msra.gmra.mrb[24].mxu1 %vm118_vm1, %v6519_v8  ;;  %5712 = vmatmul.mubr.msk.bf16.vlgmr.msra.gmra.mrb[24].mxu0 %vm118_vm1, %v6538_v16 }
  0x62   :  { %5704 = vmatpush3.bf16.xpose.msra.mxu1 %v685_v35  ;;  %5705 = vmatprep.mubr.msk.bf16.mxu1 %vm6427_vm0, %v6426_v0 }
  0x63   :  { %5715 = vmatprep.subr.bf16.mxu1 %v6426_v0  ;;  %5722 = vmatpush3.bf16.xpose.msra.mxu0 %v814_v36 }
  0x64   :  { %5723 = vmatprep.mubr.msk.bf16.mxu0 %vm6427_vm0, %v6426_v0  ;;  %5733 = vmatprep.subr.bf16.mxu0 %v6426_v0 }
  0x69   :  { %5706 = vmatmul.mubr.msk.bf16.vlgmr.msra.gmra.mrb[28].mxu1 %vm118_vm1, %v6538_v16 }
  0x6a   :  { %5716 = vmatpush3.bf16.xpose.msra.mxu1 %v771_v38  ;;  %5717 = vmatprep.mubr.msk.bf16.mxu1 %vm6427_vm0, %v6426_v0 }
  0x6b   :  { %5724 = vmatmul.mubr.msk.bf16.vlgmr.msra.gmra.mrb[28].mxu0 %vm118_vm1, %v6519_v8  ;;  %5727 = vmatprep.subr.bf16.mxu1 %v6426_v0 }
  0x6c   :  { %5735 = vmatprep.mubr.msk.bf16.mxu0 %vm6427_vm0, %v6426_v0  ;;  %5734 = vmatpush3.bf16.xpose.msra.mxu0 %v900_v40  ;;  %v94_v40 = vld [vmem:[#allocation5 + $0x10] sm:$0xff] }
  0x6d   :  { %5745 = vmatprep.subr.bf16.mxu0 %v6426_v0 }
  0x71   :  { %5718 = vmatmul.mubr.msk.bf16.vlgmr.msra.gmra.mrb[32].mxu1 %vm118_vm1, %v6538_v16 }
  0x72   :  { %5729 = vmatprep.mubr.msk.bf16.mxu1 %vm6427_vm0, %v6426_v0  ;;  %5728 = vmatpush3.bf16.xpose.msra.mxu1 %v857_v42  ;;  %v102_v42 = vld [vmem:[#allocation5 + $0x48] sm:$0xff] }
  0x73   :  { %5736 = vmatmul.mubr.msk.bf16.vlgmr.msra.gmra.mrb[32].mxu0 %vm118_vm1, %v6519_v8  ;;  %5739 = vmatprep.subr.bf16.mxu1 %v6426_v0 }
  0x74   :  { %5746 = vmatpush3.bf16.xpose.msra.mxu0 %v986_v44  ;;  %5747 = vmatprep.mubr.msk.bf16.mxu0 %vm6427_vm0, %v6426_v0 }
  0x75   :  { %5757 = vmatprep.subr.bf16.mxu0 %v6426_v0 }
  0x79   :  { %5730 = vmatmul.mubr.msk.bf16.vlgmr.msra.gmra.mrb[36].mxu1 %vm118_vm1, %v6519_v8 }
  0x7a   :  { %5740 = vmatpush3.bf16.xpose.msra.mxu1 %v943_v46  ;;  %5741 = vmatprep.mubr.msk.bf16.mxu1 %vm6427_vm0, %v6426_v0 }
  0x7b   :  { %5748 = vmatmul.mubr.msk.bf16.vlgmr.msra.gmra.mrb[36].mxu0 %vm118_vm1, %v6538_v16  ;;  %5751 = vmatprep.subr.bf16.mxu1 %v6426_v0 }
  0x7c   :  { %5758 = vmatpush3.bf16.xpose.msra.mxu0 %v1072_v48  ;;  %5759 = vmatprep.mubr.msk.bf16.mxu0 %vm6427_vm0, %v6426_v0 }
  0x7d   :  { %5769 = vmatprep.subr.bf16.mxu0 %v6426_v0 }
  0x81   :  { %5742 = vmatmul.mubr.msk.bf16.vlgmr.msra.gmra.mrb[40].mxu1 %vm118_vm1, %v6519_v8 }
  0x82   :  { %5752 = vmatpush3.bf16.xpose.msra.mxu1 %v1029_v50  ;;  %5753 = vmatprep.mubr.msk.bf16.mxu1 %vm6427_vm0, %v6426_v0 }
  0x83   :  { %5760 = vmatmul.mubr.msk.bf16.vlgmr.msra.gmra.mrb[40].mxu0 %vm118_vm1, %v6538_v16  ;;  %5763 = vmatprep.subr.bf16.mxu1 %v6426_v0 }
  0x84   :  { %5771 = vmatprep.mubr.msk.bf16.mxu0 %vm6427_vm0, %v6426_v0 }
  0x89   :  { %5754 = vmatmul.mubr.msk.bf16.vlgmr.msra.gmra.mrb[44].mxu1 %vm118_vm1, %v6538_v16 }
  0x8a   :  { %5764 = vmatpush3.bf16.xpose.msra.mxu1 %v1115_v52  ;;  %5765 = vmatprep.mubr.msk.bf16.mxu1 %vm6427_vm0, %v6426_v0 }
  0x8b   :  { %5775 = vmatprep.subr.bf16.mxu1 %v6426_v0 }
  0x91   :  { %5766 = vmatmul.mubr.msk.bf16.vlgmr.msra.gmra.mrb[48].mxu1 %vm118_vm1, %v6538_v16 }
  0x92   :  { %5777 = vmatprep.mubr.msk.bf16.mxu1 %vm6427_vm0, %v6426_v0 }
 0x104   :  { %v159_v53 = vpop.f32.mrb[0].mxu1  ;;  %v245_v54 = vpop.f32.mrb[0].mxu0 }
 0x105   :  { %v5629_v55 = vpop.f32.mrb[1].mxu1  ;;  %v5641_v56 = vpop.f32.mrb[1].mxu0  ;;  %v160_v28 = vadd.f32 %v159_v53, %v92_v25  ;;  %v246_v44 = vadd.f32 %v245_v54, %v94_v40 }
 0x106   :  { %v162_v57 = vpop.f32.mrb[2].mxu1  ;;  %v248_v58 = vpop.f32.mrb[2].mxu0 }
 0x107   :  { %v5630_v59 = vpop.f32.mrb[3].mxu1  ;;  %v5642_v60 = vpop.f32.mrb[3].mxu0  ;;  %v1157_v36 = vpack.c.bf16 %v160_v28, %v160_v28  ;;  %v1159_v53 = vpack.c.bf16 %v246_v44, %v246_v44  ;;  %v110_v28 = vld [vmem:[#allocation5 + $0x80] sm:$0xff] }
 0x108   :  { %v93_v59 = vld [vmem:[#allocation5 + $0x8] sm:$0xff]  ;;  %v96_v60 = vld [vmem:[#allocation5 + $0x20] sm:$0xff] }
 0x10c   :  { %v6666_v61 = vpop.f32.mrb[4].mxu1  ;;  %v6668_v62 = vpop.f32.mrb[4].mxu0 }
 0x10d   :  { %v5635_v63 = vpop.f32.mrb[5].mxu1  ;;  %v5653_v1 = vpop.f32.mrb[5].mxu0 }
 0x10e   :  { %v205_v2 = vpop.f32.mrb[6].mxu1  ;;  %v337_v3 = vpop.f32.mrb[6].mxu0  ;;  %v104_v1 = vld [vmem:[#allocation5 + $0x58] sm:$0xff] }
 0x10f   :  { %v5636_v4 = vpop.f32.mrb[7].mxu1  ;;  %v5654_v5 = vpop.f32.mrb[7].mxu0  ;;  %v107_v2 = vld [vmem:[#allocation5 + $0x70] sm:$0xff]  ;;  %v203_v3 = vadd.f32 %v6666_v61, %v93_v59 }
 0x110   :  { %v335_v4 = vadd.f32 %v6668_v62, %v96_v60 }
 0x114   :  { %v6670_v6 = vpop.f32.mrb[8].mxu1  ;;  %v6672_v7 = vpop.f32.mrb[8].mxu0 }
 0x115   :  { %v5647_v8 = vpop.f32.mrb[9].mxu1  ;;  %v5665_v9 = vpop.f32.mrb[9].mxu0 }
 0x116   :  { %v291_v10 = vpop.f32.mrb[10].mxu1  ;;  %v423_v11 = vpop.f32.mrb[10].mxu0 }
 0x117   :  { %v5648_v12 = vpop.f32.mrb[11].mxu1  ;;  %v5666_v13 = vpop.f32.mrb[11].mxu0 }
 0x11c   :  { %v6674_v15 = vpop.f32.mrb[12].mxu1  ;;  %v506_v16 = vpop.f32.mrb[12].mxu0 }
 0x11d   :  { %v507_v17 = vadd.f32 %v506_v16, %v101_v14  ;;  %v5659_v18 = vpop.f32.mrb[13].mxu1  ;;  %v5677_v19 = vpop.f32.mrb[13].mxu0  ;;  %v1158_v16 = vpack.c.bf16 %v203_v3, %v203_v3 }
 0x11e   :  { %v380_v20 = vpop.f32.mrb[14].mxu1  ;;  %v509_v21 = vpop.f32.mrb[14].mxu0 }
 0x11f   :  { %v1165_v22 = vpack.c.bf16 %v507_v17, %v507_v17  ;;  %v5660_v23 = vpop.f32.mrb[15].mxu1  ;;  %v5678_v24 = vpop.f32.mrb[15].mxu0  ;;  %v1161_v17 = vpack.c.bf16 %v335_v4, %v335_v4  ;;  %v95_v20 = vld [vmem:[#allocation5 + $0x18] sm:$0xff]  ;;  %v98_v21 = vld [vmem:[#allocation5 + $0x30] sm:$0xff] }
 0x120   :  { %v106_v24 = vld [vmem:[#allocation5 + $0x68] sm:$0xff]  ;;  %v289_v25 = vadd.f32 %v6670_v6, %v95_v20 }
 0x121   :  { %v1178_v26 = vsel %vm1173_vm2, %v1165_v22, 0 }
 0x122   :  { %5770 = vmatpush3.bf16.xpose.msra.mxu0 %v1178_v26  ;;  %v421_v26 = vadd.f32 %v6672_v7, %v98_v21 }
 0x123   :  { %5781 = vmatprep.subr.bf16.mxu0 %v6426_v0 }
 0x124   :  { %v6678_v29 = vpop.f32.mrb[16].mxu1  ;;  %v592_v30 = vpop.f32.mrb[16].mxu0  ;;  %v1163_v6 = vpack.c.bf16 %v421_v26, %v421_v26 }
 0x125   :  { %v593_v31 = vadd.f32 %v592_v30, %v103_v27  ;;  %v5671_v32 = vpop.f32.mrb[17].mxu1  ;;  %v5689_v33 = vpop.f32.mrb[17].mxu0 }
 0x126   :  { %v466_v34 = vpop.f32.mrb[18].mxu1  ;;  %v595_v35 = vpop.f32.mrb[18].mxu0 }
 0x127   :  { %v1167_v37 = vpack.c.bf16 %v593_v31, %v593_v31  ;;  %v5672_v38 = vpop.f32.mrb[19].mxu1  ;;  %v5690_v39 = vpop.f32.mrb[19].mxu0  ;;  %v1160_v34 = vpack.c.bf16 %v289_v25, %v289_v25 }
 0x128   :  { %v97_v38 = vld [vmem:[#allocation5 + $0x28] sm:$0xff] }
 0x129   :  { %v1270_v41 = vsel %vm1173_vm2, %v1167_v37, 0  ;;  %5772 = vmatmul.mubr.msk.bf16.vlgmr.msra.gmra.mrb[44].mxu0 %vm1173_vm2, %v1157_v36  ;;  %v378_v44 = vadd.f32 %v6674_v15, %v97_v38 }
 0x12a   :  { %5782 = vmatpush3.bf16.xpose.msra.mxu0 %v1270_v41  ;;  %5783 = vmatprep.mubr.msk.bf16.mxu0 %vm6427_vm0, %v6426_v0 }
 0x12b   :  { %5793 = vmatprep.subr.bf16.mxu0 %v6426_v0 }
 0x12c   :  { %v549_v45 = vpop.f32.mrb[20].mxu1  ;;  %v678_v46 = vpop.f32.mrb[20].mxu0 }
 0x12d   :  { %v550_v47 = vadd.f32 %v549_v45, %v102_v42  ;;  %v679_v48 = vadd.f32 %v678_v46, %v105_v43  ;;  %v5683_v49 = vpop.f32.mrb[21].mxu1  ;;  %v5701_v50 = vpop.f32.mrb[21].mxu0  ;;  %v108_v43 = vld [vmem:[#allocation5 + $0x78] sm:$0xff] }
 0x12e   :  { %v552_v51 = vpop.f32.mrb[22].mxu1  ;;  %v681_v52 = vpop.f32.mrb[22].mxu0  ;;  %v1162_v50 = vpack.c.bf16 %v378_v44, %v378_v44 }
 0x12f   :  { %v1166_v55 = vpack.c.bf16 %v550_v47, %v550_v47  ;;  %v1169_v56 = vpack.c.bf16 %v679_v48, %v679_v48  ;;  %v5684_v57 = vpop.f32.mrb[23].mxu1  ;;  %v5702_v58 = vpop.f32.mrb[23].mxu0 }
 0x131   :  { %v1224_v63 = vsel %vm1173_vm2, %v1166_v55, 0  ;;  %v1362_v54 = vsel %vm1173_vm2, %v1169_v56, 0  ;;  %5784 = vmatmul.mubr.msk.bf16.vlgmr.msra.gmra.mrb[48].mxu0 %vm1173_vm2, %v1159_v53  ;;  %v99_v53 = vld [vmem:[#allocation5 + $0x38] sm:$0xff] }
 0x132   :  { %5776 = vmatpush3.bf16.xpose.msra.mxu1 %v1224_v63  ;;  %5794 = vmatpush3.bf16.xpose.msra.mxu0 %v1362_v54  ;;  %v464_v55 = vadd.f32 %v6678_v29, %v99_v53  ;;  %v111_v63 = vld [vmem:[#allocation5 + $0x88] sm:$0xff] }
 0x133   :  { %5795 = vmatprep.mubr.msk.bf16.mxu0 %vm6427_vm0, %v6426_v0  ;;  %5787 = vmatprep.subr.bf16.mxu1 %v6426_v0 }
 0x134   :  { %v635_v5 = vpop.f32.mrb[24].mxu1  ;;  %v764_v8 = vpop.f32.mrb[24].mxu0  ;;  %5805 = vmatprep.subr.bf16.mxu0 %v6426_v0  ;;  %v1164_v56 = vpack.c.bf16 %v464_v55, %v464_v55 }
 0x135   :  { %v636_v9 = vadd.f32 %v635_v5, %v104_v1  ;;  %v765_v10 = vadd.f32 %v764_v8, %v107_v2  ;;  %v5695_v11 = vpop.f32.mrb[25].mxu1  ;;  %v5713_v12 = vpop.f32.mrb[25].mxu0 }
 0x136   :  { %v638_v13 = vpop.f32.mrb[26].mxu1  ;;  %v767_v14 = vpop.f32.mrb[26].mxu0 }
 0x137   :  { %v1168_v61 = vpack.c.bf16 %v636_v9, %v636_v9  ;;  %v1171_v18 = vpack.c.bf16 %v765_v10, %v765_v10  ;;  %v5696_v62 = vpop.f32.mrb[27].mxu1  ;;  %v5714_v19 = vpop.f32.mrb[27].mxu0 }
 0x139   :  { %v1316_v22 = vsel %vm1173_vm2, %v1168_v61, 0  ;;  %v1454_v23 = vsel %vm1173_vm2, %v1171_v18, 0  ;;  %5778 = vmatmul.mubr.msk.bf16.vlgmr.msra.gmra.mrb[52].mxu1 %vm1173_vm2, %v1158_v16  ;;  %5796 = vmatmul.mubr.msk.bf16.vlgmr.msra.gmra.mrb[52].mxu0 %vm1173_vm2, %v1161_v17 }
 0x13a   :  { %5788 = vmatpush3.bf16.xpose.msra.mxu1 %v1316_v22  ;;  %5806 = vmatpush3.bf16.xpose.msra.mxu0 %v1454_v23 }
 0x13b   :  { %5789 = vmatprep.mubr.msk.bf16.mxu1 %vm6427_vm0, %v6426_v0  ;;  %5807 = vmatprep.mubr.msk.bf16.mxu0 %vm6427_vm0, %v6426_v0 }
 0x13c   :  { %v721_v27 = vpop.f32.mrb[28].mxu1  ;;  %5799 = vmatprep.subr.bf16.mxu1 %v6426_v0  ;;  %5817 = vmatprep.subr.bf16.mxu0 %v6426_v0 }
 0x13d   :  { %v722_v30 = vadd.f32 %v721_v27, %v106_v24  ;;  %v5707_v31 = vpop.f32.mrb[29].mxu1 }
 0x13e   :  { %v724_v32 = vpop.f32.mrb[30].mxu1  ;;  %v850_v33 = vpop.f32.mrb[28].mxu0 }
 0x13f   :  { %v1170_v35 = vpack.c.bf16 %v722_v30, %v722_v30  ;;  %v5708_v7 = vpop.f32.mrb[31].mxu1  ;;  %v851_v36 = vadd.f32 %v850_v33, %v110_v28  ;;  %v5725_v37 = vpop.f32.mrb[29].mxu0 }
 0x140   :  { %v853_v39 = vpop.f32.mrb[30].mxu0 }
 0x141   :  { %v1408_v40 = vsel %vm1173_vm2, %v1170_v35, 0  ;;  %5790 = vmatmul.mubr.msk.bf16.vlgmr.msra.gmra.mrb[56].mxu1 %vm1173_vm2, %v1160_v34  ;;  %5808 = vmatmul.mubr.msk.bf16.vlgmr.msra.gmra.mrb[56].mxu0 %vm1173_vm2, %v1163_v6  ;;  %v1638_v41 = vpack.c.bf16 %v851_v36, %v851_v36  ;;  %v5726_v42 = vpop.f32.mrb[31].mxu0 }
 0x142   :  { %5800 = vmatpush3.bf16.xpose.msra.mxu1 %v1408_v40  ;;  %5801 = vmatprep.mubr.msk.bf16.mxu1 %vm6427_vm0, %v6426_v0 }
 0x143   :  { %5811 = vmatprep.subr.bf16.mxu1 %v6426_v0  ;;  %v1651_v45 = vsel %vm1649_vm3, %v1638_v41, 0  ;;  %5819 = vmatprep.mubr.msk.bf16.mxu0 %vm6427_vm0, %v6426_v0 }
 0x144   :  { %v807_v46 = vpop.f32.mrb[32].mxu1  ;;  %5818 = vmatpush3.bf16.msra.mxu0 %v1651_v45 }
 0x145   :  { %v808_v47 = vadd.f32 %v807_v46, %v108_v43  ;;  %v5719_v48 = vpop.f32.mrb[33].mxu1  ;;  %5829 = vmatprep.subr.bf16.mxu0 %v6426_v0 }
 0x146   :  { %v810_v49 = vpop.f32.mrb[34].mxu1  ;;  %v6726_v57 = vpop.f32.mrb[32].mxu0 }
 0x147   :  { %v1172_v51 = vpack.c.bf16 %v808_v47, %v808_v47  ;;  %v5720_v52 = vpop.f32.mrb[35].mxu1  ;;  %v5737_v58 = vpop.f32.mrb[33].mxu0 }
 0x148   :  { %v939_v59 = vpop.f32.mrb[34].mxu0 }
 0x149   :  { %v1500_v15 = vsel %vm1173_vm2, %v1172_v51, 0  ;;  %5802 = vmatmul.mubr.msk.bf16.vlgmr.msra.gmra.mrb[60].mxu1 %vm1173_vm2, %v1162_v50  ;;  %v5738_v60 = vpop.f32.mrb[35].mxu0 }
 0x14a   :  { %5812 = vmatpush3.bf16.xpose.msra.mxu1 %v1500_v15  ;;  %5813 = vmatprep.mubr.msk.bf16.mxu1 %vm6427_vm0, %v6426_v0 }
 0x14b   :  { %5823 = vmatprep.subr.bf16.mxu1 %v6426_v0 }
 0x14c   :  { %v893_v54 = vpop.f32.mrb[36].mxu1 }
 0x14d   :  { %v894_v1 = vadd.f32 %v893_v54, %v111_v63  ;;  %v5731_v2 = vpop.f32.mrb[37].mxu1 }
 0x14e   :  { %v896_v3 = vpop.f32.mrb[38].mxu1  ;;  %v6728_v4 = vpop.f32.mrb[36].mxu0 }
 0x14f   :  { %v1639_v29 = vpack.c.bf16 %v894_v1, %v894_v1  ;;  %v5732_v5 = vpop.f32.mrb[39].mxu1  ;;  %v5749_v8 = vpop.f32.mrb[37].mxu0 }
 0x150   :  { %v1025_v9 = vpop.f32.mrb[38].mxu0 }
 0x151   :  { %5814 = vmatmul.mubr.msk.bf16.vlgmr.msra.gmra.mrb[64].mxu1 %vm1173_vm2, %v1164_v56  ;;  %v1697_v10 = vsel %vm1649_vm3, %v1639_v29, 0  ;;  %v5750_v11 = vpop.f32.mrb[39].mxu0 }
 0x152   :  { %5825 = vmatprep.mubr.msk.bf16.mxu1 %vm6427_vm0, %v6426_v0  ;;  %5824 = vmatpush3.bf16.msra.mxu1 %v1697_v10 }
 0x153   :  { %5835 = vmatprep.subr.bf16.mxu1 %v6426_v0 }
 0x154   :  { %v6732_v12 = vpop.f32.mrb[40].mxu1 }
 0x155   :  { %v5743_v13 = vpop.f32.mrb[41].mxu1 }
 0x156   :  { %v982_v14 = vpop.f32.mrb[42].mxu1  ;;  %v6734_v16 = vpop.f32.mrb[40].mxu0 }
 0x157   :  { %v5744_v17 = vpop.f32.mrb[43].mxu1  ;;  %v5761_v61 = vpop.f32.mrb[41].mxu0 }
 0x158   :  { %v1111_v18 = vpop.f32.mrb[42].mxu0 }
 0x159   :  { %v5762_v62 = vpop.f32.mrb[43].mxu0 }
 0x15c   :  { %v6736_v19 = vpop.f32.mrb[44].mxu1 }
 0x15d   :  { %v5755_v20 = vpop.f32.mrb[45].mxu1 }
 0x15e   :  { %v1068_v21 = vpop.f32.mrb[46].mxu1 }
 0x15f   :  { %v5756_v22 = vpop.f32.mrb[47].mxu1 }
 0x164   :  { %v6738_v23 = vpop.f32.mrb[48].mxu1 }
 0x165   :  { %v5767_v24 = vpop.f32.mrb[49].mxu1 }
 0x166   :  { %v1154_v25 = vpop.f32.mrb[50].mxu1 }
 0x167   :  { %v5768_v26 = vpop.f32.mrb[51].mxu1 }
 0x1fc   :  { %v1214_v27 = vpop.f32.mrb[44].mxu0 }
 0x1fd   :  { %v5773_v28 = vpop.f32.mrb[45].mxu0  ;;  %v1542_v30 = vsel %vm1173_vm2, %v1214_v27, -inf }
 0x1fe   :  { %1543 = vmax.xlane.f32.xlu0 %v1542_v30  ;;  %v1217_v31 = vpop.f32.mrb[46].mxu0 }
 0x1ff   :  { %v5774_v32 = vpop.f32.mrb[47].mxu0 }
 0x204   :  { %v1306_v33 = vpop.f32.mrb[48].mxu0 }
 0x205   :  { %v5785_v34 = vpop.f32.mrb[49].mxu0  ;;  %v1548_v6 = vsel %vm1173_vm2, %v1306_v33, -inf }
 0x206   :  { %1549 = vmax.xlane.f32.xlu1 %v1548_v6  ;;  %v1309_v35 = vpop.f32.mrb[50].mxu0 }
 0x207   :  { %v5786_v7 = vpop.f32.mrb[51].mxu0 }
 0x20c   :  { %v1260_v36 = vpop.f32.mrb[52].mxu1  ;;  %v1398_v37 = vpop.f32.mrb[52].mxu0 }
 0x20d   :  { %v5779_v38 = vpop.f32.mrb[53].mxu1  ;;  %v5797_v39 = vpop.f32.mrb[53].mxu0  ;;  %v1545_v40 = vsel %vm1173_vm2, %v1260_v36, -inf  ;;  %v1554_v45 = vsel %vm1173_vm2, %v1398_v37, -inf }
 0x20e   :  { %v1401_v41 = vpop.f32.mrb[54].mxu0  ;;  %1546 = vmax.xlane.f32.xlu0 %v1545_v40  ;;  %v1263_v42 = vpop.f32.mrb[54].mxu1 }
 0x20f   :  { %v5780_v43 = vpop.f32.mrb[55].mxu1  ;;  %v5798_v44 = vpop.f32.mrb[55].mxu0 }
 0x212   :  { %1555 = vmax.xlane.f32.xlu0 %v1554_v45 }
 0x214   :  { %v1352_v46 = vpop.f32.mrb[56].mxu1  ;;  %v1490_v47 = vpop.f32.mrb[56].mxu0 }
 0x215   :  { %v5791_v48 = vpop.f32.mrb[57].mxu1  ;;  %v5809_v49 = vpop.f32.mrb[57].mxu0  ;;  %v1560_v50 = vsel %vm1173_vm2, %v1490_v47, -inf  ;;  %v1551_v51 = vsel %vm1173_vm2, %v1352_v46, -inf }
 0x216   :  { %v1493_v52 = vpop.f32.mrb[58].mxu0  ;;  %1561 = vmax.xlane.f32.xlu0 %v1560_v50  ;;  %1552 = vmax.xlane.f32.xlu1 %v1551_v51  ;;  %v1355_v53 = vpop.f32.mrb[58].mxu1  ;;  %v112_v50 = vld [vmem:[#allocation5 + $0x90] sm:$0xff] }
 0x217   :  { %v5792_v15 = vpop.f32.mrb[59].mxu1  ;;  %v5810_v55 = vpop.f32.mrb[59].mxu0  ;;  %v937_v51 = vadd.f32 %v6726_v57, %v112_v50 }
 0x219   :  { %v1640_v15 = vpack.c.bf16 %v937_v51, %v937_v51 }
 0x21c   :  { %v1444_v56 = vpop.f32.mrb[60].mxu1 }
 0x21d   :  { %v5803_v58 = vpop.f32.mrb[61].mxu1  ;;  %v1557_v59 = vsel %vm1173_vm2, %v1444_v56, -inf }
 0x21e   :  { %1558 = vmax.xlane.f32.xlu1 %v1557_v59  ;;  %v1447_v60 = vpop.f32.mrb[62].mxu1  ;;  %v1743_v59 = vsel %vm1649_vm3, %v1640_v15, 0 }
 0x21f   :  { %v5804_v63 = vpop.f32.mrb[63].mxu1 }
 0x224   :  { %v1536_v54 = vpop.f32.mrb[64].mxu1 }
 0x225   :  { %v5815_v1 = vpop.f32.mrb[65].mxu1  ;;  %v1563_v2 = vsel %vm1173_vm2, %v1536_v54, -inf }
 0x226   :  { %1564 = vmax.xlane.f32.xlu1 %v1563_v2  ;;  %v1539_v3 = vpop.f32.mrb[66].mxu1 }
 0x227   :  { %v5816_v29 = vpop.f32.mrb[67].mxu1  ;;  %v113_v3 = vld [vmem:[#allocation5 + $0x98] sm:$0xff] }
 0x28b   :  { %v1544_v5 = vpop.xlane.xlu0 %1543 }
 0x28c   :  { %v1566_v8 = vsub.f32 %v1214_v27, %v1544_v5  ;;  %v980_v5 = vadd.f32 %v6732_v12, %v113_v3 }
 0x28e   :  { %v1574_v9 = vmul.f32 1.442695, %v1566_v8 }
 0x290   :  { %6262 = vpow2.f32 %v1574_v9  ;;  %v116_v9 = vld [vmem:[#allocation5 + $0xb0] sm:$0xff] }
 0x293   :  { %v1550_v10 = vpop.xlane.xlu1 %1549 }
 0x294   :  { %v1568_v11 = vsub.f32 %v1306_v33, %v1550_v10 }
 0x296   :  { %v1578_v13 = vmul.f32 1.442695, %v1568_v11 }
 0x298   :  { %6264 = vpow2.f32 %v1578_v13  ;;  %v1641_v13 = vpack.c.bf16 %v980_v5, %v980_v5 }
 0x29a   :  { %v6263_v14 = vpop.eup %6262 }
 0x29b   :  { %v1547_v17 = vpop.xlane.xlu0 %1546  ;;  %v1590_v61 = vsel %vm1173_vm2, %v6263_v14, 0.0 }
 0x29c   :  { %v1567_v18 = vsub.f32 %v1260_v36, %v1547_v17  ;;  %1591 = vadd.xlane.f32.xlu0 %v1590_v61  ;;  %v115_v17 = vld [vmem:[#allocation5 + $0xa8] sm:$0xff] }
 0x29e   :  { %v1576_v62 = vmul.f32 1.442695, %v1567_v18 }
 0x29f   :  { %v1556_v20 = vpop.xlane.xlu0 %1555 }
 0x2a0   :  { %6266 = vpow2.f32 %v1576_v62  ;;  %v1570_v21 = vsub.f32 %v1398_v37, %v1556_v20  ;;  %v1789_v62 = vsel %vm1649_vm3, %v1641_v13, 0 }
 0x2a2   :  { %v6265_v22 = vpop.eup %6264  ;;  %v1582_v24 = vmul.f32 1.442695, %v1570_v21 }
 0x2a3   :  { %v1562_v25 = vpop.xlane.xlu0 %1561  ;;  %v1553_v26 = vpop.xlane.xlu1 %1552  ;;  %v1596_v27 = vsel %vm1173_vm2, %v6265_v22, 0.0 }
 0x2a4   :  { %6268 = vpow2.f32 %v1582_v24  ;;  %v1572_v28 = vsub.f32 %v1490_v47, %v1562_v25  ;;  %v1569_v30 = vsub.f32 %v1352_v46, %v1553_v26  ;;  %1597 = vadd.xlane.f32.xlu0 %v1596_v27  ;;  %v1066_v24 = vadd.f32 %v6736_v19, %v115_v17  ;;  %v117_v19 = vld [vmem:[#allocation5 + $0xb8] sm:$0xff] }
 0x2a6   :  { %v1586_v31 = vmul.f32 1.442695, %v1572_v28  ;;  %v1580_v32 = vmul.f32 1.442695, %v1569_v30  ;;  %v1643_v28 = vpack.c.bf16 %v1066_v24, %v1066_v24 }
 0x2a8   :  { %6270 = vpow2.f32 %v1586_v31 }
 0x2a9   :  { %6272 = vpow2.f32 %v1580_v32 }
 0x2aa   :  { %v6750_v33 = vpop.eup %6266 }
 0x2ab   :  { %v1559_v34 = vpop.xlane.xlu1 %1558  ;;  %v1593_v6 = vsel %vm1173_vm2, %v6750_v33, 0.0 }
 0x2ac   :  { %v1571_v35 = vsub.f32 %v1444_v56, %v1559_v34  ;;  %1594 = vadd.xlane.f32.xlu1 %v1593_v6  ;;  %v114_v56 = vld [vmem:[#allocation5 + $0xa0] sm:$0xff]  ;;  %v1881_v34 = vsel %vm1649_vm3, %v1643_v28, 0  ;;  %v1152_v6 = vadd.f32 %v6738_v23, %v117_v19 }
 0x2ad   :  { %v1023_v60 = vadd.f32 %v6728_v4, %v114_v56 }
 0x2ae   :  { %v6754_v7 = vpop.eup %6268  ;;  %v1584_v36 = vmul.f32 1.442695, %v1571_v35 }
 0x2af   :  { %v1602_v37 = vsel %vm1173_vm2, %v6754_v7, 0.0 }
 0x2b0   :  { %6274 = vpow2.f32 %v1584_v36  ;;  %1603 = vadd.xlane.f32.xlu0 %v1602_v37  ;;  %v1645_v37 = vpack.c.bf16 %v1152_v6, %v1152_v6 }
 0x2b2   :  { %v6758_v38 = vpop.eup %6270 }
 0x2b3   :  { %v6760_v39 = vpop.eup %6272  ;;  %v1565_v40 = vpop.xlane.xlu1 %1564  ;;  %v1608_v41 = vsel %vm1173_vm2, %v6758_v38, 0.0 }
 0x2b4   :  { %v1573_v42 = vsub.f32 %v1536_v54, %v1565_v40  ;;  %1609 = vadd.xlane.f32.xlu0 %v1608_v41  ;;  %v1599_v43 = vsel %vm1173_vm2, %v6760_v39, 0.0  ;;  %v1642_v54 = vpack.c.bf16 %v1023_v60, %v1023_v60 }
 0x2b5   :  { %1600 = vadd.xlane.f32.xlu1 %v1599_v43 }
 0x2b6   :  { %v1588_v44 = vmul.f32 1.442695, %v1573_v42  ;;  %v1835_v4 = vsel %vm1649_vm3, %v1642_v54, 0  ;;  %v2023_v42 = vld [vmem:[%s7429_s3] sm:$0xf] }
 0x2b7   :  { %v2035_v43 = vsel %vm1649_vm3, %v2023_v42, 0 }
 0x2b8   :  { %6276 = vpow2.f32 %v1588_v44  ;;  %v2024_v44 = vld [vmem:[%s7429_s3 + $0x4] sm:$0xf] }
 0x2ba   :  { %v6766_v45 = vpop.eup %6274 }
 0x2bb   :  { %v1605_v46 = vsel %vm1173_vm2, %v6766_v45, 0.0 }
 0x2bc   :  { %1606 = vadd.xlane.f32.xlu1 %v1605_v46  ;;  %v2025_v46 = vld [vmem:[%s7429_s3 + $0x8] sm:$0xf] }
 0x2bd   :  { %v2127_v50 = vsel %vm1649_vm3, %v2025_v46, 0 }
 0x2c2   :  { %v6770_v47 = vpop.eup %6276 }
 0x2c3   :  { %v1611_v48 = vsel %vm1173_vm2, %v6770_v47, 0.0 }
 0x2c4   :  { %1612 = vadd.xlane.f32.xlu1 %v1611_v48 }
 0x329   :  { %v1592_v49 = vpop.xlane.xlu0 %1591 }
 0x32a   :  { %6278 = vrcp.f32 %v1592_v49 }
 0x331   :  { %v1598_v52 = vpop.xlane.xlu0 %1597 }
 0x332   :  { %6280 = vrcp.f32 %v1598_v52 }
 0x334   :  { %v6279_v53 = vpop.eup %6278 }
 0x335   :  { %v1622_v55 = vmul.f32 %v6279_v53, %v6263_v14  ;;  %v1109_v14 = vadd.f32 %v6734_v16, %v116_v9  ;;  %v2027_v53 = vld [vmem:[%s7429_s3 + $0x10] sm:$0xf] }
 0x337   :  { %v1630_v58 = vpack.c.bf16 %v1622_v55, %v1622_v55  ;;  %v1644_v20 = vpack.c.bf16 %v1109_v14, %v1109_v14  ;;  %v2028_v14 = vld [vmem:[%s7429_s3 + $0x14] sm:$0xf] }
 0x339   :  { %5820 = vmatmul.mubr.msk.bf16.vlgmr.msra.gmra.mrb[60].mxu0 %vm1173_vm2, %v1630_v58  ;;  %v1595_v63 = vpop.xlane.xlu1 %1594  ;;  %v1927_v27 = vsel %vm1649_vm3, %v1644_v20, 0  ;;  %v2219_v58 = vsel %vm1649_vm3, %v2027_v53, 0 }
 0x33a   :  { %5830 = vmatpush3.bf16.msra.mxu0 %v1743_v59  ;;  %6282 = vrcp.f32 %v1595_v63  ;;  %5831 = vmatprep.mubr.msk.bf16.mxu0 %vm6427_vm0, %v6426_v0  ;;  %v2026_v63 = vld [vmem:[%s7429_s3 + $0xc] sm:$0xf] }
 0x33b   :  { %5841 = vmatprep.subr.bf16.mxu0 %v6426_v0 }
 0x33c   :  { %v6281_v57 = vpop.eup %6280 }
 0x33d   :  { %v1624_v1 = vmul.f32 %v6281_v57, %v6265_v22  ;;  %v1604_v2 = vpop.xlane.xlu0 %1603 }
 0x33e   :  { %6284 = vrcp.f32 %v1604_v2  ;;  %v2173_v2 = vsel %vm1649_vm3, %v2026_v63, 0 }
 0x33f   :  { %v1632_v29 = vpack.c.bf16 %v1624_v1, %v1624_v1 }
 0x341   :  { %5832 = vmatmul.mubr.msk.bf16.vlgmr.msra.gmra.mrb[64].mxu0 %vm1173_vm2, %v1632_v29  ;;  %v1610_v8 = vpop.xlane.xlu0 %1609  ;;  %v2029_v29 = vld [vmem:[%s7429_s3 + $0x18] sm:$0xf] }
 0x342   :  { %5842 = vmatpush3.bf16.msra.mxu0 %v1835_v4  ;;  %6286 = vrcp.f32 %v1610_v8  ;;  %v1601_v10 = vpop.xlane.xlu1 %1600  ;;  %5843 = vmatprep.mubr.msk.bf16.mxu0 %vm6427_vm0, %v6426_v0 }
 0x343   :  { %6288 = vrcp.f32 %v1601_v10  ;;  %5853 = vmatprep.subr.bf16.mxu0 %v6426_v0  ;;  %v2311_v10 = vsel %vm1649_vm3, %v2029_v29, 0 }
 0x344   :  { %v6283_v11 = vpop.eup %6282 }
 0x345   :  { %v1623_v12 = vmul.f32 %v6283_v11, %v6750_v33 }
 0x347   :  { %v1631_v61 = vpack.c.bf16 %v1623_v12, %v1623_v12 }
 0x348   :  { %v6285_v18 = vpop.eup %6284 }
 0x349   :  { %v1626_v21 = vmul.f32 %v6285_v18, %v6754_v7  ;;  %5826 = vmatmul.mubr.msk.bf16.vlgmr.msra.gmra.mrb[68].mxu1 %vm1173_vm2, %v1631_v61  ;;  %v1607_v22 = vpop.xlane.xlu1 %1606  ;;  %v2265_v18 = vsel %vm1649_vm3, %v2028_v14, 0 }
 0x34a   :  { %5836 = vmatpush3.bf16.msra.mxu1 %v1789_v62  ;;  %6290 = vrcp.f32 %v1607_v22  ;;  %5837 = vmatprep.mubr.msk.bf16.mxu1 %vm6427_vm0, %v6426_v0 }
 0x34b   :  { %v1634_v16 = vpack.c.bf16 %v1626_v21, %v1626_v21  ;;  %5847 = vmatprep.subr.bf16.mxu1 %v6426_v0 }
 0x34c   :  { %v6287_v25 = vpop.eup %6286 }
 0x34d   :  { %v6289_v26 = vpop.eup %6288  ;;  %5844 = vmatmul.mubr.msk.bf16.vlgmr.msra.gmra.mrb[68].mxu0 %vm1173_vm2, %v1634_v16  ;;  %v1628_v31 = vmul.f32 %v6287_v25, %v6758_v38  ;;  %v1973_v38 = vsel %vm1649_vm3, %v1645_v37, 0 }
 0x34e   :  { %v1625_v30 = vmul.f32 %v6289_v26, %v6760_v39  ;;  %5854 = vmatpush3.bf16.msra.mxu0 %v1927_v27  ;;  %5855 = vmatprep.mubr.msk.bf16.mxu0 %vm6427_vm0, %v6426_v0  ;;  %v2030_v26 = vld [vmem:[%s7429_s3 + $0x1c] sm:$0xf] }
 0x34f   :  { %5865 = vmatprep.subr.bf16.mxu0 %v6426_v0  ;;  %v1636_v35 = vpack.c.bf16 %v1628_v31, %v1628_v31  ;;  %v2357_v19 = vsel %vm1649_vm3, %v2030_v26, 0 }
 0x350   :  { %v1633_v32 = vpack.c.bf16 %v1625_v30, %v1625_v30 }
 0x351   :  { %v1613_v33 = vpop.xlane.xlu1 %1612 }
 0x352   :  { %5838 = vmatmul.mubr.msk.bf16.vlgmr.msra.gmra.mrb[72].mxu1 %vm1173_vm2, %v1633_v32  ;;  %6292 = vrcp.f32 %v1613_v33 }
 0x353   :  { %5848 = vmatpush3.bf16.msra.mxu1 %v1881_v34  ;;  %5849 = vmatprep.mubr.msk.bf16.mxu1 %vm6427_vm0, %v6426_v0 }
 0x354   :  { %v6291_v7 = vpop.eup %6290  ;;  %5859 = vmatprep.subr.bf16.mxu1 %v6426_v0 }
 0x355   :  { %v1627_v36 = vmul.f32 %v6291_v7, %v6766_v45  ;;  %5856 = vmatmul.mubr.msk.bf16.vlgmr.msra.gmra.mrb[72].mxu0 %vm1173_vm2, %v1636_v35  ;;  %v2081_v45 = vsel %vm1649_vm3, %v2024_v44, 0 }
 0x356   :  { %5867 = vmatprep.mubr.msk.bf16.mxu0 %vm6427_vm0, %v6426_v0  ;;  %5866 = vmatpush3.bf16.msra.mxu0 %v2035_v43  ;;  %v2406_v43 = vlaneseq }
 0x357   :  { %v1635_v23 = vpack.c.bf16 %v1627_v36, %v1627_v36  ;;  %5877 = vmatprep.subr.bf16.mxu0 %v6426_v0 }
 0x35a   :  { %5850 = vmatmul.mubr.msk.bf16.vlgmr.msra.gmra.mrb[76].mxu1 %vm1173_vm2, %v1635_v23 }
 0x35b   :  { %5860 = vmatpush3.bf16.msra.mxu1 %v1973_v38  ;;  %5861 = vmatprep.mubr.msk.bf16.mxu1 %vm6427_vm0, %v6426_v0 }
 0x35c   :  { %v6293_v39 = vpop.eup %6292  ;;  %5871 = vmatprep.subr.bf16.mxu1 %v6426_v0 }
 0x35d   :  { %v1629_v40 = vmul.f32 %v6293_v39, %v6770_v47 }
 0x35f   :  { %v1637_v41 = vpack.c.bf16 %v1629_v40, %v1629_v40 }
 0x362   :  { %5862 = vmatmul.mubr.msk.bf16.vlgmr.msra.gmra.mrb[80].mxu1 %vm1173_vm2, %v1637_v41 }
 0x363   :  { %5873 = vmatprep.mubr.msk.bf16.mxu1 %vm6427_vm0, %v6426_v0  ;;  %5872 = vmatpush3.bf16.msra.mxu1 %v2081_v45  ;;  %v6886_v45 = vshrl.u32 %v2406_v43, 7 }
 0x364   :  { %5883 = vmatprep.subr.bf16.mxu1 %v6426_v0 }
 0x365   :  { %v6925_v43 = vsub.s32 1, %v6886_v45 }
 0x40c   :  { %v1687_v47 = vpop.f32.mrb[60].mxu0 }
 0x40d   :  { %v2015_v48 = vpack.c.bf16 %v1687_v47, %v1687_v47  ;;  %v5821_v49 = vpop.f32.mrb[61].mxu0 }
 0x40e   :  { %v1690_v51 = vpop.f32.mrb[62].mxu0 }
 0x40f   :  { %v5822_v52 = vpop.f32.mrb[63].mxu0  ;;  %5868 = vmatmul.mubr.msk.bf16.vlgmr.msra.gmra.mrb[76].mxu0 %vm1173_vm2, %v2015_v48 }
 0x410   :  { %5878 = vmatpush3.bf16.msra.mxu0 %v2127_v50  ;;  %5879 = vmatprep.mubr.msk.bf16.mxu0 %vm6427_vm0, %v6426_v0  ;;  %v6889_v52 = vsub.s32 0, %v6886_v45 }
 0x411   :  { %5889 = vmatprep.subr.bf16.mxu0 %v6426_v0 }
 0x414   :  { %v1779_v15 = vpop.f32.mrb[64].mxu0 }
 0x415   :  { %v2017_v55 = vpack.c.bf16 %v1779_v15, %v1779_v15  ;;  %v5833_v56 = vpop.f32.mrb[65].mxu0  ;;  %v6894_v15 = vld [vmem:[%s7433_s7] sm:$0x3f] }
 0x416   :  { %v1782_v59 = vpop.f32.mrb[66].mxu0 }
 0x417   :  { %v5834_v60 = vpop.f32.mrb[67].mxu0  ;;  %5880 = vmatmul.mubr.msk.bf16.vlgmr.msra.gmra.mrb[80].mxu0 %vm1173_vm2, %v2017_v55 }
 0x418   :  { %5890 = vmatpush3.bf16.msra.mxu0 %v2219_v58  ;;  %5891 = vmatprep.mubr.msk.bf16.mxu0 %vm6427_vm0, %v6426_v0  ;;  %v2409_v58 = vrot.slane %v6894_v15, %v6889_v52 }
 0x419   :  { %5901 = vmatprep.subr.bf16.mxu0 %v6426_v0 }
 0x41c   :  { %v1733_v57 = vpop.f32.mrb[68].mxu1 }
 0x41d   :  { %v2016_v54 = vpack.c.bf16 %v1733_v57, %v1733_v57  ;;  %v5827_v1 = vpop.f32.mrb[69].mxu1 }
 0x41e   :  { %v1736_v3 = vpop.f32.mrb[70].mxu1 }
 0x41f   :  { %v5828_v5 = vpop.f32.mrb[71].mxu1  ;;  %5874 = vmatmul.mubr.msk.bf16.vlgmr.msra.gmra.mrb[84].mxu1 %vm1173_vm2, %v2016_v54 }
 0x420   :  { %v1871_v4 = vpop.f32.mrb[68].mxu0  ;;  %5884 = vmatpush3.bf16.msra.mxu1 %v2173_v2  ;;  %5885 = vmatprep.mubr.msk.bf16.mxu1 %vm6427_vm0, %v6426_v0  ;;  %v6346_v5 = vld [vmem:[%s7426_s0] sm:$0xff] }
 0x421   :  { %v2019_v8 = vpack.c.bf16 %v1871_v4, %v1871_v4  ;;  %v5845_v9 = vpop.f32.mrb[69].mxu0  ;;  %5895 = vmatprep.subr.bf16.mxu1 %v6426_v0 }
 0x422   :  { %v1874_v11 = vpop.f32.mrb[70].mxu0 }
 0x423   :  { %v5846_v13 = vpop.f32.mrb[71].mxu0  ;;  %5892 = vmatmul.mubr.msk.bf16.vlgmr.msra.gmra.mrb[84].mxu0 %vm1173_vm2, %v2019_v8 }
 0x424   :  { %5902 = vmatpush3.bf16.msra.mxu0 %v2311_v10  ;;  %5903 = vmatprep.mubr.msk.bf16.mxu0 %vm6427_vm0, %v6426_v0 }
 0x425   :  { %v1825_v12 = vpop.f32.mrb[72].mxu1  ;;  %5913 = vmatprep.subr.bf16.mxu0 %v6426_v0 }
 0x426   :  { %v2018_v17 = vpack.c.bf16 %v1825_v12, %v1825_v12  ;;  %v5839_v61 = vpop.f32.mrb[73].mxu1 }
 0x427   :  { %v1828_v62 = vpop.f32.mrb[74].mxu1 }
 0x428   :  { %v5840_v20 = vpop.f32.mrb[75].mxu1  ;;  %5886 = vmatmul.mubr.msk.bf16.vlgmr.msra.gmra.mrb[88].mxu1 %vm1173_vm2, %v2018_v17  ;;  %v1963_v21 = vpop.f32.mrb[72].mxu0 }
 0x429   :  { %v2021_v22 = vpack.c.bf16 %v1963_v21, %v1963_v21  ;;  %5896 = vmatpush3.bf16.msra.mxu1 %v2265_v18  ;;  %v5857_v24 = vpop.f32.mrb[73].mxu0  ;;  %5897 = vmatprep.mubr.msk.bf16.mxu1 %vm6427_vm0, %v6426_v0 }
 0x42a   :  { %v1966_v16 = vpop.f32.mrb[74].mxu0  ;;  %5907 = vmatprep.subr.bf16.mxu1 %v6426_v0  ;;  %v6347_v24 = vld [vmem:[%s7426_s0 + $0x8] sm:$0xff] }
 0x42b   :  { %v5858_v25 = vpop.f32.mrb[75].mxu0  ;;  %5904 = vmatmul.mubr.msk.bf16.vlgmr.msra.gmra.mrb[88].mxu0 %vm1173_vm2, %v2021_v22 }
 0x42c   :  { %5917 = vmatprep.mubr.msk.bf16.mxu0 %vm6427_vm0, %v6426_v0 }
 0x42d   :  { %v1917_v27 = vpop.f32.mrb[76].mxu1 }
 0x42e   :  { %v2020_v28 = vpack.c.bf16 %v1917_v27, %v1917_v27  ;;  %v5851_v30 = vpop.f32.mrb[77].mxu1 }
 0x42f   :  { %v1920_v31 = vpop.f32.mrb[78].mxu1 }
 0x430   :  { %v5852_v32 = vpop.f32.mrb[79].mxu1  ;;  %5898 = vmatmul.mubr.msk.bf16.vlgmr.msra.gmra.mrb[92].mxu1 %vm1173_vm2, %v2020_v28 }
 0x431   :  { %5908 = vmatpush3.bf16.msra.mxu1 %v2357_v19  ;;  %5909 = vmatprep.mubr.msk.bf16.mxu1 %vm6427_vm0, %v6426_v0 }
 0x432   :  { %5921 = vmatprep.subr.bf16.mxu1 %v6426_v0 }
 0x435   :  { %v2009_v33 = vpop.f32.mrb[80].mxu1 }
 0x436   :  { %v2022_v34 = vpack.c.bf16 %v2009_v33, %v2009_v33  ;;  %v5863_v6 = vpop.f32.mrb[81].mxu1 }
 0x437   :  { %v2012_v35 = vpop.f32.mrb[82].mxu1 }
 0x438   :  { %v5864_v7 = vpop.f32.mrb[83].mxu1  ;;  %5910 = vmatmul.mubr.msk.bf16.vlgmr.msra.gmra.mrb[96].mxu1 %vm1173_vm2, %v2022_v34  ;;  %v6250_v35 = vld [vmem:[%s7430_s4] sm:$0xff]  }
 0x439   :  { %5929 = vmatprep.mubr.msk.bf16.mxu1 %vm6427_vm0, %v6426_v0  ;;  %5914 = vmatpush3.bf16.msra.mxu0 %v6250_v35  ;;  %v6251_v7 = vld [vmem:[%s7430_s4 + $0x8] sm:$0xff]  }
 0x43a   :  { %5915 = vmatprep.subr.bf16.mxu0 %v6426_v0 }
 0x43d   :  { %5916 = vmatpush3.bf16.msra.mxu0 %v6251_v7 }
 0x43e   :  { %5933 = vmatprep.subr.bf16.mxu0 %v6426_v0 }
 0x4e2   :  { %v2071_v36 = vpop.f32.mrb[76].mxu0 }
 0x4e3   :  { %v5869_v37 = vpop.f32.mrb[77].mxu0 }
 0x4e4   :  { %v2074_v23 = vpop.f32.mrb[78].mxu0  ;;  %v6253_v37 = vld [vmem:[%s7432_s6 + $0x8] sm:$0xff]  }
 0x4e5   :  { %v5870_v38 = vpop.f32.mrb[79].mxu0 }
 0x4ea   :  { %v2163_v39 = vpop.f32.mrb[80].mxu0 }
 0x4eb   :  { %v5881_v40 = vpop.f32.mrb[81].mxu0 }
 0x4ec   :  { %v2166_v41 = vpop.f32.mrb[82].mxu0 }
 0x4ed   :  { %v5882_v42 = vpop.f32.mrb[83].mxu0 }
 0x4f2   :  { %v2117_v44 = vpop.f32.mrb[84].mxu1 }
 0x4f3   :  { %v2399_v46 = vadd.f32 %v2117_v44, %v2071_v36  ;;  %v5875_v47 = vpop.f32.mrb[85].mxu1  ;;  %v6252_v36 = vld [vmem:[%s7432_s6] sm:$0xff]  }
 0x4f4   :  { %v2120_v48 = vpop.f32.mrb[86].mxu1  ;;  %5922 = vmatpush3.bf16.msra.mxu1 %v6252_v36 }
 0x4f5   :  { %v5876_v49 = vpop.f32.mrb[87].mxu1  ;;  %v2401_v50 = vadd.f32 %v2399_v46, %v2163_v39  ;;  %5923 = vmatprep.subr.bf16.mxu1 %v6426_v0  ;;  %v2444_v46 = vrot.slane %v6894_v15, %v6925_v43  ;;  %v2449_v48 = vsub.s32 2, %v6886_v45 }
 0x4f6   :  { %v2255_v51 = vpop.f32.mrb[84].mxu0 }
 0x4f7   :  { %v5893_v53 = vpop.f32.mrb[85].mxu0 }
 0x4f8   :  { %v2258_v55 = vpop.f32.mrb[86].mxu0  ;;  %5924 = vmatpush3.bf16.msra.mxu1 %v6253_v37  ;;  %v2450_v53 = vrot.slane %v6894_v15, %v2449_v48 }
 0x4f9   :  { %v5894_v56 = vpop.f32.mrb[87].mxu0  ;;  %5925 = vmatprep.subr.bf16.mxu1 %v6426_v0 }
 0x4fb   :  { %v2209_v59 = vpop.f32.mrb[88].mxu1 }
 0x4fc   :  { %v2403_v60 = vadd.f32 %v2401_v50, %v2209_v59  ;;  %v5887_v63 = vpop.f32.mrb[89].mxu1 }
 0x4fd   :  { %v2212_v57 = vpop.f32.mrb[90].mxu1  ;;  %v6255_v63 = vld [vmem:[%s7432_s6 + $0x18] sm:$0xff]  }
 0x4fe   :  { %v2410_v54 = vadd.f32 %v2409_v58, %v2403_v60  ;;  %v5888_v1 = vpop.f32.mrb[91].mxu1  ;;  %v2347_v2 = vpop.f32.mrb[88].mxu0  ;;  %v6254_v60 = vld [vmem:[%s7432_s6 + $0x10] sm:$0xff]   ;;  %v5330_v57 = vld [vmem:[%s7431_s5] ss:$0 sm:$0xff] }
 0x4ff   :  { %v5905_v3 = vpop.f32.mrb[89].mxu0  ;;  %5926 = vmatpush3.bf16.msra.mxu1 %v6254_v60 }
 0x500   :  { %v2350_v29 = vpop.f32.mrb[90].mxu0  ;;  %v2412_v4 = vadd.f32 %v6346_v5, %v2410_v54  ;;  %5927 = vmatprep.subr.bf16.mxu1 %v6426_v0 }
 0x501   :  { %v5906_v8 = vpop.f32.mrb[91].mxu0 }
 0x502   :  { %v2414_v9 = vsel %vm118_vm1, %v2412_v4, 0.0 }
 0x503   :  { %2415 = vadd.xlane.f32.xlu0 %v2414_v9  ;;  %v2301_v10 = vpop.f32.mrb[92].mxu1  ;;  %5928 = vmatpush3.bf16.msra.mxu1 %v6255_v63 }
 0x504   :  { %v2400_v11 = vadd.f32 %v2301_v10, %v2255_v51  ;;  %v5899_v13 = vpop.f32.mrb[93].mxu1  ;;  %5945 = vmatprep.subr.bf16.mxu1 %v6426_v0  ;;  %v2532_v10 = vsub.s32 3, %v6886_v45 }
 0x505   :  { %v2304_v14 = vpop.f32.mrb[94].mxu1 }
 0x506   :  { %v5900_v12 = vpop.f32.mrb[95].mxu1  ;;  %v2402_v17 = vadd.f32 %v2400_v11, %v2347_v2  ;;  %v2533_v11 = vrot.slane %v6894_v15, %v2532_v10 }
 0x50b   :  { %v2393_v61 = vpop.f32.mrb[96].mxu1 }
 0x50c   :  { %v2404_v18 = vadd.f32 %v2402_v17, %v2393_v61  ;;  %v5911_v62 = vpop.f32.mrb[97].mxu1 }
 0x50d   :  { %v2396_v20 = vpop.f32.mrb[98].mxu1 }
 0x50e   :  { %v2411_v21 = vadd.f32 %v2409_v58, %v2404_v18  ;;  %v5912_v22 = vpop.f32.mrb[99].mxu1 }
 0x510   :  { %v2413_v16 = vadd.f32 %v6347_v24, %v2411_v21 }
 0x512   :  { %v2417_v25 = vsel %vm118_vm1, %v2413_v16, 0.0 }
 0x513   :  { %2418 = vadd.xlane.f32.xlu1 %v2417_v25 }
 0x590   :  { %v2416_v26 = vpop.xlane.xlu0 %2415 }
 0x591   :  { %v2421_v27 = vmul.f32 0.03125, %v2416_v26 }
 0x593   :  { %v2423_v28 = vsub.f32 %v2412_v4, %v2421_v27 }
 0x595   :  { %v2425_v30 = vmul.f32 %v2423_v28, %v2423_v28 }
 0x597   :  { %v2427_v19 = vsel %vm118_vm1, %v2425_v30, 0.0 }
 0x598   :  { %2428 = vadd.xlane.f32.xlu0 %v2427_v19 }
 0x5a0   :  { %v2419_v31 = vpop.xlane.xlu1 %2418 }
 0x5a1   :  { %v2422_v32 = vmul.f32 0.03125, %v2419_v31 }
 0x5a3   :  { %v2424_v33 = vsub.f32 %v2413_v16, %v2422_v32 }
 0x5a5   :  { %v2426_v34 = vmul.f32 %v2424_v33, %v2424_v33 }
 0x5a7   :  { %v2430_v6 = vsel %vm118_vm1, %v2426_v34, 0.0  ;;  %v2648_v34 = vld [vmem:[#allocation2 + $0x68] sm:$0xf] }
 0x5a8   :  { %2431 = vadd.xlane.f32.xlu1 %v2430_v6  ;;  %v2789_v35 = vsel %vm118_vm1, %v2648_v34, 0 }
 0x625   :  { %v2429_v23 = vpop.xlane.xlu0 %2428 }
 0x626   :  { %v2433_v38 = vmul.f32 0.03125, %v2429_v23 }
 0x628   :  { %v2435_v39 = vadd.f32 1e-05, %v2433_v38 }
 0x62a   :  { %6294 = vrsqrt.f32 %v2435_v39 }
 0x634   :  { %v6295_v44 = vpop.eup %6294 }
 0x635   :  { %v2432_v40 = vpop.xlane.xlu1 %2431  ;;  %v2439_v47 = vmul.f32 %v6295_v44, %v2423_v28 }
 0x636   :  { %v2434_v41 = vmul.f32 0.03125, %v2432_v40  ;;  %v2633_v40 = vsub.s32 4, %v6886_v45 }
 0x637   :  { %v2445_v50 = vmul.f32 %v2444_v46, %v2439_v47 }
 0x638   :  { %v2436_v42 = vadd.f32 1e-05, %v2434_v41  ;;  %v2639_v41 = vsub.s32 5, %v6886_v45 }
 0x639   :  { %v2451_v56 = vadd.f32 %v2450_v53, %v2445_v50 }
 0x63a   :  { %6296 = vrsqrt.f32 %v2436_v42  ;;  %v2634_v42 = vrot.slane %v6894_v15, %v2633_v40 }
 0x644   :  { %v6297_v49 = vpop.eup %6296 }
 0x645   :  { %v2440_v51 = vmul.f32 %v6297_v49, %v2424_v33  ;;  %v2646_v33 = vld [vmem:[#allocation2 + $0x60] sm:$0xf] }
 0x646   :  { %v2703_v6 = vsel %vm118_vm1, %v2646_v33, 0 }
 0x647   :  { %v2446_v55 = vmul.f32 %v2444_v46, %v2440_v51  ;;  %v2640_v46 = vrot.slane %v6894_v15, %v2639_v41 }
 0x649   :  { %v2452_v58 = vadd.f32 %v2450_v53, %v2446_v55  ;;  %v2647_v53 = vld [vmem:[#allocation2 + $0x64] sm:$0xf]  ;;  %v2650_v55 = vld [vmem:[#allocation2 + $0x70] sm:$0xf] }
 0x64a   :  { %v2746_v60 = vsel %vm118_vm1, %v2647_v53, 0  ;;  %v2878_v63 = vsel %vm118_vm1, %v2650_v55, 0 }
 0x64b   :  { %v2453_v59 = vpack.c.bf16 %v2452_v58, %v2451_v56 }
 0x64d   :  { %5918 = vmatmul.mubr.msk.bf16.vlgmr.msra.gmra.mrb[92].mxu0 %vm118_vm1, %v2453_v59 }
 0x64e   :  { %5935 = vmatprep.mubr.msk.bf16.mxu0 %vm6427_vm0, %v6426_v0  ;;  %5934 = vmatpush3.bf16.xpose.msra.mxu0 %v2703_v6  ;;  %v2667_v6 = vld [vmem:[#allocation2 + $0xac] sm:$0xf] }
 0x64f   :  { %5939 = vmatprep.subr.bf16.mxu0 %v6426_v0 }
 0x720   :  { %v2512_v54 = vpop.f32.mrb[92].mxu0 }
 0x721   :  { %v2513_v1 = vadd.f32 %v5330_v57, %v2512_v54  ;;  %v5919_v2 = vpop.f32.mrb[93].mxu0  ;;  %v2652_v54 = vld [vmem:[#allocation2 + $0x78] sm:$0xf] }
 0x722   :  { %v2515_v3 = vpop.f32.mrb[94].mxu0 }
 0x723   :  { %v2516_v29 = vadd.f32 %v5330_v57, %v2515_v3  ;;  %v5920_v5 = vpop.f32.mrb[95].mxu0  ;;  %v2519_v4 = vmax.f32 %v2513_v1, 0.0  ;;  %v2649_v57 = vld [vmem:[#allocation2 + $0x6c] sm:$0xf]  ;;  %v2964_v3 = vsel %vm118_vm1, %v2652_v54, 0 }
 0x724   :  { %v2832_v2 = vsel %vm118_vm1, %v2649_v57, 0  ;;  %v2655_v5 = vld [vmem:[#allocation2 + $0x80] sm:$0xf] }
 0x725   :  { %v2520_v8 = vmax.f32 %v2516_v29, 0.0  ;;  %v2651_v29 = vld [vmem:[#allocation2 + $0x74] sm:$0xf] }
 0x727   :  { %v2521_v9 = vpack.c.bf16 %v2520_v8, %v2519_v4  ;;  %v2921_v4 = vsel %vm118_vm1, %v2651_v29, 0  ;;  %v3050_v8 = vsel %vm118_vm1, %v2655_v5, 0 }
 0x729   :  { %5930 = vmatmul.mubr.msk.bf16.vlgmr.msra.gmra.mrb[100].mxu1 %vm2558_vm4, %v2521_v9  ;;  %v2653_v9 = vld [vmem:[#allocation2 + $0x7c] sm:$0xf] }
 0x72a   :  { %5947 = vmatprep.mubr.msk.bf16.mxu1 %vm6427_vm0, %v6426_v0  ;;  %5946 = vmatpush3.bf16.xpose.msra.mxu1 %v2789_v35  ;;  %v2670_v35 = vld [vmem:[#allocation2 + $0xb8] sm:$0xf] }
 0x72b   :  { %5957 = vmatprep.subr.bf16.mxu1 %v6426_v0 }
 0x7fc   :  { %v2596_v13 = vpop.f32.mrb[100].mxu1 }
 0x7fd   :  { %v2597_v14 = vadd.f32 %v2596_v13, %v2533_v11  ;;  %v5931_v12 = vpop.f32.mrb[101].mxu1  ;;  %v3007_v13 = vsel %vm118_vm1, %v2653_v9, 0 }
 0x7fe   :  { %v2599_v17 = vpop.f32.mrb[102].mxu1  ;;  %v2656_v12 = vld [vmem:[#allocation2 + $0x84] sm:$0xf] }
 0x7ff   :  { %v2600_v61 = vadd.f32 %v2599_v17, %v2533_v11  ;;  %v5932_v18 = vpop.f32.mrb[103].mxu1  ;;  %v2603_v62 = vadd.f32 %v2597_v14, %v2451_v56  ;;  %v2657_v11 = vld [vmem:[#allocation2 + $0x88] sm:$0xf]  ;;  %v2659_v17 = vld [vmem:[#allocation2 + $0x90] sm:$0xf] }
 0x800   :  { %v3136_v14 = vsel %vm118_vm1, %v2657_v11, 0  ;;  %v3222_v18 = vsel %vm118_vm1, %v2659_v17, 0 }
 0x801   :  { %v2605_v20 = vsel %vm118_vm1, %v2603_v62, 0.0  ;;  %v2604_v21 = vadd.f32 %v2600_v61, %v2452_v58  ;;  %v3093_v61 = vsel %vm118_vm1, %v2656_v12, 0 }
 0x802   :  { %2606 = vadd.xlane.f32.xlu0 %v2605_v20  ;;  %v2661_v20 = vld [vmem:[#allocation2 + $0x98] sm:$0xf] }
 0x803   :  { %v2608_v22 = vsel %vm118_vm1, %v2604_v21, 0.0 }
 0x804   :  { %2609 = vadd.xlane.f32.xlu1 %v2608_v22  ;;  %v3308_v22 = vsel %vm118_vm1, %v2661_v20, 0 }
 0x88f   :  { %v2607_v24 = vpop.xlane.xlu0 %2606 }
 0x890   :  { %v2611_v16 = vmul.f32 0.03125, %v2607_v24  ;;  %v2660_v24 = vld [vmem:[#allocation2 + $0x94] sm:$0xf] }
 0x891   :  { %v2610_v25 = vpop.xlane.xlu1 %2609 }
 0x892   :  { %v2613_v26 = vsub.f32 %v2603_v62, %v2611_v16  ;;  %v2612_v27 = vmul.f32 0.03125, %v2610_v25  ;;  %v2658_v62 = vld [vmem:[#allocation2 + $0x8c] sm:$0xf]  ;;  %v2664_v16 = vld [vmem:[#allocation2 + $0xa0] sm:$0xf]  ;;  %v3265_v25 = vsel %vm118_vm1, %v2660_v24, 0 }
 0x894   :  { %v2614_v28 = vsub.f32 %v2604_v21, %v2612_v27  ;;  %v2615_v30 = vmul.f32 %v2613_v26, %v2613_v26  ;;  %v3179_v21 = vsel %vm118_vm1, %v2658_v62, 0  ;;  %v2662_v27 = vld [vmem:[#allocation2 + $0x9c] sm:$0xf] }
 0x896   :  { %v2617_v19 = vsel %vm118_vm1, %v2615_v30, 0.0  ;;  %v2616_v31 = vmul.f32 %v2614_v28, %v2614_v28  ;;  %v3351_v30 = vsel %vm118_vm1, %v2662_v27, 0 }
 0x897   :  { %2618 = vadd.xlane.f32.xlu0 %v2617_v19 }
 0x898   :  { %v2620_v32 = vsel %vm118_vm1, %v2616_v31, 0.0  ;;  %v2665_v31 = vld [vmem:[#allocation2 + $0xa4] sm:$0xf] }
 0x899   :  { %2621 = vadd.xlane.f32.xlu1 %v2620_v32  ;;  %v2668_v32 = vld [vmem:[#allocation2 + $0xb0] sm:$0xf]  ;;  %v3437_v33 = vsel %vm118_vm1, %v2665_v31, 0 }
 0x89a   :  { %v3566_v34 = vsel %vm118_vm1, %v2668_v32, 0 }
 0x924   :  { %v2619_v7 = vpop.xlane.xlu0 %2618 }
 0x925   :  { %v2623_v36 = vmul.f32 0.03125, %v2619_v7  ;;  %v3523_v7 = vsel %vm118_vm1, %v2667_v6, 0 }
 0x926   :  { %v2622_v37 = vpop.xlane.xlu1 %2621 }
 0x927   :  { %v2625_v23 = vadd.f32 1e-05, %v2623_v36  ;;  %v2624_v38 = vmul.f32 0.03125, %v2622_v37  ;;  %v3652_v36 = vsel %vm118_vm1, %v2670_v35, 0  ;;  %v2669_v37 = vld [vmem:[#allocation2 + $0xb4] sm:$0xf] }
 0x929   :  { %6298 = vrsqrt.f32 %v2625_v23  ;;  %v2626_v39 = vadd.f32 1e-05, %v2624_v38  ;;  %v3609_v23 = vsel %vm118_vm1, %v2669_v37, 0  ;;  %v2671_v38 = vld [vmem:[#allocation2 + $0xbc] sm:$0xf]  ;;  %v2675_v37 = vld [vmem:[#allocation5 + $0xd0] sm:$0xff] }
 0x92b   :  { %6300 = vrsqrt.f32 %v2626_v39  ;;  %v3695_v39 = vsel %vm118_vm1, %v2671_v38, 0  ;;  %v2683_v38 = vld [vmem:[#allocation5 + $0x108] sm:$0xff] }
 0x933   :  { %v6299_v44 = vpop.eup %6298 }
 0x934   :  { %v2629_v47 = vmul.f32 %v6299_v44, %v2613_v26  ;;  %v3394_v26 = vsel %vm118_vm1, %v2664_v16, 0  ;;  %v2673_v16 = vld [vmem:[#allocation5 + $0xc0] sm:$0xff] }
 0x935   :  { %v6301_v49 = vpop.eup %6300 }
 0x936   :  { %v2635_v50 = vmul.f32 %v2634_v42, %v2629_v47  ;;  %v2630_v51 = vmul.f32 %v6301_v49, %v2614_v28  ;;  %v2666_v28 = vld [vmem:[#allocation2 + $0xa8] sm:$0xf] }
 0x937   :  { %v3480_v19 = vsel %vm118_vm1, %v2666_v28, 0 }
 0x938   :  { %v6970_v56 = vadd.f32 %v2640_v46, %v2635_v50  ;;  %v2636_v59 = vmul.f32 %v2634_v42, %v2630_v51 }
 0x93a   :  { %v6974_v58 = vpack.c.bf16 %v6970_v56, %v6970_v56  ;;  %v6982_v15 = vadd.f32 %v2640_v46, %v2636_v59 }
 0x93c   :  { %5936 = vmatmul.mubr.msk.bf16.vlgmr.msra.gmra.mrb[96].mxu0 %vm118_vm1, %v6974_v58  ;;  %5948 = vmatmul.mubr.msk.bf16.vlgmr.msra.gmra.mrb[104].mxu1 %vm118_vm1, %v6974_v58  ;;  %v6992_v1 = vpack.c.bf16 %v6982_v15, %v6982_v15 }
 0x93d   :  { %5940 = vmatpush3.bf16.xpose.msra.mxu0 %v2746_v60  ;;  %5958 = vmatpush3.bf16.xpose.msra.mxu1 %v2878_v63 }
 0x93e   :  { %5941 = vmatprep.mubr.msk.bf16.mxu0 %vm6427_vm0, %v6426_v0  ;;  %5959 = vmatprep.mubr.msk.bf16.mxu1 %vm6427_vm0, %v6426_v0 }
 0x93f   :  { %5951 = vmatprep.subr.bf16.mxu0 %v6426_v0  ;;  %5969 = vmatprep.subr.bf16.mxu1 %v6426_v0 }
 0x944   :  { %5942 = vmatmul.mubr.msk.bf16.vlgmr.msra.gmra.mrb[100].mxu0 %vm118_vm1, %v6974_v58  ;;  %5960 = vmatmul.mubr.msk.bf16.vlgmr.msra.gmra.mrb[108].mxu1 %vm118_vm1, %v6992_v1 }
 0x945   :  { %5952 = vmatpush3.bf16.xpose.msra.mxu0 %v2832_v2  ;;  %5970 = vmatpush3.bf16.xpose.msra.mxu1 %v2964_v3 }
 0x946   :  { %5953 = vmatprep.mubr.msk.bf16.mxu0 %vm6427_vm0, %v6426_v0  ;;  %5971 = vmatprep.mubr.msk.bf16.mxu1 %vm6427_vm0, %v6426_v0 }
 0x947   :  { %5963 = vmatprep.subr.bf16.mxu0 %v6426_v0  ;;  %5981 = vmatprep.subr.bf16.mxu1 %v6426_v0 }
 0x94c   :  { %5954 = vmatmul.mubr.msk.bf16.vlgmr.msra.gmra.mrb[104].mxu0 %vm118_vm1, %v6974_v58  ;;  %5972 = vmatmul.mubr.msk.bf16.vlgmr.msra.gmra.mrb[112].mxu1 %vm118_vm1, %v6992_v1 }
 0x94d   :  { %5964 = vmatpush3.bf16.xpose.msra.mxu0 %v2921_v4  ;;  %5982 = vmatpush3.bf16.xpose.msra.mxu1 %v3050_v8 }
 0x94e   :  { %5965 = vmatprep.mubr.msk.bf16.mxu0 %vm6427_vm0, %v6426_v0  ;;  %5983 = vmatprep.mubr.msk.bf16.mxu1 %vm6427_vm0, %v6426_v0 }
 0x94f   :  { %5975 = vmatprep.subr.bf16.mxu0 %v6426_v0  ;;  %5993 = vmatprep.subr.bf16.mxu1 %v6426_v0 }
 0x954   :  { %5966 = vmatmul.mubr.msk.bf16.vlgmr.msra.gmra.mrb[108].mxu0 %vm118_vm1, %v6992_v1  ;;  %5984 = vmatmul.mubr.msk.bf16.vlgmr.msra.gmra.mrb[116].mxu1 %vm118_vm1, %v6974_v58 }
 0x955   :  { %5976 = vmatpush3.bf16.xpose.msra.mxu0 %v3007_v13  ;;  %5994 = vmatpush3.bf16.xpose.msra.mxu1 %v3136_v14  ;;  %v2682_v13 = vld [vmem:[#allocation5 + $0x100] sm:$0xff] }
 0x956   :  { %5977 = vmatprep.mubr.msk.bf16.mxu0 %vm6427_vm0, %v6426_v0  ;;  %5995 = vmatprep.mubr.msk.bf16.mxu1 %vm6427_vm0, %v6426_v0 }
 0x957   :  { %5987 = vmatprep.subr.bf16.mxu0 %v6426_v0  ;;  %6005 = vmatprep.subr.bf16.mxu1 %v6426_v0 }
 0x95c   :  { %5978 = vmatmul.mubr.msk.bf16.vlgmr.msra.gmra.mrb[112].mxu0 %vm118_vm1, %v6992_v1  ;;  %5996 = vmatmul.mubr.msk.bf16.vlgmr.msra.gmra.mrb[120].mxu1 %vm118_vm1, %v6974_v58 }
 0x95d   :  { %5988 = vmatpush3.bf16.xpose.msra.mxu0 %v3093_v61  ;;  %6006 = vmatpush3.bf16.xpose.msra.mxu1 %v3222_v18 }
 0x95e   :  { %5989 = vmatprep.mubr.msk.bf16.mxu0 %vm6427_vm0, %v6426_v0  ;;  %6007 = vmatprep.mubr.msk.bf16.mxu1 %vm6427_vm0, %v6426_v0 }
 0x95f   :  { %5999 = vmatprep.subr.bf16.mxu0 %v6426_v0  ;;  %6017 = vmatprep.subr.bf16.mxu1 %v6426_v0 }
 0x964   :  { %5990 = vmatmul.mubr.msk.bf16.vlgmr.msra.gmra.mrb[116].mxu0 %vm118_vm1, %v6974_v58  ;;  %6008 = vmatmul.mubr.msk.bf16.vlgmr.msra.gmra.mrb[124].mxu1 %vm118_vm1, %v6992_v1 }
 0x965   :  { %6000 = vmatpush3.bf16.xpose.msra.mxu0 %v3179_v21  ;;  %6018 = vmatpush3.bf16.xpose.msra.mxu1 %v3308_v22 }
 0x966   :  { %6001 = vmatprep.mubr.msk.bf16.mxu0 %vm6427_vm0, %v6426_v0  ;;  %6019 = vmatprep.mubr.msk.bf16.mxu1 %vm6427_vm0, %v6426_v0 }
 0x967   :  { %6011 = vmatprep.subr.bf16.mxu0 %v6426_v0  ;;  %6029 = vmatprep.subr.bf16.mxu1 %v6426_v0 }
 0x96c   :  { %6002 = vmatmul.mubr.msk.bf16.vlgmr.msra.gmra.mrb[120].mxu0 %vm118_vm1, %v6974_v58  ;;  %6020 = vmatmul.mubr.msk.bf16.vlgmr.msra.gmra.mrb[128].mxu1 %vm118_vm1, %v6992_v1 }
 0x96d   :  { %6012 = vmatpush3.bf16.xpose.msra.mxu0 %v3265_v25  ;;  %6030 = vmatpush3.bf16.xpose.msra.mxu1 %v3394_v26  ;;  %v2684_v26 = vld [vmem:[#allocation5 + $0x110] sm:$0xff] }
 0x96e   :  { %6013 = vmatprep.mubr.msk.bf16.mxu0 %vm6427_vm0, %v6426_v0  ;;  %6031 = vmatprep.mubr.msk.bf16.mxu1 %vm6427_vm0, %v6426_v0 }
 0x96f   :  { %6023 = vmatprep.subr.bf16.mxu0 %v6426_v0  ;;  %6041 = vmatprep.subr.bf16.mxu1 %v6426_v0 }
 0x974   :  { %6014 = vmatmul.mubr.msk.bf16.vlgmr.msra.gmra.mrb[124].mxu0 %vm118_vm1, %v6992_v1  ;;  %6032 = vmatmul.mubr.msk.bf16.vlgmr.msra.gmra.mrb[132].mxu1 %vm118_vm1, %v6974_v58 }
 0x975   :  { %6024 = vmatpush3.bf16.xpose.msra.mxu0 %v3351_v30  ;;  %6042 = vmatpush3.bf16.xpose.msra.mxu1 %v3480_v19 }
 0x976   :  { %6025 = vmatprep.mubr.msk.bf16.mxu0 %vm6427_vm0, %v6426_v0  ;;  %6043 = vmatprep.mubr.msk.bf16.mxu1 %vm6427_vm0, %v6426_v0 }
 0x977   :  { %6035 = vmatprep.subr.bf16.mxu0 %v6426_v0  ;;  %6053 = vmatprep.subr.bf16.mxu1 %v6426_v0 }
 0x97c   :  { %6026 = vmatmul.mubr.msk.bf16.vlgmr.msra.gmra.mrb[128].mxu0 %vm118_vm1, %v6992_v1  ;;  %6044 = vmatmul.mubr.msk.bf16.vlgmr.msra.gmra.mrb[136].mxu1 %vm118_vm1, %v6974_v58 }
 0x97d   :  { %6036 = vmatpush3.bf16.xpose.msra.mxu0 %v3437_v33  ;;  %6054 = vmatpush3.bf16.xpose.msra.mxu1 %v3566_v34 }
 0x97e   :  { %6037 = vmatprep.mubr.msk.bf16.mxu0 %vm6427_vm0, %v6426_v0  ;;  %6055 = vmatprep.mubr.msk.bf16.mxu1 %vm6427_vm0, %v6426_v0 }
 0x97f   :  { %6047 = vmatprep.subr.bf16.mxu0 %v6426_v0  ;;  %6065 = vmatprep.subr.bf16.mxu1 %v6426_v0 }
 0x984   :  { %6038 = vmatmul.mubr.msk.bf16.vlgmr.msra.gmra.mrb[132].mxu0 %vm118_vm1, %v6974_v58  ;;  %6056 = vmatmul.mubr.msk.bf16.vlgmr.msra.gmra.mrb[140].mxu1 %vm118_vm1, %v6992_v1 }
 0x985   :  { %6048 = vmatpush3.bf16.xpose.msra.mxu0 %v3523_v7  ;;  %6066 = vmatpush3.bf16.xpose.msra.mxu1 %v3652_v36 }
 0x986   :  { %6049 = vmatprep.mubr.msk.bf16.mxu0 %vm6427_vm0, %v6426_v0  ;;  %6067 = vmatprep.mubr.msk.bf16.mxu1 %vm6427_vm0, %v6426_v0 }
 0x987   :  { %6059 = vmatprep.subr.bf16.mxu0 %v6426_v0  ;;  %6077 = vmatprep.subr.bf16.mxu1 %v6426_v0 }
 0x98c   :  { %6050 = vmatmul.mubr.msk.bf16.vlgmr.msra.gmra.mrb[136].mxu0 %vm118_vm1, %v6974_v58  ;;  %6068 = vmatmul.mubr.msk.bf16.vlgmr.msra.gmra.mrb[144].mxu1 %vm118_vm1, %v6992_v1 }
 0x98d   :  { %6060 = vmatpush3.bf16.xpose.msra.mxu0 %v3609_v23  ;;  %6061 = vmatprep.mubr.msk.bf16.mxu0 %vm6427_vm0, %v6426_v0 }
 0x98e   :  { %6071 = vmatprep.subr.bf16.mxu0 %v6426_v0  ;;  %6079 = vmatprep.mubr.msk.bf16.mxu1 %vm6427_vm0, %v6426_v0 }
 0x994   :  { %6062 = vmatmul.mubr.msk.bf16.vlgmr.msra.gmra.mrb[140].mxu0 %vm118_vm1, %v6992_v1 }
 0x995   :  { %6072 = vmatpush3.bf16.xpose.msra.mxu0 %v3695_v39  ;;  %6073 = vmatprep.mubr.msk.bf16.mxu0 %vm6427_vm0, %v6426_v0  ;;  %v2686_v39 = vld [vmem:[#allocation5 + $0x120] sm:$0xff] }
 0x996   :  { %6083 = vmatprep.subr.bf16.mxu0 %v6426_v0 }
 0x99c   :  { %6074 = vmatmul.mubr.msk.bf16.vlgmr.msra.gmra.mrb[144].mxu0 %vm118_vm1, %v6992_v1 }
 0x99d   :  { %6085 = vmatprep.mubr.msk.bf16.mxu0 %vm6427_vm0, %v6426_v0 }
 0xa0f   :  { %v2739_v42 = vpop.f32.mrb[96].mxu0  ;;  %v2825_v44 = vpop.f32.mrb[104].mxu1 }
 0xa10   :  { %v5937_v46 = vpop.f32.mrb[97].mxu0  ;;  %v5949_v47 = vpop.f32.mrb[105].mxu1  ;;  %v2740_v27 = vadd.f32 %v2739_v42, %v2673_v16  ;;  %v2826_v42 = vadd.f32 %v2825_v44, %v2675_v37 }
 0xa11   :  { %v2742_v49 = vpop.f32.mrb[98].mxu0  ;;  %v2828_v50 = vpop.f32.mrb[106].mxu1 }
 0xa12   :  { %v5938_v51 = vpop.f32.mrb[99].mxu0  ;;  %v5950_v53 = vpop.f32.mrb[107].mxu1  ;;  %v3737_v6 = vpack.c.bf16 %v2740_v27, %v2740_v27 }
 0xa17   :  { %v7122_v55 = vpop.f32.mrb[100].mxu0  ;;  %v7124_v58 = vpop.f32.mrb[108].mxu1 }
 0xa18   :  { %v5943_v59 = vpop.f32.mrb[101].mxu0  ;;  %v5961_v60 = vpop.f32.mrb[109].mxu1 }
 0xa19   :  { %v2785_v63 = vpop.f32.mrb[102].mxu0  ;;  %v2917_v57 = vpop.f32.mrb[110].mxu1 }
 0xa1a   :  { %v5944_v54 = vpop.f32.mrb[103].mxu0  ;;  %v5962_v1 = vpop.f32.mrb[111].mxu1  ;;  %v3739_v63 = vpack.c.bf16 %v2826_v42, %v2826_v42 }
 0xa1f   :  { %v7126_v2 = vpop.f32.mrb[104].mxu0  ;;  %v7128_v3 = vpop.f32.mrb[112].mxu1 }
 0xa20   :  { %v5955_v29 = vpop.f32.mrb[105].mxu0  ;;  %v5973_v5 = vpop.f32.mrb[113].mxu1 }
 0xa21   :  { %v2871_v4 = vpop.f32.mrb[106].mxu0  ;;  %v3003_v8 = vpop.f32.mrb[114].mxu1  ;;  %v2674_v5 = vld [vmem:[#allocation5 + $0xc8] sm:$0xff] }
 0xa22   :  { %v5956_v9 = vpop.f32.mrb[107].mxu0  ;;  %v5974_v11 = vpop.f32.mrb[115].mxu1  ;;  %v2677_v4 = vld [vmem:[#allocation5 + $0xe0] sm:$0xff] }
 0xa23   :  { %v2685_v9 = vld [vmem:[#allocation5 + $0x118] sm:$0xff]  ;;  %v2688_v11 = vld [vmem:[#allocation5 + $0x130] sm:$0xff] }
 0xa27   :  { %v7130_v14 = vpop.f32.mrb[108].mxu0  ;;  %v3086_v12 = vpop.f32.mrb[116].mxu1 }
 0xa28   :  { %v3087_v17 = vadd.f32 %v3086_v12, %v2682_v13  ;;  %v5967_v61 = vpop.f32.mrb[109].mxu0  ;;  %v5985_v18 = vpop.f32.mrb[117].mxu1  ;;  %v2783_v13 = vadd.f32 %v7122_v55, %v2674_v5  ;;  %v2915_v12 = vadd.f32 %v7124_v58, %v2677_v4 }
 0xa29   :  { %v2960_v62 = vpop.f32.mrb[110].mxu0  ;;  %v3089_v20 = vpop.f32.mrb[118].mxu1 }
 0xa2a   :  { %v3745_v21 = vpack.c.bf16 %v3087_v17, %v3087_v17  ;;  %v5968_v22 = vpop.f32.mrb[111].mxu0  ;;  %v5986_v24 = vpop.f32.mrb[119].mxu1  ;;  %v3738_v16 = vpack.c.bf16 %v2783_v13, %v2783_v13 }
 0xa2c   :  { %v3757_v25 = vsel %vm1173_vm2, %v3745_v21, 0 }
 0xa2d   :  { %6078 = vmatpush3.bf16.xpose.msra.mxu1 %v3757_v25  ;;  %v3741_v25 = vpack.c.bf16 %v2915_v12, %v2915_v12  ;;  %v2680_v12 = vld [vmem:[#allocation5 + $0xf8] sm:$0xff] }
 0xa2e   :  { %6089 = vmatprep.subr.bf16.mxu1 %v6426_v0 }
 0xa2f   :  { %v7134_v28 = vpop.f32.mrb[112].mxu0  ;;  %v3172_v30 = vpop.f32.mrb[120].mxu1 }
 0xa30   :  { %v3173_v19 = vadd.f32 %v3172_v30, %v2684_v26  ;;  %v5979_v31 = vpop.f32.mrb[113].mxu0  ;;  %v5997_v32 = vpop.f32.mrb[121].mxu1  ;;  %v2676_v30 = vld [vmem:[#allocation5 + $0xd8] sm:$0xff] }
 0xa31   :  { %v3046_v33 = vpop.f32.mrb[114].mxu0  ;;  %v3175_v34 = vpop.f32.mrb[122].mxu1 }
 0xa32   :  { %v3747_v35 = vpack.c.bf16 %v3173_v19, %v3173_v19  ;;  %v5980_v7 = vpop.f32.mrb[115].mxu0  ;;  %v5998_v36 = vpop.f32.mrb[123].mxu1  ;;  %v2679_v19 = vld [vmem:[#allocation5 + $0xf0] sm:$0xff]  ;;  %v2687_v33 = vld [vmem:[#allocation5 + $0x128] sm:$0xff]  ;;  %v2691_v34 = vld [vmem:[#allocation5 + $0x140] sm:$0xff] }
 0xa34   :  { %v3849_v23 = vsel %vm1173_vm2, %v3747_v35, 0  ;;  %6080 = vmatmul.mubr.msk.bf16.vlgmr.msra.gmra.mrb[148].mxu1 %vm1173_vm2, %v3737_v6  ;;  %v2869_v6 = vadd.f32 %v7126_v2, %v2676_v30  ;;  %v3001_v35 = vadd.f32 %v7128_v3, %v2679_v19 }
 0xa35   :  { %6090 = vmatpush3.bf16.xpose.msra.mxu1 %v3849_v23  ;;  %6091 = vmatprep.mubr.msk.bf16.mxu1 %vm6427_vm0, %v6426_v0 }
 0xa36   :  { %6101 = vmatprep.subr.bf16.mxu1 %v6426_v0  ;;  %v3743_v3 = vpack.c.bf16 %v3001_v35, %v3001_v35 }
 0xa37   :  { %v3129_v46 = vpop.f32.mrb[116].mxu0  ;;  %v3258_v47 = vpop.f32.mrb[124].mxu1 }
 0xa38   :  { %v3130_v49 = vadd.f32 %v3129_v46, %v2683_v38  ;;  %v3259_v50 = vadd.f32 %v3258_v47, %v2686_v39  ;;  %v5991_v51 = vpop.f32.mrb[117].mxu0  ;;  %v6009_v53 = vpop.f32.mrb[125].mxu1  ;;  %v3740_v46 = vpack.c.bf16 %v2869_v6, %v2869_v6 }
 0xa39   :  { %v3132_v59 = vpop.f32.mrb[118].mxu0  ;;  %v3261_v60 = vpop.f32.mrb[126].mxu1  ;;  %v2678_v53 = vld [vmem:[#allocation5 + $0xe8] sm:$0xff] }
 0xa3a   :  { %v3746_v57 = vpack.c.bf16 %v3130_v49, %v3130_v49  ;;  %v3749_v54 = vpack.c.bf16 %v3259_v50, %v3259_v50  ;;  %v5992_v1 = vpop.f32.mrb[119].mxu0  ;;  %v6010_v29 = vpop.f32.mrb[127].mxu1 }
 0xa3c   :  { %v3803_v8 = vsel %vm1173_vm2, %v3746_v57, 0  ;;  %v3941_v44 = vsel %vm1173_vm2, %v3749_v54, 0  ;;  %6092 = vmatmul.mubr.msk.bf16.vlgmr.msra.gmra.mrb[152].mxu1 %vm1173_vm2, %v3739_v63  ;;  %v2689_v63 = vld [vmem:[#allocation5 + $0x138] sm:$0xff]  ;;  %v2958_v57 = vadd.f32 %v7130_v14, %v2678_v53 }
 0xa3d   :  { %6084 = vmatpush3.bf16.xpose.msra.mxu0 %v3803_v8  ;;  %6102 = vmatpush3.bf16.xpose.msra.mxu1 %v3941_v44 }
 0xa3e   :  { %6103 = vmatprep.mubr.msk.bf16.mxu1 %vm6427_vm0, %v6426_v0  ;;  %6095 = vmatprep.subr.bf16.mxu0 %v6426_v0 }
 0xa3f   :  { %v3215_v17 = vpop.f32.mrb[120].mxu0  ;;  %v3344_v61 = vpop.f32.mrb[128].mxu1  ;;  %6113 = vmatprep.subr.bf16.mxu1 %v6426_v0 }
 0xa40   :  { %v3216_v18 = vadd.f32 %v3215_v17, %v2685_v9  ;;  %v3345_v62 = vadd.f32 %v3344_v61, %v2688_v11  ;;  %v6003_v20 = vpop.f32.mrb[121].mxu0  ;;  %v6021_v21 = vpop.f32.mrb[129].mxu1  ;;  %v3742_v9 = vpack.c.bf16 %v2958_v57, %v2958_v57  ;;  %v2692_v61 = vld [vmem:[#allocation5 + $0x148] sm:$0xff] }
 0xa41   :  { %v3218_v22 = vpop.f32.mrb[122].mxu0  ;;  %v3347_v24 = vpop.f32.mrb[130].mxu1 }
 0xa42   :  { %v3748_v55 = vpack.c.bf16 %v3216_v18, %v3216_v18  ;;  %v3751_v26 = vpack.c.bf16 %v3345_v62, %v3345_v62  ;;  %v6004_v58 = vpop.f32.mrb[123].mxu0  ;;  %v6022_v27 = vpop.f32.mrb[131].mxu1  ;;  %v3044_v18 = vadd.f32 %v7134_v28, %v2680_v12 }
 0xa44   :  { %v3895_v31 = vsel %vm1173_vm2, %v3748_v55, 0  ;;  %v4033_v32 = vsel %vm1173_vm2, %v3751_v26, 0  ;;  %6086 = vmatmul.mubr.msk.bf16.vlgmr.msra.gmra.mrb[148].mxu0 %vm1173_vm2, %v3738_v16  ;;  %6104 = vmatmul.mubr.msk.bf16.vlgmr.msra.gmra.mrb[156].mxu1 %vm1173_vm2, %v3741_v25  ;;  %v3744_v55 = vpack.c.bf16 %v3044_v18, %v3044_v18 }
 0xa45   :  { %6096 = vmatpush3.bf16.xpose.msra.mxu0 %v3895_v31  ;;  %6114 = vmatpush3.bf16.xpose.msra.mxu1 %v4033_v32 }
 0xa46   :  { %6097 = vmatprep.mubr.msk.bf16.mxu0 %vm6427_vm0, %v6426_v0  ;;  %6115 = vmatprep.mubr.msk.bf16.mxu1 %vm6427_vm0, %v6426_v0 }
 0xa47   :  { %v3301_v7 = vpop.f32.mrb[124].mxu0  ;;  %v3430_v36 = vpop.f32.mrb[132].mxu1  ;;  %6107 = vmatprep.subr.bf16.mxu0 %v6426_v0  ;;  %6125 = vmatprep.subr.bf16.mxu1 %v6426_v0 }
 0xa48   :  { %v3302_v37 = vadd.f32 %v3301_v7, %v2687_v33  ;;  %v3431_v23 = vadd.f32 %v3430_v36, %v2691_v34  ;;  %v6015_v38 = vpop.f32.mrb[125].mxu0  ;;  %v6033_v39 = vpop.f32.mrb[133].mxu1 }
 0xa49   :  { %v3304_v42 = vpop.f32.mrb[126].mxu0  ;;  %v3433_v2 = vpop.f32.mrb[134].mxu1 }
 0xa4a   :  { %v3750_v47 = vpack.c.bf16 %v3302_v37, %v3302_v37  ;;  %v4217_v49 = vpack.c.bf16 %v3431_v23, %v3431_v23  ;;  %v6016_v50 = vpop.f32.mrb[127].mxu0  ;;  %v6034_v51 = vpop.f32.mrb[135].mxu1 }
 0xa4c   :  { %v3987_v59 = vsel %vm1173_vm2, %v3750_v47, 0  ;;  %v4229_v60 = vsel %vm1649_vm3, %v4217_v49, 0  ;;  %6098 = vmatmul.mubr.msk.bf16.vlgmr.msra.gmra.mrb[152].mxu0 %vm1173_vm2, %v3740_v46  ;;  %6116 = vmatmul.mubr.msk.bf16.vlgmr.msra.gmra.mrb[160].mxu1 %vm1173_vm2, %v3743_v3 }
 0xa4d   :  { %6108 = vmatpush3.bf16.xpose.msra.mxu0 %v3987_v59  ;;  %6126 = vmatpush3.bf16.msra.mxu1 %v4229_v60 }
 0xa4e   :  { %6109 = vmatprep.mubr.msk.bf16.mxu0 %vm6427_vm0, %v6426_v0  ;;  %6119 = vmatprep.subr.bf16.mxu0 %v6426_v0 }
 0xa4f   :  { %v3387_v54 = vpop.f32.mrb[128].mxu0  ;;  %v7170_v1 = vpop.f32.mrb[136].mxu1  ;;  %6127 = vmatprep.mubr.msk.bf16.mxu1 %vm6427_vm0, %v6426_v0  ;;  %6137 = vmatprep.subr.bf16.mxu1 %v6426_v0 }
 0xa50   :  { %v3388_v29 = vadd.f32 %v3387_v54, %v2689_v63  ;;  %v6027_v5 = vpop.f32.mrb[129].mxu0  ;;  %v6045_v4 = vpop.f32.mrb[137].mxu1 }
 0xa51   :  { %v3390_v8 = vpop.f32.mrb[130].mxu0  ;;  %v3519_v44 = vpop.f32.mrb[138].mxu1 }
 0xa52   :  { %v3752_v14 = vpack.c.bf16 %v3388_v29, %v3388_v29  ;;  %v6028_v11 = vpop.f32.mrb[131].mxu0  ;;  %v6046_v13 = vpop.f32.mrb[139].mxu1 }
 0xa54   :  { %v4079_v17 = vsel %vm1173_vm2, %v3752_v14, 0  ;;  %6110 = vmatmul.mubr.msk.bf16.vlgmr.msra.gmra.mrb[156].mxu0 %vm1173_vm2, %v3742_v9 }
 0xa55   :  { %6120 = vmatpush3.bf16.xpose.msra.mxu0 %v4079_v17  ;;  %6121 = vmatprep.mubr.msk.bf16.mxu0 %vm6427_vm0, %v6426_v0 }
 0xa56   :  { %6131 = vmatprep.subr.bf16.mxu0 %v6426_v0 }
 0xa57   :  { %v3473_v62 = vpop.f32.mrb[132].mxu0  ;;  %v7181_v20 = vpop.f32.mrb[140].mxu1 }
 0xa58   :  { %v3474_v21 = vadd.f32 %v3473_v62, %v2692_v61  ;;  %v6039_v22 = vpop.f32.mrb[133].mxu0  ;;  %v6057_v24 = vpop.f32.mrb[141].mxu1 }
 0xa59   :  { %v3476_v16 = vpop.f32.mrb[134].mxu0  ;;  %v3605_v25 = vpop.f32.mrb[142].mxu1 }
 0xa5a   :  { %v4218_v26 = vpack.c.bf16 %v3474_v21, %v3474_v21  ;;  %v6040_v58 = vpop.f32.mrb[135].mxu0  ;;  %v6058_v27 = vpop.f32.mrb[143].mxu1 }
 0xa5c   :  { %v4275_v30 = vsel %vm1649_vm3, %v4218_v26, 0  ;;  %6122 = vmatmul.mubr.msk.bf16.vlgmr.msra.gmra.mrb[160].mxu0 %vm1173_vm2, %v3744_v55 }
 0xa5d   :  { %6132 = vmatpush3.bf16.msra.mxu0 %v4275_v30  ;;  %6133 = vmatprep.mubr.msk.bf16.mxu0 %vm6427_vm0, %v6426_v0 }
 0xa5e   :  { %6143 = vmatprep.subr.bf16.mxu0 %v6426_v0 }
 0xa5f   :  { %v7188_v28 = vpop.f32.mrb[136].mxu0  ;;  %v7190_v19 = vpop.f32.mrb[144].mxu1 }
 0xa60   :  { %v6051_v31 = vpop.f32.mrb[137].mxu0  ;;  %v6069_v32 = vpop.f32.mrb[145].mxu1 }
 0xa61   :  { %v3562_v33 = vpop.f32.mrb[138].mxu0  ;;  %v3691_v34 = vpop.f32.mrb[146].mxu1 }
 0xa62   :  { %v6052_v6 = vpop.f32.mrb[139].mxu0  ;;  %v6070_v35 = vpop.f32.mrb[147].mxu1 }
 0xa67   :  { %v7192_v7 = vpop.f32.mrb[140].mxu0 }
 0xa68   :  { %v6063_v36 = vpop.f32.mrb[141].mxu0 }
 0xa69   :  { %v3648_v37 = vpop.f32.mrb[142].mxu0 }
 0xa6a   :  { %v6064_v23 = vpop.f32.mrb[143].mxu0 }
 0xa6f   :  { %v7194_v38 = vpop.f32.mrb[144].mxu0 }
 0xa70   :  { %v6075_v39 = vpop.f32.mrb[145].mxu0 }
 0xa71   :  { %v3734_v42 = vpop.f32.mrb[146].mxu0 }
 0xa72   :  { %v6076_v2 = vpop.f32.mrb[147].mxu0 }
 0xb07   :  { %v3793_v46 = vpop.f32.mrb[148].mxu1 }
 0xb08   :  { %v6081_v3 = vpop.f32.mrb[149].mxu1  ;;  %v4121_v47 = vsel %vm1173_vm2, %v3793_v46, -inf }
 0xb09   :  { %4122 = vmax.xlane.f32.xlu0 %v4121_v47  ;;  %v3796_v49 = vpop.f32.mrb[150].mxu1 }
 0xb0a   :  { %v6082_v50 = vpop.f32.mrb[151].mxu1 }
 0xb0f   :  { %v3885_v51 = vpop.f32.mrb[152].mxu1 }
 0xb10   :  { %v6093_v53 = vpop.f32.mrb[153].mxu1  ;;  %v4127_v59 = vsel %vm1173_vm2, %v3885_v51, -inf }
 0xb11   :  { %4128 = vmax.xlane.f32.xlu0 %v4127_v59  ;;  %v3888_v60 = vpop.f32.mrb[154].mxu1 }
 0xb12   :  { %v6094_v63 = vpop.f32.mrb[155].mxu1 }
 0xb17   :  { %v3839_v57 = vpop.f32.mrb[148].mxu0  ;;  %v3977_v54 = vpop.f32.mrb[156].mxu1 }
 0xb18   :  { %v6087_v29 = vpop.f32.mrb[149].mxu0  ;;  %v6105_v5 = vpop.f32.mrb[157].mxu1  ;;  %v4124_v4 = vsel %vm1173_vm2, %v3839_v57, -inf  ;;  %v4133_v8 = vsel %vm1173_vm2, %v3977_v54, -inf }
 0xb19   :  { %4125 = vmax.xlane.f32.xlu1 %v4124_v4  ;;  %v3842_v44 = vpop.f32.mrb[150].mxu0  ;;  %4134 = vmax.xlane.f32.xlu0 %v4133_v8  ;;  %v3980_v9 = vpop.f32.mrb[158].mxu1 }
 0xb1a   :  { %v6088_v14 = vpop.f32.mrb[151].mxu0  ;;  %v6106_v11 = vpop.f32.mrb[159].mxu1 }
 0xb1f   :  { %v3931_v13 = vpop.f32.mrb[152].mxu0  ;;  %v4069_v12 = vpop.f32.mrb[160].mxu1 }
 0xb20   :  { %v6099_v17 = vpop.f32.mrb[153].mxu0  ;;  %v6117_v61 = vpop.f32.mrb[161].mxu1  ;;  %v4130_v18 = vsel %vm1173_vm2, %v3931_v13, -inf  ;;  %v4139_v62 = vsel %vm1173_vm2, %v4069_v12, -inf }
 0xb21   :  { %4131 = vmax.xlane.f32.xlu1 %v4130_v18  ;;  %v3934_v21 = vpop.f32.mrb[154].mxu0  ;;  %4140 = vmax.xlane.f32.xlu0 %v4139_v62  ;;  %v4072_v22 = vpop.f32.mrb[162].mxu1 }
 0xb22   :  { %v6100_v24 = vpop.f32.mrb[155].mxu0  ;;  %v6118_v16 = vpop.f32.mrb[163].mxu1 }
 0xb27   :  { %v4023_v25 = vpop.f32.mrb[156].mxu0 }
 0xb28   :  { %v6111_v55 = vpop.f32.mrb[157].mxu0  ;;  %v4136_v26 = vsel %vm1173_vm2, %v4023_v25, -inf }
 0xb29   :  { %4137 = vmax.xlane.f32.xlu1 %v4136_v26  ;;  %v4026_v58 = vpop.f32.mrb[158].mxu0 }
 0xb2a   :  { %v6112_v27 = vpop.f32.mrb[159].mxu0  ;;  %v2693_v58 = vld [vmem:[#allocation5 + $0x150] sm:$0xff] }
 0xb2b   :  { %v3517_v27 = vadd.f32 %v7170_v1, %v2693_v58 }
 0xb2f   :  { %v4115_v30 = vpop.f32.mrb[160].mxu0 }
 0xb30   :  { %v6123_v31 = vpop.f32.mrb[161].mxu0  ;;  %v4142_v32 = vsel %vm1173_vm2, %v4115_v30, -inf }
 0xb31   :  { %4143 = vmax.xlane.f32.xlu1 %v4142_v32  ;;  %v4118_v33 = vpop.f32.mrb[162].mxu0  ;;  %v4219_v32 = vpack.c.bf16 %v3517_v27, %v3517_v27 }
 0xb32   :  { %v6124_v34 = vpop.f32.mrb[163].mxu0 }
 0xb33   :  { %v2695_v34 = vld [vmem:[#allocation5 + $0x160] sm:$0xff] }
 0xb96   :  { %v4123_v6 = vpop.xlane.xlu0 %4122 }
 0xb97   :  { %v4145_v35 = vsub.f32 %v3793_v46, %v4123_v6 }
 0xb99   :  { %v4153_v36 = vmul.f32 1.442695, %v4145_v35  ;;  %v4321_v35 = vsel %vm1649_vm3, %v4219_v32, 0  ;;  %v5380_v32 = vld [vmem:[%s7429_s3 + $0x24] sm:$0xf] }
 0xb9b   :  { %6302 = vpow2.f32 %v4153_v36  ;;  %v3603_v36 = vadd.f32 %v7181_v20, %v2695_v34 }
 0xb9e   :  { %v4129_v37 = vpop.xlane.xlu0 %4128 }
 0xb9f   :  { %v4147_v23 = vsub.f32 %v3885_v51, %v4129_v37 }
 0xba1   :  { %v4157_v39 = vmul.f32 1.442695, %v4147_v23 }
 0xba3   :  { %6304 = vpow2.f32 %v4157_v39  ;;  %v4221_v39 = vpack.c.bf16 %v3603_v36, %v3603_v36 }
 0xba5   :  { %v6303_v42 = vpop.eup %6302  ;;  %v4413_v20 = vsel %vm1649_vm3, %v4221_v39, 0 }
 0xba6   :  { %v4126_v2 = vpop.xlane.xlu1 %4125  ;;  %v4135_v3 = vpop.xlane.xlu0 %4134  ;;  %v4169_v47 = vsel %vm1173_vm2, %v6303_v42, 0.0 }
 0xba7   :  { %v4146_v49 = vsub.f32 %v3839_v57, %v4126_v2  ;;  %v4149_v50 = vsub.f32 %v3977_v54, %v4135_v3  ;;  %4170 = vadd.xlane.f32.xlu0 %v4169_v47  ;;  %v2694_v2 = vld [vmem:[#allocation5 + $0x158] sm:$0xff]  ;;  %v2697_v3 = vld [vmem:[#allocation5 + $0x170] sm:$0xff] }
 0xba9   :  { %v4155_v53 = vmul.f32 1.442695, %v4146_v49  ;;  %v4161_v59 = vmul.f32 1.442695, %v4149_v50  ;;  %v3560_v49 = vadd.f32 %v7188_v28, %v2694_v2 }
 0xbab   :  { %6306 = vpow2.f32 %v4155_v53  ;;  %v3689_v53 = vadd.f32 %v7190_v19, %v2697_v3 }
 0xbac   :  { %6308 = vpow2.f32 %v4161_v59 }
 0xbad   :  { %v6305_v60 = vpop.eup %6304  ;;  %v4223_v28 = vpack.c.bf16 %v3689_v53, %v3689_v53 }
 0xbae   :  { %v4132_v46 = vpop.xlane.xlu1 %4131  ;;  %v4141_v63 = vpop.xlane.xlu0 %4140  ;;  %v4175_v29 = vsel %vm1173_vm2, %v6305_v60, 0.0 }
 0xbaf   :  { %v4148_v51 = vsub.f32 %v3931_v13, %v4132_v46  ;;  %v4151_v5 = vsub.f32 %v4069_v12, %v4141_v63  ;;  %4176 = vadd.xlane.f32.xlu0 %v4175_v29  ;;  %v4220_v63 = vpack.c.bf16 %v3560_v49, %v3560_v49  ;;  %v5382_v49 = vld [vmem:[%s7429_s3 + $0x2c] sm:$0xf] }
 0xbb1   :  { %v4159_v4 = vmul.f32 1.442695, %v4148_v51  ;;  %v4165_v8 = vmul.f32 1.442695, %v4151_v5  ;;  %v2696_v51 = vld [vmem:[#allocation5 + $0x168] sm:$0xff] }
 0xbb3   :  { %6310 = vpow2.f32 %v4159_v4 }
 0xbb4   :  { %6312 = vpow2.f32 %v4165_v8  ;;  %v4367_v8 = vsel %vm1649_vm3, %v4220_v63, 0  ;;  %v4752_v63 = vsel %vm1649_vm3, %v5382_v49, 0 }
 0xbb5   :  { %v7206_v44 = vpop.eup %6306 }
 0xbb6   :  { %v7208_v57 = vpop.eup %6308  ;;  %v4138_v54 = vpop.xlane.xlu1 %4137  ;;  %v4172_v9 = vsel %vm1173_vm2, %v7206_v44, 0.0 }
 0xbb7   :  { %v4150_v14 = vsub.f32 %v4023_v25, %v4138_v54  ;;  %4173 = vadd.xlane.f32.xlu1 %v4172_v9  ;;  %v4181_v11 = vsel %vm1173_vm2, %v7208_v57, 0.0  ;;  %v3646_v54 = vadd.f32 %v7192_v7, %v2696_v51 }
 0xbb8   :  { %4182 = vadd.xlane.f32.xlu0 %v4181_v11 }
 0xbb9   :  { %v4163_v13 = vmul.f32 1.442695, %v4150_v14  ;;  %v4505_v14 = vsel %vm1649_vm3, %v4223_v28, 0 }
 0xbbb   :  { %6314 = vpow2.f32 %v4163_v13  ;;  %v2698_v13 = vld [vmem:[#allocation5 + $0x178] sm:$0xff] }
 0xbbd   :  { %v7214_v12 = vpop.eup %6310 }
 0xbbe   :  { %v7216_v17 = vpop.eup %6312  ;;  %v4144_v61 = vpop.xlane.xlu1 %4143  ;;  %v4178_v18 = vsel %vm1173_vm2, %v7214_v12, 0.0 }
 0xbbf   :  { %v4152_v62 = vsub.f32 %v4115_v30, %v4144_v61  ;;  %4179 = vadd.xlane.f32.xlu1 %v4178_v18  ;;  %v4187_v21 = vsel %vm1173_vm2, %v7216_v17, 0.0 }
 0xbc0   :  { %4188 = vadd.xlane.f32.xlu0 %v4187_v21 }
 0xbc1   :  { %v4167_v22 = vmul.f32 1.442695, %v4152_v62 }
 0xbc3   :  { %6316 = vpow2.f32 %v4167_v22  ;;  %v3732_v22 = vadd.f32 %v7194_v38, %v2698_v13 }
 0xbc5   :  { %v7222_v24 = vpop.eup %6314 }
 0xbc6   :  { %v4184_v16 = vsel %vm1173_vm2, %v7222_v24, 0.0 }
 0xbc7   :  { %4185 = vadd.xlane.f32.xlu1 %v4184_v16 }
 0xbcd   :  { %v7226_v25 = vpop.eup %6316 }
 0xbce   :  { %v4190_v55 = vsel %vm1173_vm2, %v7226_v25, 0.0 }
 0xbcf   :  { %4191 = vadd.xlane.f32.xlu1 %v4190_v55 }
 0xc34   :  { %v4171_v26 = vpop.xlane.xlu0 %4170 }
 0xc35   :  { %6318 = vrcp.f32 %v4171_v26 }
 0xc3c   :  { %v4177_v30 = vpop.xlane.xlu0 %4176 }
 0xc3d   :  { %6320 = vrcp.f32 %v4177_v30 }
 0xc3f   :  { %v6319_v31 = vpop.eup %6318 }
 0xc40   :  { %v4201_v33 = vmul.f32 %v6319_v31, %v6303_v42 }
 0xc42   :  { %v4209_v6 = vpack.c.bf16 %v4201_v33, %v4201_v33  ;;  %v5381_v33 = vld [vmem:[%s7429_s3 + $0x28] sm:$0xf] }
 0xc43   :  { %v4706_v36 = vsel %vm1649_vm3, %v5381_v33, 0 }
 0xc44   :  { %v4174_v37 = vpop.xlane.xlu1 %4173  ;;  %6128 = vmatmul.mubr.msk.bf16.vlgmr.msra.gmra.mrb[164].mxu1 %vm1173_vm2, %v4209_v6 }
 0xc45   :  { %6322 = vrcp.f32 %v4174_v37  ;;  %6138 = vmatpush3.bf16.msra.mxu1 %v4321_v35  ;;  %v4183_v23 = vpop.xlane.xlu0 %4182  ;;  %6139 = vmatprep.mubr.msk.bf16.mxu1 %vm6427_vm0, %v6426_v0 }
 0xc46   :  { %6324 = vrcp.f32 %v4183_v23  ;;  %6149 = vmatprep.subr.bf16.mxu1 %v6426_v0 }
 0xc47   :  { %v6321_v1 = vpop.eup %6320 }
 0xc48   :  { %v4203_v42 = vmul.f32 %v6321_v1, %v6305_v60  ;;  %v5383_v1 = vld [vmem:[%s7429_s3 + $0x30] sm:$0xf] }
 0xc49   :  { %v4798_v3 = vsel %vm1649_vm3, %v5383_v1, 0 }
 0xc4a   :  { %v4211_v47 = vpack.c.bf16 %v4203_v42, %v4203_v42 }
 0xc4c   :  { %v4180_v50 = vpop.xlane.xlu1 %4179  ;;  %6140 = vmatmul.mubr.msk.bf16.vlgmr.msra.gmra.mrb[168].mxu1 %vm1173_vm2, %v4211_v47 }
 0xc4d   :  { %6326 = vrcp.f32 %v4180_v50  ;;  %6150 = vmatpush3.bf16.msra.mxu1 %v4413_v20  ;;  %v4189_v59 = vpop.xlane.xlu0 %4188  ;;  %6151 = vmatprep.mubr.msk.bf16.mxu1 %vm6427_vm0, %v6426_v0  ;;  %v5385_v50 = vld [vmem:[%s7429_s3 + $0x38] sm:$0xf] }
 0xc4e   :  { %6328 = vrcp.f32 %v4189_v59  ;;  %6161 = vmatprep.subr.bf16.mxu1 %v6426_v0 }
 0xc4f   :  { %v6323_v60 = vpop.eup %6322 }
 0xc50   :  { %v6325_v46 = vpop.eup %6324  ;;  %v4202_v29 = vmul.f32 %v6323_v60, %v7206_v44 }
 0xc51   :  { %v4205_v5 = vmul.f32 %v6325_v46, %v7208_v57  ;;  %v4222_v57 = vpack.c.bf16 %v3646_v54, %v3646_v54  ;;  %v5384_v54 = vld [vmem:[%s7429_s3 + $0x34] sm:$0xf] }
 0xc52   :  { %v4210_v4 = vpack.c.bf16 %v4202_v29, %v4202_v29 }
 0xc53   :  { %v4213_v19 = vpack.c.bf16 %v4205_v5, %v4205_v5  ;;  %v4459_v21 = vsel %vm1649_vm3, %v4222_v57, 0  ;;  %v4890_v5 = vsel %vm1649_vm3, %v5385_v50, 0  ;;  %v4844_v57 = vsel %vm1649_vm3, %v5384_v54, 0 }
 0xc54   :  { %6134 = vmatmul.mubr.msk.bf16.vlgmr.msra.gmra.mrb[164].mxu0 %vm1173_vm2, %v4210_v4  ;;  %v4186_v9 = vpop.xlane.xlu1 %4185 }
 0xc55   :  { %6144 = vmatpush3.bf16.msra.mxu0 %v4367_v8  ;;  %6330 = vrcp.f32 %v4186_v9  ;;  %6152 = vmatmul.mubr.msk.bf16.vlgmr.msra.gmra.mrb[172].mxu1 %vm1173_vm2, %v4213_v19 }
 0xc56   :  { %6162 = vmatpush3.bf16.msra.mxu1 %v4505_v14  ;;  %6145 = vmatprep.mubr.msk.bf16.mxu0 %vm6427_vm0, %v6426_v0 }
 0xc57   :  { %v6327_v44 = vpop.eup %6326  ;;  %6155 = vmatprep.subr.bf16.mxu0 %v6426_v0  ;;  %6163 = vmatprep.mubr.msk.bf16.mxu1 %vm6427_vm0, %v6426_v0 }
 0xc58   :  { %v6329_v7 = vpop.eup %6328  ;;  %v4204_v11 = vmul.f32 %v6327_v44, %v7214_v12  ;;  %6173 = vmatprep.subr.bf16.mxu1 %v6426_v0 }
 0xc59   :  { %v4207_v61 = vmul.f32 %v6329_v7, %v7216_v17  ;;  %v4224_v17 = vpack.c.bf16 %v3732_v22, %v3732_v22  ;;  %v5386_v22 = vld [vmem:[%s7429_s3 + $0x3c] sm:$0xf] }
 0xc5a   :  { %v4212_v18 = vpack.c.bf16 %v4204_v11, %v4204_v11 }
 0xc5b   :  { %v4215_v62 = vpack.c.bf16 %v4207_v61, %v4207_v61  ;;  %v4551_v26 = vsel %vm1649_vm3, %v4224_v17, 0 }
 0xc5c   :  { %6146 = vmatmul.mubr.msk.bf16.vlgmr.msra.gmra.mrb[168].mxu0 %vm1173_vm2, %v4212_v18  ;;  %v4192_v16 = vpop.xlane.xlu1 %4191 }
 0xc5d   :  { %6156 = vmatpush3.bf16.msra.mxu0 %v4459_v21  ;;  %6332 = vrcp.f32 %v4192_v16  ;;  %6164 = vmatmul.mubr.msk.bf16.vlgmr.msra.gmra.mrb[176].mxu1 %vm1173_vm2, %v4215_v62 }
 0xc5e   :  { %6157 = vmatprep.mubr.msk.bf16.mxu0 %vm6427_vm0, %v6426_v0  ;;  %6167 = vmatprep.subr.bf16.mxu0 %v6426_v0 }
 0xc5f   :  { %v6331_v12 = vpop.eup %6330  ;;  %6175 = vmatprep.mubr.msk.bf16.mxu1 %vm6427_vm0, %v6426_v0 }
 0xc60   :  { %v4206_v55 = vmul.f32 %v6331_v12, %v7222_v24  ;;  %v5379_v24 = vld [vmem:[%s7429_s3 + $0x20] sm:$0xf] }
 0xc61   :  { %v4614_v31 = vsel %vm1649_vm3, %v5379_v24, 0 }
 0xc62   :  { %v4214_v38 = vpack.c.bf16 %v4206_v55, %v4206_v55  ;;  %6174 = vmatpush3.bf16.msra.mxu1 %v4614_v31  ;;  %v4936_v55 = vsel %vm1649_vm3, %v5386_v22, 0 }
 0xc63   :  { %6185 = vmatprep.subr.bf16.mxu1 %v6426_v0 }
 0xc64   :  { %6158 = vmatmul.mubr.msk.bf16.vlgmr.msra.gmra.mrb[172].mxu0 %vm1173_vm2, %v4214_v38 }
 0xc65   :  { %6168 = vmatpush3.bf16.msra.mxu0 %v4551_v26  ;;  %6169 = vmatprep.mubr.msk.bf16.mxu0 %vm6427_vm0, %v6426_v0 }
 0xc66   :  { %6179 = vmatprep.subr.bf16.mxu0 %v6426_v0 }
 0xc67   :  { %v6333_v58 = vpop.eup %6332 }
 0xc68   :  { %v4208_v27 = vmul.f32 %v6333_v58, %v7226_v25  ;;  %v4660_v25 = vsel %vm1649_vm3, %v5380_v32, 0 }
 0xc6a   :  { %v4216_v30 = vpack.c.bf16 %v4208_v27, %v4208_v27 }
 0xc6c   :  { %6170 = vmatmul.mubr.msk.bf16.vlgmr.msra.gmra.mrb[176].mxu0 %vm1173_vm2, %v4216_v30 }
 0xc6d   :  { %6181 = vmatprep.mubr.msk.bf16.mxu0 %vm6427_vm0, %v6426_v0  ;;  %6180 = vmatpush3.bf16.msra.mxu0 %v4660_v25 }
 0xc6e   :  { %6191 = vmatprep.subr.bf16.mxu0 %v6426_v0 }
 0xd17   :  { %v4265_v34 = vpop.f32.mrb[164].mxu1 }
 0xd18   :  { %v4593_v6 = vpack.c.bf16 %v4265_v34, %v4265_v34  ;;  %v6129_v35 = vpop.f32.mrb[165].mxu1 }
 0xd19   :  { %v4268_v37 = vpop.f32.mrb[166].mxu1 }
 0xd1a   :  { %v6130_v23 = vpop.f32.mrb[167].mxu1  ;;  %6176 = vmatmul.mubr.msk.bf16.vlgmr.msra.gmra.mrb[180].mxu1 %vm1173_vm2, %v4593_v6 }
 0xd1b   :  { %6186 = vmatpush3.bf16.msra.mxu1 %v4706_v36  ;;  %6187 = vmatprep.mubr.msk.bf16.mxu1 %vm6427_vm0, %v6426_v0 }
 0xd1c   :  { %6197 = vmatprep.subr.bf16.mxu1 %v6426_v0 }
 0xd1f   :  { %v4357_v39 = vpop.f32.mrb[168].mxu1 }
 0xd20   :  { %v4595_v42 = vpack.c.bf16 %v4357_v39, %v4357_v39  ;;  %v6141_v2 = vpop.f32.mrb[169].mxu1 }
 0xd21   :  { %v4360_v47 = vpop.f32.mrb[170].mxu1 }
 0xd22   :  { %v6142_v20 = vpop.f32.mrb[171].mxu1  ;;  %6188 = vmatmul.mubr.msk.bf16.vlgmr.msra.gmra.mrb[184].mxu1 %vm1173_vm2, %v4595_v42 }
 0xd23   :  { %6198 = vmatpush3.bf16.msra.mxu1 %v4798_v3  ;;  %6199 = vmatprep.mubr.msk.bf16.mxu1 %vm6427_vm0, %v6426_v0 }
 0xd24   :  { %6209 = vmatprep.subr.bf16.mxu1 %v6426_v0 }
 0xd27   :  { %v4311_v53 = vpop.f32.mrb[164].mxu0 }
 0xd28   :  { %v4594_v59 = vpack.c.bf16 %v4311_v53, %v4311_v53  ;;  %v4449_v60 = vpop.f32.mrb[172].mxu1  ;;  %v6135_v46 = vpop.f32.mrb[165].mxu0  ;;  %v7345_v53 = vld [vmem:[%s7433_s7 + $0x8] sm:$0x3f] }
 0xd29   :  { %v4597_v29 = vpack.c.bf16 %v4449_v60, %v4449_v60  ;;  %v6153_v28 = vpop.f32.mrb[173].mxu1  ;;  %v4314_v51 = vpop.f32.mrb[166].mxu0 }
 0xd2a   :  { %v4452_v4 = vpop.f32.mrb[174].mxu1  ;;  %v6136_v19 = vpop.f32.mrb[167].mxu0  ;;  %6182 = vmatmul.mubr.msk.bf16.vlgmr.msra.gmra.mrb[180].mxu0 %vm1173_vm2, %v4594_v59  ;;  %v4989_v59 = vrot.slane %v7345_v53, %v6889_v52 }
 0xd2b   :  { %v6154_v8 = vpop.f32.mrb[175].mxu1  ;;  %6200 = vmatmul.mubr.msk.bf16.vlgmr.msra.gmra.mrb[188].mxu1 %vm1173_vm2, %v4597_v29  ;;  %6192 = vmatpush3.bf16.msra.mxu0 %v4752_v63 }
 0xd2c   :  { %6210 = vmatpush3.bf16.msra.mxu1 %v4890_v5  ;;  %6193 = vmatprep.mubr.msk.bf16.mxu0 %vm6427_vm0, %v6426_v0 }
 0xd2d   :  { %6211 = vmatprep.mubr.msk.bf16.mxu1 %vm6427_vm0, %v6426_v0  ;;  %6203 = vmatprep.subr.bf16.mxu0 %v6426_v0 }
 0xd2e   :  { %6221 = vmatprep.subr.bf16.mxu1 %v6426_v0 }
 0xd2f   :  { %v4403_v9 = vpop.f32.mrb[168].mxu0 }
 0xd30   :  { %v4596_v14 = vpack.c.bf16 %v4403_v9, %v4403_v9  ;;  %v4541_v44 = vpop.f32.mrb[176].mxu1  ;;  %v6147_v7 = vpop.f32.mrb[169].mxu0 }
 0xd31   :  { %v4599_v11 = vpack.c.bf16 %v4541_v44, %v4541_v44  ;;  %v6165_v13 = vpop.f32.mrb[177].mxu1  ;;  %v4406_v61 = vpop.f32.mrb[170].mxu0 }
 0xd32   :  { %v4544_v18 = vpop.f32.mrb[178].mxu1  ;;  %v6148_v62 = vpop.f32.mrb[171].mxu0  ;;  %6194 = vmatmul.mubr.msk.bf16.vlgmr.msra.gmra.mrb[184].mxu0 %vm1173_vm2, %v4596_v14 }
 0xd33   :  { %v6166_v21 = vpop.f32.mrb[179].mxu1  ;;  %6212 = vmatmul.mubr.msk.bf16.vlgmr.msra.gmra.mrb[192].mxu1 %vm1173_vm2, %v4599_v11  ;;  %6204 = vmatpush3.bf16.msra.mxu0 %v4844_v57 }
 0xd34   :  { %6205 = vmatprep.mubr.msk.bf16.mxu0 %vm6427_vm0, %v6426_v0  ;;  %6215 = vmatprep.subr.bf16.mxu0 %v6426_v0 }
 0xd35   :  { %6225 = vmatprep.mubr.msk.bf16.mxu1 %vm6427_vm0, %v6426_v0 }
 0xd37   :  { %v4495_v16 = vpop.f32.mrb[172].mxu0 }
 0xd38   :  { %v4598_v12 = vpack.c.bf16 %v4495_v16, %v4495_v16  ;;  %v6159_v17 = vpop.f32.mrb[173].mxu0 }
 0xd39   :  { %v4498_v38 = vpop.f32.mrb[174].mxu0 }
 0xd3a   :  { %v6160_v26 = vpop.f32.mrb[175].mxu0  ;;  %6206 = vmatmul.mubr.msk.bf16.vlgmr.msra.gmra.mrb[188].mxu0 %vm1173_vm2, %v4598_v12 }
 0xd3b   :  { %6216 = vmatpush3.bf16.msra.mxu0 %v4936_v55  ;;  %6217 = vmatprep.mubr.msk.bf16.mxu0 %vm6427_vm0, %v6426_v0 }
 0xd3c   :  { %6229 = vmatprep.subr.bf16.mxu0 %v6426_v0 }
 0xd3f   :  { %v4587_v58 = vpop.f32.mrb[176].mxu0 }
 0xd40   :  { %v4600_v27 = vpack.c.bf16 %v4587_v58, %v4587_v58  ;;  %v6171_v30 = vpop.f32.mrb[177].mxu0 }
 0xd41   :  { %v4590_v24 = vpop.f32.mrb[178].mxu0 }
 0xd42   :  { %v6172_v31 = vpop.f32.mrb[179].mxu0  ;;  %6218 = vmatmul.mubr.msk.bf16.vlgmr.msra.gmra.mrb[192].mxu0 %vm1173_vm2, %v4600_v27 }
 0xd43   :  { %6237 = vmatprep.mubr.msk.bf16.mxu0 %vm6427_vm0, %v6426_v0 }
 0xded   :  { %v4650_v32 = vpop.f32.mrb[180].mxu1 }
 0xdee   :  { %v6177_v25 = vpop.f32.mrb[181].mxu1 }
 0xdef   :  { %v4653_v33 = vpop.f32.mrb[182].mxu1  ;;  %v6257_v25 = vld [vmem:[%s7430_s4 + $0x18] sm:$0xff]  }
 0xdf0   :  { %v6178_v34 = vpop.f32.mrb[183].mxu1  ;;  %v6258_v33 = vld [vmem:[%s7432_s6 + $0x20] sm:$0xff]  }
 0xdf1   :  { %6230 = vmatpush3.bf16.msra.mxu0 %v6258_v33  ;;  %v6259_v34 = vld [vmem:[%s7432_s6 + $0x28] sm:$0xff]   ;;  %v5214_v33 = vrot.slane %v7345_v53, %v2633_v40 }
 0xdf2   :  { %6231 = vmatprep.subr.bf16.mxu0 %v6426_v0 }
 0xdf5   :  { %v4742_v6 = vpop.f32.mrb[184].mxu1  ;;  %6232 = vmatpush3.bf16.msra.mxu0 %v6259_v34 }
 0xdf6   :  { %v6189_v35 = vpop.f32.mrb[185].mxu1  ;;  %6233 = vmatprep.subr.bf16.mxu0 %v6426_v0 }
 0xdf7   :  { %v4745_v36 = vpop.f32.mrb[186].mxu1 }
 0xdf8   :  { %v6190_v37 = vpop.f32.mrb[187].mxu1 }
 0xdfd   :  { %v4696_v23 = vpop.f32.mrb[180].mxu0 }
 0xdfe   :  { %v4978_v1 = vadd.f32 %v4696_v23, %v4650_v32  ;;  %v4834_v39 = vpop.f32.mrb[188].mxu1  ;;  %v6183_v42 = vpop.f32.mrb[181].mxu0 }
 0xdff   :  { %v6201_v2 = vpop.f32.mrb[189].mxu1  ;;  %v4699_v3 = vpop.f32.mrb[182].mxu0  ;;  %v5023_v42 = vrot.slane %v7345_v53, %v6925_v43 }
 0xe00   :  { %v4837_v47 = vpop.f32.mrb[190].mxu1  ;;  %v6184_v20 = vpop.f32.mrb[183].mxu0  ;;  %v4980_v49 = vadd.f32 %v4978_v1, %v4742_v6 }
 0xe01   :  { %v6202_v50 = vpop.f32.mrb[191].mxu1 }
 0xe05   :  { %v4788_v60 = vpop.f32.mrb[184].mxu0 }
 0xe06   :  { %v4982_v46 = vadd.f32 %v4980_v49, %v4788_v60  ;;  %v4926_v63 = vpop.f32.mrb[192].mxu1  ;;  %v6195_v29 = vpop.f32.mrb[185].mxu0  ;;  %v5029_v49 = vrot.slane %v7345_v53, %v2449_v48  ;;  %v5400_v48 = vld [vmem:[%s7431_s5 + $0x1] ss:$0 sm:$0xff] }
 0xe07   :  { %v6213_v28 = vpop.f32.mrb[193].mxu1  ;;  %v4791_v51 = vpop.f32.mrb[186].mxu0  ;;  %v6261_v29 = vld [vmem:[%s7432_s6 + $0x38] sm:$0xff]  }
 0xe08   :  { %v4990_v5 = vadd.f32 %v4989_v59, %v4982_v46  ;;  %v4929_v4 = vpop.f32.mrb[194].mxu1  ;;  %v6196_v19 = vpop.f32.mrb[187].mxu0 }
 0xe09   :  { %v6214_v8 = vpop.f32.mrb[195].mxu1 }
 0xe0a   :  { %v4992_v54 = vadd.f32 %v4990_v5, %v6970_v56 }
 0xe0c   :  { %v4994_v9 = vsel %vm118_vm1, %v4992_v54, 0.0 }
 0xe0d   :  { %v4880_v14 = vpop.f32.mrb[188].mxu0  ;;  %4995 = vadd.xlane.f32.xlu0 %v4994_v9 }
 0xe0e   :  { %v4979_v44 = vadd.f32 %v4880_v14, %v4834_v39  ;;  %v6207_v7 = vpop.f32.mrb[189].mxu0 }
 0xe0f   :  { %v4883_v57 = vpop.f32.mrb[190].mxu0 }
 0xe10   :  { %v6208_v11 = vpop.f32.mrb[191].mxu0  ;;  %v4981_v13 = vadd.f32 %v4979_v44, %v4926_v63  ;;  %v6260_v63 = vld [vmem:[%s7432_s6 + $0x30] sm:$0xff]  }
 0xe11   :  { %6234 = vmatpush3.bf16.msra.mxu0 %v6260_v63 }
 0xe12   :  { %6235 = vmatprep.subr.bf16.mxu0 %v6426_v0 }
 0xe15   :  { %v4972_v61 = vpop.f32.mrb[192].mxu0  ;;  %6236 = vmatpush3.bf16.msra.mxu0 %v6261_v29 }
 0xe16   :  { %v4983_v18 = vadd.f32 %v4981_v13, %v4972_v61  ;;  %v6219_v62 = vpop.f32.mrb[193].mxu0 }
 0xe17   :  { %v4975_v21 = vpop.f32.mrb[194].mxu0 }
 0xe18   :  { %v4991_v22 = vadd.f32 %v4989_v59, %v4983_v18  ;;  %v6220_v16 = vpop.f32.mrb[195].mxu0 }
 0xe1a   :  { %v4993_v12 = vadd.f32 %v4991_v22, %v6982_v15  ;;  %v6256_v15 = vld [vmem:[%s7430_s4 + $0x10] sm:$0xff]  }
 0xe1b   :  { %6222 = vmatpush3.bf16.msra.mxu1 %v6256_v15 }
 0xe1c   :  { %v4997_v17 = vsel %vm118_vm1, %v4993_v12, 0.0  ;;  %6223 = vmatprep.subr.bf16.mxu1 %v6426_v0  ;;  %v5114_v0 = vrot.slane %v7345_v53, %v2532_v10 }
 0xe1d   :  { %4998 = vadd.xlane.f32.xlu1 %v4997_v17 }
 0xe1f   :  { %6224 = vmatpush3.bf16.msra.mxu1 %v6257_v25 }
 0xe9a   :  { %v4996_v56 = vpop.xlane.xlu0 %4995 }
 0xe9b   :  { %v5000_v55 = vmul.f32 0.03125, %v4996_v56 }
 0xe9d   :  { %v5002_v38 = vsub.f32 %v4992_v54, %v5000_v55 }
 0xe9f   :  { %v5004_v26 = vmul.f32 %v5002_v38, %v5002_v38 }
 0xea1   :  { %v5006_v58 = vsel %vm118_vm1, %v5004_v26, 0.0 }
 0xea2   :  { %5007 = vadd.xlane.f32.xlu0 %v5006_v58 }
 0xeaa   :  { %v4999_v27 = vpop.xlane.xlu1 %4998 }
 0xeab   :  { %v5001_v30 = vmul.f32 0.03125, %v4999_v27 }
 0xead   :  { %v5003_v24 = vsub.f32 %v4993_v12, %v5001_v30 }
 0xeaf   :  { %v5005_v31 = vmul.f32 %v5003_v24, %v5003_v24 }
 0xeb1   :  { %v5009_v32 = vsel %vm118_vm1, %v5005_v31, 0.0 }
 0xeb2   :  { %5010 = vadd.xlane.f32.xlu1 %v5009_v32 }
 0xf2f   :  { %v5008_v6 = vpop.xlane.xlu0 %5007 }
 0xf30   :  { %v5012_v35 = vmul.f32 0.03125, %v5008_v6 }
 0xf32   :  { %v5014_v36 = vadd.f32 1e-05, %v5012_v35  ;;  %v5220_v35 = vrot.slane %v7345_v53, %v2639_v41 }
 0xf34   :  { %6334 = vrsqrt.f32 %v5014_v36 }
 0xf3e   :  { %v6335_v39 = vpop.eup %6334 }
 0xf3f   :  { %v5011_v37 = vpop.xlane.xlu1 %5010  ;;  %v5018_v2 = vmul.f32 %v6335_v39, %v5002_v38 }
 0xf40   :  { %v5013_v23 = vmul.f32 0.03125, %v5011_v37 }
 0xf41   :  { %v5024_v47 = vmul.f32 %v5023_v42, %v5018_v2 }
 0xf42   :  { %v5015_v1 = vadd.f32 1e-05, %v5013_v23 }
 0xf43   :  { %v5030_v59 = vadd.f32 %v5029_v49, %v5024_v47 }
 0xf44   :  { %6336 = vrsqrt.f32 %v5015_v1 }
 0xf4e   :  { %v6337_v3 = vpop.eup %6336 }
 0xf4f   :  { %v5019_v20 = vmul.f32 %v6337_v3, %v5003_v24 }
 0xf51   :  { %v5025_v50 = vmul.f32 %v5023_v42, %v5019_v20 }
 0xf53   :  { %v5031_v60 = vadd.f32 %v5029_v49, %v5025_v50 }
 0xf55   :  { %v5032_v46 = vpack.c.bf16 %v5031_v60, %v5030_v59 }
 0xf57   :  { %6226 = vmatmul.mubr.msk.bf16.vlgmr.msra.gmra.mrb[196].mxu1 %vm118_vm1, %v5032_v46 }
0x102a   :  { %v5092_v28 = vpop.f32.mrb[196].mxu1 }
0x102b   :  { %v5093_v51 = vadd.f32 %v5400_v48, %v5092_v28  ;;  %v6227_v5 = vpop.f32.mrb[197].mxu1 }
0x102c   :  { %v5095_v4 = vpop.f32.mrb[198].mxu1  ;;  %v5223_v5 = vld [vmem:[%s7434_s8] sm:$0x3]  ;;  %s6392_s8 = scalar_lea.vmem %s5270_s19, 256 }
0x102d   :  { %v5096_v19 = vadd.f32 %v5400_v48, %v5095_v4  ;;  %v6228_v8 = vpop.f32.mrb[199].mxu1  ;;  %v5099_v54 = vmax.f32 %v5093_v51, 0.0  ;;  %v5253_v4 = vrot.slane %v5223_v5, %v6889_v52  ;;  %p6393_p2 = scmp.ne.s32.totalorder %s5270_s19, %s6392_s8  ;;  %p6398_p4 = scmp.lt.s32.totalorder %s6392_s8, %s6392_s8 }
0x102f   :  { %v5100_v9 = vmax.f32 %v5096_v19, 0.0  ;;  %p6399_p5 = por %p6398_p4, %p6397_p3 }
0x1031   :  { %v5101_v14 = vpack.c.bf16 %v5100_v9, %v5099_v54  ;;  %v5259_v54 = vrot.slane %v5223_v5, %v6925_v43  ;;  %p6400_p6 = pnand %p6399_p5, %p6393_p2 }
0x1033   :  { %6238 = vmatmul.mubr.msk.bf16.vlgmr.msra.gmra.mrb[196].mxu0 %vm2558_vm4, %v5101_v14 }
0x1106   :  { %v5176_v44 = vpop.f32.mrb[196].mxu0 }
0x1107   :  { %v5177_v7 = vadd.f32 %v5176_v44, %v5114_v0  ;;  %v6239_v57 = vpop.f32.mrb[197].mxu0 }
0x1108   :  { %v5179_v11 = vpop.f32.mrb[198].mxu0 }
0x1109   :  { %v5180_v13 = vadd.f32 %v5179_v11, %v5114_v0  ;;  %v6240_v61 = vpop.f32.mrb[199].mxu0  ;;  %v5183_v18 = vadd.f32 %v5177_v7, %v5030_v59 }
0x110b   :  { %v5185_v62 = vsel %vm118_vm1, %v5183_v18, 0.0  ;;  %v5184_v21 = vadd.f32 %v5180_v13, %v5031_v60 }
0x110c   :  { %5186 = vadd.xlane.f32.xlu0 %v5185_v62 }
0x110d   :  { %v5188_v22 = vsel %vm118_vm1, %v5184_v21, 0.0 }
0x110e   :  { %5189 = vadd.xlane.f32.xlu1 %v5188_v22 }
0x1199   :  { %v5187_v16 = vpop.xlane.xlu0 %5186 }
0x119a   :  { %v5191_v12 = vmul.f32 0.03125, %v5187_v16 }
0x119b   :  { %v5190_v17 = vpop.xlane.xlu1 %5189 }
0x119c   :  { %v5193_v56 = vsub.f32 %v5183_v18, %v5191_v12  ;;  %v5192_v55 = vmul.f32 0.03125, %v5190_v17 }
0x119e   :  { %v5194_v10 = vsub.f32 %v5184_v21, %v5192_v55  ;;  %v5195_v38 = vmul.f32 %v5193_v56, %v5193_v56 }
0x11a0   :  { %v5197_v26 = vsel %vm118_vm1, %v5195_v38, 0.0  ;;  %v5196_v58 = vmul.f32 %v5194_v10, %v5194_v10 }
0x11a1   :  { %5198 = vadd.xlane.f32.xlu0 %v5197_v26 }
0x11a2   :  { %v5200_v27 = vsel %vm118_vm1, %v5196_v58, 0.0 }
0x11a3   :  { %5201 = vadd.xlane.f32.xlu1 %v5200_v27 }
0x122e   :  { %v5199_v30 = vpop.xlane.xlu0 %5198 }
0x122f   :  { %v5203_v24 = vmul.f32 0.03125, %v5199_v30 }
0x1230   :  { %v5202_v31 = vpop.xlane.xlu1 %5201 }
0x1231   :  { %v5205_v32 = vadd.f32 1e-05, %v5203_v24  ;;  %v5204_v15 = vmul.f32 0.03125, %v5202_v31 }
0x1233   :  { %6338 = vrsqrt.f32 %v5205_v32  ;;  %v5206_v25 = vadd.f32 1e-05, %v5204_v15 }
0x1235   :  { %6340 = vrsqrt.f32 %v5206_v25 }
0x123d   :  { %v6339_v34 = vpop.eup %6338 }
0x123e   :  { %v5209_v6 = vmul.f32 %v6339_v34, %v5193_v56 }
0x123f   :  { %v6341_v36 = vpop.eup %6340 }
0x1240   :  { %v5215_v37 = vmul.f32 %v5214_v33, %v5209_v6  ;;  %v5210_v23 = vmul.f32 %v6341_v36, %v5194_v10 }
0x1242   :  { %v5221_v1 = vadd.f32 %v5220_v35, %v5215_v37  ;;  %v5216_v39 = vmul.f32 %v5214_v33, %v5210_v23 }
0x1244   :  { %v5224_v42 = vsel %vm118_vm1, %v5221_v1, 0.0  ;;  %v5222_v2 = vadd.f32 %v5220_v35, %v5216_v39 }
0x1245   :  { %5225 = vadd.xlane.f32.xlu0 %v5224_v42 }
0x1246   :  { %v5227_v3 = vsel %vm118_vm1, %v5222_v2, 0.0 }
0x1247   :  { %5228 = vadd.xlane.f32.xlu1 %v5227_v3 }
0x12d2   :  { %v5226_v47 = vpop.xlane.xlu0 %5225 }
0x12d3   :  { %v5230_v40 = vmul.f32 0.03125, %v5226_v47 }
0x12d4   :  { %v5229_v20 = vpop.xlane.xlu1 %5228 }
0x12d5   :  { %v5232_v49 = vsub.f32 %v5221_v1, %v5230_v40  ;;  %v5231_v50 = vmul.f32 0.03125, %v5229_v20 }
0x12d7   :  { %v5233_v45 = vsub.f32 %v5222_v2, %v5231_v50  ;;  %v5234_v59 = vmul.f32 %v5232_v49, %v5232_v49 }
0x12d9   :  { %v5236_v41 = vsel %vm118_vm1, %v5234_v59, 0.0  ;;  %v5235_v53 = vmul.f32 %v5233_v45, %v5233_v45 }
0x12da   :  { %5237 = vadd.xlane.f32.xlu0 %v5236_v41 }
0x12db   :  { %v5239_v60 = vsel %vm118_vm1, %v5235_v53, 0.0 }
0x12dc   :  { %5240 = vadd.xlane.f32.xlu1 %v5239_v60 }
0x1367   :  { %v5238_v46 = vpop.xlane.xlu0 %5237 }
0x1368   :  { %v5242_v63 = vmul.f32 0.03125, %v5238_v46 }
0x1369   :  { %v5241_v29 = vpop.xlane.xlu1 %5240 }
0x136a   :  { %v5244_v48 = vadd.f32 1e-05, %v5242_v63  ;;  %v5243_v28 = vmul.f32 0.03125, %v5241_v29 }
0x136c   :  { %6342 = vrsqrt.f32 %v5244_v48  ;;  %v5245_v51 = vadd.f32 1e-05, %v5243_v28 }
0x136e   :  { %6344 = vrsqrt.f32 %v5245_v51 }
0x1376   :  { %v6343_v19 = vpop.eup %6342 }
0x1377   :  { %v5248_v8 = vmul.f32 %v6343_v19, %v5232_v49 }
0x1378   :  { %v6345_v9 = vpop.eup %6344 }
0x1379   :  { %v5249_v14 = vmul.f32 %v6345_v9, %v5233_v45  ;;  %v5254_v0 = vmul.f32 %v5253_v4, %v5248_v8 }
0x137b   :  { %v5255_v44 = vmul.f32 %v5253_v4, %v5249_v14  ;;  %v5260_v7 = vadd.f32 %v5259_v54, %v5254_v0 }
0x137d   :  { %v5261_v57 = vadd.f32 %v5259_v54, %v5255_v44  ;;  %5262 = vst.msk [vmem:[#allocation7] sm:$0xff] %vm118_vm1, %v5260_v7 }
0x137f   :  { %5263 = vst.msk [vmem:[#allocation7 + $0x8] sm:$0xff] %vm118_vm1, %v5261_v57 }
0x1380   :  { %6403 = shalt.err (!%p6400_p6)
}
0x1381   :  { %s6404_s21 = scalar_lea.hbm %s7435_s9, 256 }
0x1382   :  { %p6405_p7 = scmp.ne.s32.totalorder %s7435_s9, %s6404_s21  ;;  %p6408_p8 = scmp.lt.u32.totalorder %s6404_s21, %s7435_s9 }
0x1384   :  { %p6410_p9 = pnand %p6408_p8, %p6405_p7 }
0x1386   :  { %6413 = shalt.err (!%p6410_p9)
}
0x1387   :  { %5275 = dma.vmem_to_hbm [thread:$0]  %s5270_s19, 256, %s7435_s9, [#allocation4], %s6424_s1, %s6424_s1, %s6425_s10  }
0x1388   :  { %6418 = dma.done.wait [#allocation4], 256  }
0x1389   :  { %6419 = vsyncadd [#allocation4], 4294967040 }
0x138a   :  { %5279 = vsyncpa [#allocation3], 1 }
0x138b   :  { %5280 = vsyncpa [#allocation6], 1 }
0x138c   :  { %5281 = vsyncpa [#allocation4], 1 }

</bundles_post_ra>
